<compile_context>
chip_gen: v7x
topology: tpu7x:2x2x1
jax: 0.10.0
libtpu: 0.0.40
codegen_flags: <defaults>
</compile_context>

<pallas_src>
import functools

import jax
import jax.numpy as jnp
from jax.experimental import pallas as pl
from jax.experimental.pallas import tpu as pltpu


# ---------------------------------------------------------------------------
# helpers
# ---------------------------------------------------------------------------
def _round_up(n, m):
    return ((n + m - 1) // m) * m


def _pad_rows(x, multiple):
    pad = (-x.shape[0]) % multiple
    if pad:
        x = jnp.pad(x, ((0, pad), (0, 0)))
    return x


_PARALLEL = pltpu.CompilerParams(dimension_semantics=("parallel",))
_ROW_TILE = 256  # fits VMEM (incl. double-buffering) on v5e/v6e/v7x at D<=256, F<=1024


# ---------------------------------------------------------------------------
# Kernel 1: fused input projections for MSDeformAttn
#   value = (src @ Wv + bv) [* keep_mask]
#   q     = src + pos
#   off   = q @ Woff + boff
#   attn  = softmax_per_head(q @ Wattn + battn)        (softmax over L*P)
# ---------------------------------------------------------------------------
def _make_fused_proj_kernel(has_pos, has_mask):
    def kernel(*refs):
        i = 0
        src_ref = refs[i]; i += 1
        pos_ref = None
        keep_ref = None
        if has_pos:
            pos_ref = refs[i]; i += 1
        if has_mask:
            keep_ref = refs[i]; i += 1
        (wv_ref, bv_ref, woff_ref, boff_ref,
         wattn_ref, battn_ref, g_ref) = refs[i:i + 7]
        val_ref, off_ref, attn_ref = refs[i + 7:i + 10]

        x = src_ref[...]
        x_bf = x.astype(jnp.bfloat16)

        # value projection (+ fused padding-mask multiply)
        v = jnp.dot(x_bf, wv_ref[...],
                    preferred_element_type=jnp.float32) + bv_ref[...]
        if keep_ref is not None:
            v = v * keep_ref[...]
        val_ref[...] = v.astype(val_ref.dtype)

        # query = src + pos (positional add fused, src read shared with value)
        q = x if pos_ref is None else (x + pos_ref[...])
        q_bf = q.astype(jnp.bfloat16)

        # sampling offsets
        off = jnp.dot(q_bf, woff_ref[...],
                      preferred_element_type=jnp.float32) + boff_ref[...]
        off_ref[...] = off.astype(off_ref.dtype)

        # attention logits + fused per-head softmax (groups of size L*P).
        a = jnp.dot(q_bf, wattn_ref[...],
                    preferred_element_type=jnp.float32) + battn_ref[...]
        # Global row max is a per-row constant -> grouped softmax unchanged.
        m = jnp.max(a, axis=-1, keepdims=True)
        e = jnp.exp(a - m)
        # Block-diagonal group matrix gives per-group sums as one small matmul
        # (keeps the lane layout dense; exact f32 accumulation on the MXU).
        denom = jnp.dot(e, g_ref[...], preferred_element_type=jnp.float32)
        attn_ref[...] = (e / denom).astype(attn_ref.dtype)

    return kernel


def fused_input_projections(src, pos, keep, w_value, b_value, w_off, b_off,
                            w_attn, b_attn, group_size, row_tile=_ROW_TILE):
    N, D = src.shape
    OFF = w_off.shape[1]
    A = w_attn.shape[1]
    rt = min(row_tile, _round_up(N, 8))
    sp = _pad_rows(src, rt)
    Np = sp.shape[0]

    gi = jnp.arange(A) // group_size
    gmat = (gi[:, None] == gi[None, :]).astype(jnp.float32)   # (A, A) block-diag

    args = [sp]
    in_specs = [pl.BlockSpec((rt, D), lambda i: (i, 0))]
    if pos is not None:
        args.append(_pad_rows(pos, rt))
        in_specs.append(pl.BlockSpec((rt, D), lambda i: (i, 0)))
    if keep is not None:
        args.append(_pad_rows(keep.reshape(N, 1).astype(jnp.float32), rt))
        in_specs.append(pl.BlockSpec((rt, 1), lambda i: (i, 0)))
    args += [w_value.astype(jnp.bfloat16), b_value.reshape(1, D).astype(jnp.float32),
             w_off.astype(jnp.bfloat16), b_off.reshape(1, OFF).astype(jnp.float32),
             w_attn.astype(jnp.bfloat16), b_attn.reshape(1, A).astype(jnp.float32),
             gmat]
    in_specs += [pl.BlockSpec((D, D), lambda i: (0, 0)),
                 pl.BlockSpec((1, D), lambda i: (0, 0)),
                 pl.BlockSpec((D, OFF), lambda i: (0, 0)),
                 pl.BlockSpec((1, OFF), lambda i: (0, 0)),
                 pl.BlockSpec((D, A), lambda i: (0, 0)),
                 pl.BlockSpec((1, A), lambda i: (0, 0)),
                 pl.BlockSpec((A, A), lambda i: (0, 0))]

    val, off, attn = pl.pallas_call(
        _make_fused_proj_kernel(pos is not None, keep is not None),
        out_shape=(jax.ShapeDtypeStruct((Np, D), jnp.float32),
                   jax.ShapeDtypeStruct((Np, OFF), jnp.float32),
                   jax.ShapeDtypeStruct((Np, A), jnp.float32)),
        grid=(Np // rt,),
        in_specs=in_specs,
        out_specs=(pl.BlockSpec((rt, D), lambda i: (i, 0)),
                   pl.BlockSpec((rt, OFF), lambda i: (i, 0)),
                   pl.BlockSpec((rt, A), lambda i: (i, 0))),
        compiler_params=_PARALLEL,
    )(*args)
    return val[:N], off[:N], attn[:N]


# ---------------------------------------------------------------------------
# Kernel 2: output projection + residual + LayerNorm1
# ---------------------------------------------------------------------------
def _proj_res_ln_kernel(x_ref, res_ref, w_ref, b_ref, g_ref, bb_ref, o_ref, *, eps):
    x = x_ref[...].astype(jnp.bfloat16)
    y = jnp.dot(x, w_ref[...], preferred_element_type=jnp.float32) + b_ref[...]
    y = y + res_ref[...]
    mean = jnp.mean(y, axis=-1, keepdims=True)
    var = jnp.mean((y - mean) ** 2, axis=-1, keepdims=True)
    yn = (y - mean) * jax.lax.rsqrt(var + eps)
    o_ref[...] = (yn * g_ref[...] + bb_ref[...]).astype(o_ref.dtype)


def proj_residual_layernorm(x, residual, w, b, gamma, beta, eps=1e-5,
                            row_tile=_ROW_TILE):
    """LayerNorm(residual + (x @ w + b)) — one HBM pass."""
    N, K = x.shape
    M = w.shape[1]
    rt = min(row_tile, _round_up(N, 8))
    xp = _pad_rows(x, rt)
    rp = _pad_rows(residual, rt)
    Np = xp.shape[0]
    out = pl.pallas_call(
        functools.partial(_proj_res_ln_kernel, eps=eps),
        out_shape=jax.ShapeDtypeStruct((Np, M), jnp.float32),
        grid=(Np // rt,),
        in_specs=[pl.BlockSpec((rt, K), lambda i: (i, 0)),
                  pl.BlockSpec((rt, M), lambda i: (i, 0)),
                  pl.BlockSpec((K, M), lambda i: (0, 0)),
                  pl.BlockSpec((1, M), lambda i: (0, 0)),
                  pl.BlockSpec((1, M), lambda i: (0, 0)),
                  pl.BlockSpec((1, M), lambda i: (0, 0))],
        out_specs=pl.BlockSpec((rt, M), lambda i: (i, 0)),
        compiler_params=_PARALLEL,
    )(xp, rp, w.astype(jnp.bfloat16), b.reshape(1, M).astype(jnp.float32),
      gamma.reshape(1, M).astype(jnp.float32),
      beta.reshape(1, M).astype(jnp.float32))
    return out[:N]


# ---------------------------------------------------------------------------
# Kernel 3: FFN + residual + LayerNorm2
# ---------------------------------------------------------------------------
def _ffn_res_ln_kernel(x_ref, w1_ref, b1_ref, w2_ref, b2_ref, g_ref, bb_ref,
                       o_ref, *, eps):
    x = x_ref[...]
    h = jnp.dot(x.astype(jnp.bfloat16), w1_ref[...],
                preferred_element_type=jnp.float32) + b1_ref[...]
    h = jnp.maximum(h, 0.0)
    y = jnp.dot(h.astype(jnp.bfloat16), w2_ref[...],
                preferred_element_type=jnp.float32) + b2_ref[...]
    y = y + x
    mean = jnp.mean(y, axis=-1, keepdims=True)
    var = jnp.mean((y - mean) ** 2, axis=-1, keepdims=True)
    yn = (y - mean) * jax.lax.rsqrt(var + eps)
    o_ref[...] = (yn * g_ref[...] + bb_ref[...]).astype(o_ref.dtype)


def ffn_residual_layernorm(x, w1, b1, w2, b2, gamma, beta, eps=1e-5,
                           row_tile=_ROW_TILE):
    """LayerNorm(x + relu(x @ w1 + b1) @ w2 + b2) fused into one kernel."""
    N, D = x.shape
    F = w1.shape[1]
    rt = min(row_tile, _round_up(N, 8))
    xp = _pad_rows(x, rt)
    Np = xp.shape[0]
    out = pl.pallas_call(
        functools.partial(_ffn_res_ln_kernel, eps=eps),
        out_shape=jax.ShapeDtypeStruct((Np, D), jnp.float32),
        grid=(Np // rt,),
        in_specs=[pl.BlockSpec((rt, D), lambda i: (i, 0)),
                  pl.BlockSpec((D, F), lambda i: (0, 0)),
                  pl.BlockSpec((1, F), lambda i: (0, 0)),
                  pl.BlockSpec((F, D), lambda i: (0, 0)),
                  pl.BlockSpec((1, D), lambda i: (0, 0)),
                  pl.BlockSpec((1, D), lambda i: (0, 0)),
                  pl.BlockSpec((1, D), lambda i: (0, 0))],
        out_specs=pl.BlockSpec((rt, D), lambda i: (i, 0)),
        compiler_params=_PARALLEL,
    )(xp, w1.astype(jnp.bfloat16), b1.reshape(1, F).astype(jnp.float32),
      w2.astype(jnp.bfloat16), b2.reshape(1, D).astype(jnp.float32),
      gamma.reshape(1, D).astype(jnp.float32),
      beta.reshape(1, D).astype(jnp.float32))
    return out[:N]


# ---------------------------------------------------------------------------
# MS-deformable attention (projections + softmax in Pallas, bilinear gather
# in plain JAX)
# ---------------------------------------------------------------------------
def _grid_sample_bilinear(img, gx, gy):
    """img: (H, W, C); gx/gy: normalized coords in [-1, 1].
    Matches torch grid_sample(mode='bilinear', padding='zeros',
    align_corners=False)."""
    H, W, C = img.shape
    x = (gx + 1.0) * (W / 2.0) - 0.5
    y = (gy + 1.0) * (H / 2.0) - 0.5
    x0 = jnp.floor(x)
    y0 = jnp.floor(y)
    x1 = x0 + 1.0
    y1 = y0 + 1.0
    wx1 = x - x0
    wx0 = 1.0 - wx1
    wy1 = y - y0
    wy0 = 1.0 - wy1
    flat = img.reshape(H * W, C)

    def gather(xi, yi):
        valid = ((xi >= 0) & (xi <= W - 1) & (yi >= 0) & (yi <= H - 1)).astype(img.dtype)
        xc = jnp.clip(xi, 0, W - 1).astype(jnp.int32)
        yc = jnp.clip(yi, 0, H - 1).astype(jnp.int32)
        v = jnp.take(flat, yc * W + xc, axis=0)
        return v * valid[..., None]

    return (gather(x0, y0) * (wx0 * wy0)[..., None]
            + gather(x1, y0) * (wx1 * wy0)[..., None]
            + gather(x0, y1) * (wx0 * wy1)[..., None]
            + gather(x1, y1) * (wx1 * wy1)[..., None])


def ms_deform_attn_core(p, src, pos, reference_points, spatial_shapes,
                        level_start_index, padding_mask, num_heads, num_points):
    """Returns the per-query context BEFORE output_proj (so output_proj can be
    fused with residual + norm1)."""
    B, S, D = src.shape
    L = len(spatial_shapes)
    H = num_heads
    P = num_points
    Dh = D // H
    N = B * S

    keep = None
    if padding_mask is not None:
        keep = jnp.logical_not(padding_mask).astype(jnp.float32).reshape(N, 1)

    # One fused kernel: value proj (+mask), (src+pos), sampling-offset proj,
    # attention-weight proj + per-head softmax.
    value, offsets, attn = fused_input_projections(
        src.reshape(N, D),
        None if pos is None else pos.reshape(N, D),
        keep,
        p["w_value"], p["b_value"],
        p["w_off"], p["b_off"],
        p["w_attn"], p["b_attn"],
        group_size=L * P)

    value = value.reshape(B, S, H, Dh)
    offsets = offsets.reshape(B, S, H, L, P, 2)
    attn = attn.reshape(B, S, H, L, P)

    if reference_points.shape[-1] == 2:
        normalizer = jnp.array([[w, h] for (h, w) in spatial_shapes],
                               dtype=jnp.float32)                    # (L, 2) (x, y)
        loc = (reference_points[:, :, None, :, None, :]
               + offsets / normalizer[None, None, None, :, None, :])
    else:  # (cx, cy, w, h) reference points
        loc = (reference_points[:, :, None, :, None, :2]
               + offsets / P * reference_points[:, :, None, :, None, 2:] * 0.5)

    # TODO(synk): data-dependent bilinear gather stays in plain JAX (XLA gather);
    # a PrefetchScalarGridSpec Pallas gather is the remaining hot path at
    # production sizes.
    sampled_levels = []
    for lvl, (h_l, w_l) in enumerate(spatial_shapes):
        start = int(level_start_index[lvl])
        val_l = value[:, start:start + h_l * w_l]                     # (B, hw, H, Dh)
        val_l = val_l.transpose(0, 2, 1, 3).reshape(B * H, h_l, w_l, Dh)
        grid_l = 2.0 * loc[:, :, :, lvl] - 1.0                        # (B, S, H, P, 2)
        grid_l = grid_l.transpose(0, 2, 1, 3, 4).reshape(B * H, S, P, 2)
        samp_l = jax.vmap(_grid_sample_bilinear)(val_l, grid_l[..., 0], grid_l[..., 1])
        sampled_levels.append(samp_l.reshape(B, H, S, P, Dh))
    sampled = jnp.stack(sampled_levels, axis=3)                       # (B, H, S, L, P, Dh)

    w_lvl = attn.transpose(0, 2, 1, 3, 4)                             # (B, H, S, L, P)
    out = jnp.sum(sampled * w_lvl[..., None], axis=(3, 4))            # (B, H, S, Dh)
    return out.transpose(0, 2, 1, 3).reshape(B, S, D)


# ---------------------------------------------------------------------------
# Encoder layer forward (mirrors the PyTorch module, dropout = identity/eval)
# ---------------------------------------------------------------------------
def encoder_layer_forward(p, src, pos, reference_points, spatial_shapes,
                          level_start_index, padding_mask=None,
                          num_heads=8, num_points=4):
    B, S, D = src.shape
    N = B * S

    # --- MS-deformable self-attention ---
    ctx = ms_deform_attn_core(p["self_attn"], src, pos, reference_points,
                              spatial_shapes, level_start_index, padding_mask,
                              num_heads, num_points)
    # output_proj + residual + norm1 (fused)
    src1 = proj_residual_layernorm(
        ctx.reshape(N, D), src.reshape(N, D),
        p["self_attn"]["w_out"], p["self_attn"]["b_out"],
        p["norm1_g"], p["norm1_b"]).reshape(B, S, D)

    # --- FFN + residual + norm2 (fused) ---
    out = ffn_residual_layernorm(
        src1.reshape(N, D), p["w1"], p["b1"], p["w2"], p["b2"],
        p["norm2_g"], p["norm2_b"]).reshape(B, S, D)
    return out


# ---------------------------------------------------------------------------
# Deterministic parameter init (synthetic weights; shapes follow the module)
# ---------------------------------------------------------------------------
def init_params(key, d_model, n_heads, n_levels, n_points, d_ffn):
    def dense(k, shape, scale=0.05):
        return scale * jax.random.normal(k, shape, dtype=jnp.float32)

    ks = jax.random.split(key, 8)
    hlp = n_heads * n_levels * n_points
    return {
        "self_attn": {
            "w_value": dense(ks[0], (d_model, d_model)),
            "b_value": jnp.zeros((d_model,), jnp.float32),
            "w_off": dense(ks[1], (d_model, hlp * 2)),
            "b_off": 0.1 * jax.random.normal(ks[2], (hlp * 2,), dtype=jnp.float32),
            "w_attn": dense(ks[3], (d_model, hlp)),
            "b_attn": jnp.zeros((hlp,), jnp.float32),
            "w_out": dense(ks[4], (d_model, d_model)),
            "b_out": jnp.zeros((d_model,), jnp.float32),
        },
        "norm1_g": jnp.ones((d_model,), jnp.float32),
        "norm1_b": jnp.zeros((d_model,), jnp.float32),
        "w1": dense(ks[5], (d_model, d_ffn)),
        "b1": jnp.zeros((d_ffn,), jnp.float32),
        "w2": dense(ks[6], (d_ffn, d_model)),
        "b2": jnp.zeros((d_model,), jnp.float32),
        "norm2_g": jnp.ones((d_model,), jnp.float32),
        "norm2_b": jnp.zeros((d_model,), jnp.float32),
    }


if __name__ == "__main__":
    key = jax.random.PRNGKey(0)
    B = 2
    d_model, d_ffn = 128, 256            # lane-dense (multiples of 128)
    n_heads, n_levels, n_points = 4, 2, 2
    spatial_shapes = ((8, 8), (4, 4))    # static (h, w) per level
    level_start_index = (0, 64)
    S = sum(h * w for h, w in spatial_shapes)   # 80

    keys = jax.random.split(key, 5)
    src = jax.random.normal(keys[0], (B, S, d_model), dtype=jnp.float32)
    pos = jax.random.normal(keys[1], (B, S, d_model), dtype=jnp.float32)
    reference_points = jax.random.uniform(keys[2], (B, S, n_levels, 2),
                                          dtype=jnp.float32)
    params = init_params(keys[3], d_model, n_heads, n_levels, n_points, d_ffn)

    fwd = jax.jit(functools.partial(
        encoder_layer_forward,
        spatial_shapes=spatial_shapes,
        level_start_index=level_start_index,
        padding_mask=None,
        num_heads=n_heads, num_points=n_points))

    out = fwd(params, src, pos, reference_points)
    out = jax.block_until_ready(out)
    assert out.shape == (B, S, d_model), out.shape
    assert bool(jnp.all(jnp.isfinite(out)))
    print("KERNEL_OK")
</pallas_src>

<mosaic_0001>
module attributes {stable_mosaic.version = 11 : i64} {
  func.func @kernel(%arg0: i32, %arg1: memref<160x128xf32, #tpu.memory_space<vmem>>, %arg2: memref<160x128xf32, #tpu.memory_space<vmem>>, %arg3: memref<128x128xbf16, #tpu.memory_space<vmem>>, %arg4: memref<1x128xf32, #tpu.memory_space<vmem>>, %arg5: memref<128x32xbf16, #tpu.memory_space<vmem>>, %arg6: memref<1x32xf32, #tpu.memory_space<vmem>>, %arg7: memref<128x16xbf16, #tpu.memory_space<vmem>>, %arg8: memref<1x16xf32, #tpu.memory_space<vmem>>, %arg9: memref<16x16xf32, #tpu.memory_space<vmem>>, %arg10: memref<160x128xf32, #tpu.memory_space<vmem>>, %arg11: memref<160x32xf32, #tpu.memory_space<vmem>>, %arg12: memref<160x16xf32, #tpu.memory_space<vmem>>) attributes {dimension_semantics = [#tpu.dimension_semantics<parallel>], iteration_bounds = array<i64: 1>, scalar_prefetch = 0 : i64, scratch_operands = 0 : i64, tpu.core_type = #tpu.core_type<tc>, window_params = [{transform_indices = @transform_0, window_bounds = array<i64: 160, 128>}, {transform_indices = @transform_1, window_bounds = array<i64: 160, 128>}, {pipeline_mode = #tpu.pipeline_mode<synchronous>, transform_indices = @transform_2, window_bounds = array<i64: 128, 128>}, {pipeline_mode = #tpu.pipeline_mode<synchronous>, transform_indices = @transform_3, window_bounds = array<i64: 1, 128>}, {pipeline_mode = #tpu.pipeline_mode<synchronous>, transform_indices = @transform_4, window_bounds = array<i64: 128, 32>}, {pipeline_mode = #tpu.pipeline_mode<synchronous>, transform_indices = @transform_5, window_bounds = array<i64: 1, 32>}, {pipeline_mode = #tpu.pipeline_mode<synchronous>, transform_indices = @transform_6, window_bounds = array<i64: 128, 16>}, {pipeline_mode = #tpu.pipeline_mode<synchronous>, transform_indices = @transform_7, window_bounds = array<i64: 1, 16>}, {pipeline_mode = #tpu.pipeline_mode<synchronous>, transform_indices = @transform_8, window_bounds = array<i64: 16, 16>}, {transform_indices = @transform_9, window_bounds = array<i64: 160, 128>}, {transform_indices = @transform_10, window_bounds = array<i64: 160, 32>}, {transform_indices = @transform_11, window_bounds = array<i64: 160, 16>}]} {
    %c0 = arith.constant 0 : index
    %c0_0 = arith.constant 0 : index
    %0 = vector.load %arg1[%c0, %c0_0] : memref<160x128xf32, #tpu.memory_space<vmem>>, vector<160x128xf32>
    %1 = arith.truncf %0 : vector<160x128xf32> to vector<160x128xbf16>
    %c0_1 = arith.constant 0 : index
    %c0_2 = arith.constant 0 : index
    %2 = vector.load %arg3[%c0_1, %c0_2] : memref<128x128xbf16, #tpu.memory_space<vmem>>, vector<128x128xbf16>
    %cst = arith.constant dense<0.000000e+00> : vector<160x128xf32>
    %3 = tpu.matmul %1, %2, %cst {dimension_numbers = #tpu.dot_dimension_numbers<[1], [0], [0], [1], [0, 0, 1, 1], [], []>} : vector<160x128xbf16>, vector<128x128xbf16>, vector<160x128xf32> -> vector<160x128xf32>
    %c0_3 = arith.constant 0 : index
    %c0_4 = arith.constant 0 : index
    %4 = vector.load %arg4[%c0_3, %c0_4] : memref<1x128xf32, #tpu.memory_space<vmem>>, vector<1x128xf32>
    %5 = vector.broadcast %4 : vector<1x128xf32> to vector<160x128xf32>
    %6 = arith.addf %3, %5 : vector<160x128xf32>
    %c0_5 = arith.constant 0 : index
    %c0_6 = arith.constant 0 : index
    %7 = vector.load %arg10[%c0_5, %c0_6] : memref<160x128xf32, #tpu.memory_space<vmem>>, vector<160x128xf32>
    tpu.vector_store %arg10[%c0_5, %c0_6], %6 {strides = array<i32>} : memref<160x128xf32, #tpu.memory_space<vmem>>, vector<160x128xf32>,
    %c0_7 = arith.constant 0 : index
    %c0_8 = arith.constant 0 : index
    %8 = vector.load %arg2[%c0_7, %c0_8] : memref<160x128xf32, #tpu.memory_space<vmem>>, vector<160x128xf32>
    %9 = arith.addf %0, %8 : vector<160x128xf32>
    %10 = arith.truncf %9 : vector<160x128xf32> to vector<160x128xbf16>
    %c0_9 = arith.constant 0 : index
    %c0_10 = arith.constant 0 : index
    %11 = vector.load %arg5[%c0_9, %c0_10] : memref<128x32xbf16, #tpu.memory_space<vmem>>, vector<128x32xbf16>
    %cst_11 = arith.constant dense<0.000000e+00> : vector<160x32xf32>
    %12 = tpu.matmul %10, %11, %cst_11 {dimension_numbers = #tpu.dot_dimension_numbers<[1], [0], [0], [1], [0, 0, 1, 1], [], []>} : vector<160x128xbf16>, vector<128x32xbf16>, vector<160x32xf32> -> vector<160x32xf32>
    %c0_12 = arith.constant 0 : index
    %c0_13 = arith.constant 0 : index
    %13 = vector.load %arg6[%c0_12, %c0_13] : memref<1x32xf32, #tpu.memory_space<vmem>>, vector<1x32xf32>
    %14 = vector.broadcast %13 : vector<1x32xf32> to vector<160x32xf32>
    %15 = arith.addf %12, %14 : vector<160x32xf32>
    %c0_14 = arith.constant 0 : index
    %c0_15 = arith.constant 0 : index
    %16 = vector.load %arg11[%c0_14, %c0_15] : memref<160x32xf32, #tpu.memory_space<vmem>>, vector<160x32xf32>
    tpu.vector_store %arg11[%c0_14, %c0_15], %15 {strides = array<i32>} : memref<160x32xf32, #tpu.memory_space<vmem>>, vector<160x32xf32>,
    %c0_16 = arith.constant 0 : index
    %c0_17 = arith.constant 0 : index
    %17 = vector.load %arg7[%c0_16, %c0_17] : memref<128x16xbf16, #tpu.memory_space<vmem>>, vector<128x16xbf16>
    %cst_18 = arith.constant dense<0.000000e+00> : vector<160x16xf32>
    %18 = tpu.matmul %10, %17, %cst_18 {dimension_numbers = #tpu.dot_dimension_numbers<[1], [0], [0], [1], [0, 0, 1, 1], [], []>} : vector<160x128xbf16>, vector<128x16xbf16>, vector<160x16xf32> -> vector<160x16xf32>
    %c0_19 = arith.constant 0 : index
    %c0_20 = arith.constant 0 : index
    %19 = vector.load %arg8[%c0_19, %c0_20] : memref<1x16xf32, #tpu.memory_space<vmem>>, vector<1x16xf32>
    %20 = vector.broadcast %19 : vector<1x16xf32> to vector<160x16xf32>
    %21 = arith.addf %18, %20 : vector<160x16xf32>
    %cst_21 = arith.constant dense<0xFF800000> : vector<160xf32>
    %22 = vector.multi_reduction <maximumf>, %21, %cst_21 [1] : vector<160x16xf32> to vector<160xf32>
    %23 = vector.shape_cast %22 : vector<160xf32> to vector<160x1xf32>
    %24 = vector.broadcast %23 : vector<160x1xf32> to vector<160x16xf32>
    %25 = arith.subf %21, %24 : vector<160x16xf32>
    %26 = math.exp %25 : vector<160x16xf32>
    %c0_22 = arith.constant 0 : index
    %c0_23 = arith.constant 0 : index
    %27 = vector.load %arg9[%c0_22, %c0_23] : memref<16x16xf32, #tpu.memory_space<vmem>>, vector<16x16xf32>
    %cst_24 = arith.constant dense<0.000000e+00> : vector<160x16xf32>
    %28 = tpu.matmul %26, %27, %cst_24 {dimension_numbers = #tpu.dot_dimension_numbers<[1], [0], [0], [1], [0, 0, 1, 1], [], []>} : vector<160x16xf32>, vector<16x16xf32>, vector<160x16xf32> -> vector<160x16xf32>
    %29 = arith.divf %26, %28 : vector<160x16xf32>
    %c0_25 = arith.constant 0 : index
    %c0_26 = arith.constant 0 : index
    %30 = vector.load %arg12[%c0_25, %c0_26] : memref<160x16xf32, #tpu.memory_space<vmem>>, vector<160x16xf32>
    tpu.vector_store %arg12[%c0_25, %c0_26], %29 {strides = array<i32>} : memref<160x16xf32, #tpu.memory_space<vmem>>, vector<160x16xf32>,
    return
  }
  func.func @transform_0(%arg0: i32) -> (i32, i32) {
    %c0_i32 = arith.constant 0 : i32
    %c0_i32_0 = arith.constant 0 : i32
    return %arg0, %c0_i32 : i32, i32
  }
  func.func @transform_1(%arg0: i32) -> (i32, i32) {
    %c0_i32 = arith.constant 0 : i32
    %c0_i32_0 = arith.constant 0 : i32
    return %arg0, %c0_i32 : i32, i32
  }
  func.func @transform_2(%arg0: i32) -> (i32, i32) {
    %c0_i32 = arith.constant 0 : i32
    %c0_i32_0 = arith.constant 0 : i32
    %c0_i32_1 = arith.constant 0 : i32
    return %c0_i32, %c0_i32_0 : i32, i32
  }
  func.func @transform_3(%arg0: i32) -> (i32, i32) {
    %c0_i32 = arith.constant 0 : i32
    %c0_i32_0 = arith.constant 0 : i32
    %c0_i32_1 = arith.constant 0 : i32
    return %c0_i32, %c0_i32_0 : i32, i32
  }
  func.func @transform_4(%arg0: i32) -> (i32, i32) {
    %c0_i32 = arith.constant 0 : i32
    %c0_i32_0 = arith.constant 0 : i32
    %c0_i32_1 = arith.constant 0 : i32
    return %c0_i32, %c0_i32_0 : i32, i32
  }
  func.func @transform_5(%arg0: i32) -> (i32, i32) {
    %c0_i32 = arith.constant 0 : i32
    %c0_i32_0 = arith.constant 0 : i32
    %c0_i32_1 = arith.constant 0 : i32
    return %c0_i32, %c0_i32_0 : i32, i32
  }
  func.func @transform_6(%arg0: i32) -> (i32, i32) {
    %c0_i32 = arith.constant 0 : i32
    %c0_i32_0 = arith.constant 0 : i32
    %c0_i32_1 = arith.constant 0 : i32
    return %c0_i32, %c0_i32_0 : i32, i32
  }
  func.func @transform_7(%arg0: i32) -> (i32, i32) {
    %c0_i32 = arith.constant 0 : i32
    %c0_i32_0 = arith.constant 0 : i32
    %c0_i32_1 = arith.constant 0 : i32
    return %c0_i32, %c0_i32_0 : i32, i32
  }
  func.func @transform_8(%arg0: i32) -> (i32, i32) {
    %c0_i32 = arith.constant 0 : i32
    %c0_i32_0 = arith.constant 0 : i32
    %c0_i32_1 = arith.constant 0 : i32
    return %c0_i32, %c0_i32_0 : i32, i32
  }
  func.func @transform_9(%arg0: i32) -> (i32, i32) {
    %c0_i32 = arith.constant 0 : i32
    %c0_i32_0 = arith.constant 0 : i32
    return %arg0, %c0_i32 : i32, i32
  }
  func.func @transform_10(%arg0: i32) -> (i32, i32) {
    %c0_i32 = arith.constant 0 : i32
    %c0_i32_0 = arith.constant 0 : i32
    return %arg0, %c0_i32 : i32, i32
  }
  func.func @transform_11(%arg0: i32) -> (i32, i32) {
    %c0_i32 = arith.constant 0 : i32
    %c0_i32_0 = arith.constant 0 : i32
    return %arg0, %c0_i32 : i32, i32
  }
}

module attributes {stable_mosaic.version = 11 : i64} {
  func.func @_proj_res_ln_kernel(%arg0: i32, %arg1: memref<160x128xf32, #tpu.memory_space<vmem>>, %arg2: memref<160x128xf32, #tpu.memory_space<vmem>>, %arg3: memref<128x128xbf16, #tpu.memory_space<vmem>>, %arg4: memref<1x128xf32, #tpu.memory_space<vmem>>, %arg5: memref<1x128xf32, #tpu.memory_space<vmem>>, %arg6: memref<1x128xf32, #tpu.memory_space<vmem>>, %arg7: memref<160x128xf32, #tpu.memory_space<vmem>>) attributes {dimension_semantics = [#tpu.dimension_semantics<parallel>], iteration_bounds = array<i64: 1>, scalar_prefetch = 0 : i64, scratch_operands = 0 : i64, tpu.core_type = #tpu.core_type<tc>, window_params = [{transform_indices = @transform_0, window_bounds = array<i64: 160, 128>}, {transform_indices = @transform_1, window_bounds = array<i64: 160, 128>}, {pipeline_mode = #tpu.pipeline_mode<synchronous>, transform_indices = @transform_2, window_bounds = array<i64: 128, 128>}, {pipeline_mode = #tpu.pipeline_mode<synchronous>, transform_indices = @transform_3, window_bounds = array<i64: 1, 128>}, {pipeline_mode = #tpu.pipeline_mode<synchronous>, transform_indices = @transform_4, window_bounds = array<i64: 1, 128>}, {pipeline_mode = #tpu.pipeline_mode<synchronous>, transform_indices = @transform_5, window_bounds = array<i64: 1, 128>}, {transform_indices = @transform_6, window_bounds = array<i64: 160, 128>}]} {
    %c0 = arith.constant 0 : index
    %c0_0 = arith.constant 0 : index
    %0 = vector.load %arg1[%c0, %c0_0] : memref<160x128xf32, #tpu.memory_space<vmem>>, vector<160x128xf32>
    %1 = arith.truncf %0 : vector<160x128xf32> to vector<160x128xbf16>
    %c0_1 = arith.constant 0 : index
    %c0_2 = arith.constant 0 : index
    %2 = vector.load %arg3[%c0_1, %c0_2] : memref<128x128xbf16, #tpu.memory_space<vmem>>, vector<128x128xbf16>
    %cst = arith.constant dense<0.000000e+00> : vector<160x128xf32>
    %3 = tpu.matmul %1, %2, %cst {dimension_numbers = #tpu.dot_dimension_numbers<[1], [0], [0], [1], [0, 0, 1, 1], [], []>} : vector<160x128xbf16>, vector<128x128xbf16>, vector<160x128xf32> -> vector<160x128xf32>
    %c0_3 = arith.constant 0 : index
    %c0_4 = arith.constant 0 : index
    %4 = vector.load %arg4[%c0_3, %c0_4] : memref<1x128xf32, #tpu.memory_space<vmem>>, vector<1x128xf32>
    %5 = vector.broadcast %4 : vector<1x128xf32> to vector<160x128xf32>
    %6 = arith.addf %3, %5 : vector<160x128xf32>
    %c0_5 = arith.constant 0 : index
    %c0_6 = arith.constant 0 : index
    %7 = vector.load %arg2[%c0_5, %c0_6] : memref<160x128xf32, #tpu.memory_space<vmem>>, vector<160x128xf32>
    %8 = arith.addf %6, %7 : vector<160x128xf32>
    %cst_7 = arith.constant dense<0.000000e+00> : vector<160xf32>
    %9 = vector.multi_reduction <add>, %8, %cst_7 [1] : vector<160x128xf32> to vector<160xf32>
    %10 = vector.shape_cast %9 : vector<160xf32> to vector<160x1xf32>
    %cst_8 = arith.constant 1.280000e+02 : f32
    %11 = vector.broadcast %cst_8 : f32 to vector<160x1xf32>
    %12 = arith.divf %10, %11 : vector<160x1xf32>
    %13 = vector.broadcast %12 : vector<160x1xf32> to vector<160x128xf32>
    %14 = arith.subf %8, %13 : vector<160x128xf32>
    %15 = arith.mulf %14, %14 : vector<160x128xf32>
    %cst_9 = arith.constant dense<0.000000e+00> : vector<160xf32>
    %16 = vector.multi_reduction <add>, %15, %cst_9 [1] : vector<160x128xf32> to vector<160xf32>
    %17 = vector.shape_cast %16 : vector<160xf32> to vector<160x1xf32>
    %cst_10 = arith.constant 1.280000e+02 : f32
    %18 = vector.broadcast %cst_10 : f32 to vector<160x1xf32>
    %19 = arith.divf %17, %18 : vector<160x1xf32>
    %20 = vector.broadcast %12 : vector<160x1xf32> to vector<160x128xf32>
    %21 = arith.subf %8, %20 : vector<160x128xf32>
    %cst_11 = arith.constant 9.99999974E-6 : f32
    %22 = vector.broadcast %cst_11 : f32 to vector<160x1xf32>
    %23 = arith.addf %19, %22 : vector<160x1xf32>
    %24 = math.rsqrt %23 : vector<160x1xf32>
    %25 = vector.broadcast %24 : vector<160x1xf32> to vector<160x128xf32>
    %26 = arith.mulf %21, %25 : vector<160x128xf32>
    %c0_12 = arith.constant 0 : index
    %c0_13 = arith.constant 0 : index
    %27 = vector.load %arg5[%c0_12, %c0_13] : memref<1x128xf32, #tpu.memory_space<vmem>>, vector<1x128xf32>
    %28 = vector.broadcast %27 : vector<1x128xf32> to vector<160x128xf32>
    %29 = arith.mulf %26, %28 : vector<160x128xf32>
    %c0_14 = arith.constant 0 : index
    %c0_15 = arith.constant 0 : index
    %30 = vector.load %arg6[%c0_14, %c0_15] : memref<1x128xf32, #tpu.memory_space<vmem>>, vector<1x128xf32>
    %31 = vector.broadcast %30 : vector<1x128xf32> to vector<160x128xf32>
    %32 = arith.addf %29, %31 : vector<160x128xf32>
    %c0_16 = arith.constant 0 : index
    %c0_17 = arith.constant 0 : index
    %33 = vector.load %arg7[%c0_16, %c0_17] : memref<160x128xf32, #tpu.memory_space<vmem>>, vector<160x128xf32>
    tpu.vector_store %arg7[%c0_16, %c0_17], %32 {strides = array<i32>} : memref<160x128xf32, #tpu.memory_space<vmem>>, vector<160x128xf32>,
    return
  }
  func.func @transform_0(%arg0: i32) -> (i32, i32) {
    %c0_i32 = arith.constant 0 : i32
    %c0_i32_0 = arith.constant 0 : i32
    return %arg0, %c0_i32 : i32, i32
  }
  func.func @transform_1(%arg0: i32) -> (i32, i32) {
    %c0_i32 = arith.constant 0 : i32
    %c0_i32_0 = arith.constant 0 : i32
    return %arg0, %c0_i32 : i32, i32
  }
  func.func @transform_2(%arg0: i32) -> (i32, i32) {
    %c0_i32 = arith.constant 0 : i32
    %c0_i32_0 = arith.constant 0 : i32
    %c0_i32_1 = arith.constant 0 : i32
    return %c0_i32, %c0_i32_0 : i32, i32
  }
  func.func @transform_3(%arg0: i32) -> (i32, i32) {
    %c0_i32 = arith.constant 0 : i32
    %c0_i32_0 = arith.constant 0 : i32
    %c0_i32_1 = arith.constant 0 : i32
    return %c0_i32, %c0_i32_0 : i32, i32
  }
  func.func @transform_4(%arg0: i32) -> (i32, i32) {
    %c0_i32 = arith.constant 0 : i32
    %c0_i32_0 = arith.constant 0 : i32
    %c0_i32_1 = arith.constant 0 : i32
    return %c0_i32, %c0_i32_0 : i32, i32
  }
  func.func @transform_5(%arg0: i32) -> (i32, i32) {
    %c0_i32 = arith.constant 0 : i32
    %c0_i32_0 = arith.constant 0 : i32
    %c0_i32_1 = arith.constant 0 : i32
    return %c0_i32, %c0_i32_0 : i32, i32
  }
  func.func @transform_6(%arg0: i32) -> (i32, i32) {
    %c0_i32 = arith.constant 0 : i32
    %c0_i32_0 = arith.constant 0 : i32
    return %arg0, %c0_i32 : i32, i32
  }
}

module attributes {stable_mosaic.version = 11 : i64} {
  func.func @_ffn_res_ln_kernel(%arg0: i32, %arg1: memref<160x128xf32, #tpu.memory_space<vmem>>, %arg2: memref<128x256xbf16, #tpu.memory_space<vmem>>, %arg3: memref<1x256xf32, #tpu.memory_space<vmem>>, %arg4: memref<256x128xbf16, #tpu.memory_space<vmem>>, %arg5: memref<1x128xf32, #tpu.memory_space<vmem>>, %arg6: memref<1x128xf32, #tpu.memory_space<vmem>>, %arg7: memref<1x128xf32, #tpu.memory_space<vmem>>, %arg8: memref<160x128xf32, #tpu.memory_space<vmem>>) attributes {dimension_semantics = [#tpu.dimension_semantics<parallel>], iteration_bounds = array<i64: 1>, scalar_prefetch = 0 : i64, scratch_operands = 0 : i64, tpu.core_type = #tpu.core_type<tc>, window_params = [{transform_indices = @transform_0, window_bounds = array<i64: 160, 128>}, {pipeline_mode = #tpu.pipeline_mode<synchronous>, transform_indices = @transform_1, window_bounds = array<i64: 128, 256>}, {pipeline_mode = #tpu.pipeline_mode<synchronous>, transform_indices = @transform_2, window_bounds = array<i64: 1, 256>}, {pipeline_mode = #tpu.pipeline_mode<synchronous>, transform_indices = @transform_3, window_bounds = array<i64: 256, 128>}, {pipeline_mode = #tpu.pipeline_mode<synchronous>, transform_indices = @transform_4, window_bounds = array<i64: 1, 128>}, {pipeline_mode = #tpu.pipeline_mode<synchronous>, transform_indices = @transform_5, window_bounds = array<i64: 1, 128>}, {pipeline_mode = #tpu.pipeline_mode<synchronous>, transform_indices = @transform_6, window_bounds = array<i64: 1, 128>}, {transform_indices = @transform_7, window_bounds = array<i64: 160, 128>}]} {
    %c0 = arith.constant 0 : index
    %c0_0 = arith.constant 0 : index
    %0 = vector.load %arg1[%c0, %c0_0] : memref<160x128xf32, #tpu.memory_space<vmem>>, vector<160x128xf32>
    %1 = arith.truncf %0 : vector<160x128xf32> to vector<160x128xbf16>
    %c0_1 = arith.constant 0 : index
    %c0_2 = arith.constant 0 : index
    %2 = vector.load %arg2[%c0_1, %c0_2] : memref<128x256xbf16, #tpu.memory_space<vmem>>, vector<128x256xbf16>
    %cst = arith.constant dense<0.000000e+00> : vector<160x256xf32>
    %3 = tpu.matmul %1, %2, %cst {dimension_numbers = #tpu.dot_dimension_numbers<[1], [0], [0], [1], [0, 0, 1, 1], [], []>} : vector<160x128xbf16>, vector<128x256xbf16>, vector<160x256xf32> -> vector<160x256xf32>
    %c0_3 = arith.constant 0 : index
    %c0_4 = arith.constant 0 : index
    %4 = vector.load %arg3[%c0_3, %c0_4] : memref<1x256xf32, #tpu.memory_space<vmem>>, vector<1x256xf32>
    %5 = vector.broadcast %4 : vector<1x256xf32> to vector<160x256xf32>
    %6 = arith.addf %3, %5 : vector<160x256xf32>
    %cst_5 = arith.constant 0.000000e+00 : f32
    %7 = vector.broadcast %cst_5 : f32 to vector<160x256xf32>
    %8 = arith.maximumf %6, %7 : vector<160x256xf32>
    %9 = arith.truncf %8 : vector<160x256xf32> to vector<160x256xbf16>
    %c0_6 = arith.constant 0 : index
    %c0_7 = arith.constant 0 : index
    %10 = vector.load %arg4[%c0_6, %c0_7] : memref<256x128xbf16, #tpu.memory_space<vmem>>, vector<256x128xbf16>
    %cst_8 = arith.constant dense<0.000000e+00> : vector<160x128xf32>
    %11 = tpu.matmul %9, %10, %cst_8 {dimension_numbers = #tpu.dot_dimension_numbers<[1], [0], [0], [1], [0, 0, 1, 1], [], []>} : vector<160x256xbf16>, vector<256x128xbf16>, vector<160x128xf32> -> vector<160x128xf32>
    %c0_9 = arith.constant 0 : index
    %c0_10 = arith.constant 0 : index
    %12 = vector.load %arg5[%c0_9, %c0_10] : memref<1x128xf32, #tpu.memory_space<vmem>>, vector<1x128xf32>
    %13 = vector.broadcast %12 : vector<1x128xf32> to vector<160x128xf32>
    %14 = arith.addf %11, %13 : vector<160x128xf32>
    %15 = arith.addf %14, %0 : vector<160x128xf32>
    %cst_11 = arith.constant dense<0.000000e+00> : vector<160xf32>
    %16 = vector.multi_reduction <add>, %15, %cst_11 [1] : vector<160x128xf32> to vector<160xf32>
    %17 = vector.shape_cast %16 : vector<160xf32> to vector<160x1xf32>
    %cst_12 = arith.constant 1.280000e+02 : f32
    %18 = vector.broadcast %cst_12 : f32 to vector<160x1xf32>
    %19 = arith.divf %17, %18 : vector<160x1xf32>
    %20 = vector.broadcast %19 : vector<160x1xf32> to vector<160x128xf32>
    %21 = arith.subf %15, %20 : vector<160x128xf32>
    %22 = arith.mulf %21, %21 : vector<160x128xf32>
    %cst_13 = arith.constant dense<0.000000e+00> : vector<160xf32>
    %23 = vector.multi_reduction <add>, %22, %cst_13 [1] : vector<160x128xf32> to vector<160xf32>
    %24 = vector.shape_cast %23 : vector<160xf32> to vector<160x1xf32>
    %cst_14 = arith.constant 1.280000e+02 : f32
    %25 = vector.broadcast %cst_14 : f32 to vector<160x1xf32>
    %26 = arith.divf %24, %25 : vector<160x1xf32>
    %27 = vector.broadcast %19 : vector<160x1xf32> to vector<160x128xf32>
    %28 = arith.subf %15, %27 : vector<160x128xf32>
    %cst_15 = arith.constant 9.99999974E-6 : f32
    %29 = vector.broadcast %cst_15 : f32 to vector<160x1xf32>
    %30 = arith.addf %26, %29 : vector<160x1xf32>
    %31 = math.rsqrt %30 : vector<160x1xf32>
    %32 = vector.broadcast %31 : vector<160x1xf32> to vector<160x128xf32>
    %33 = arith.mulf %28, %32 : vector<160x128xf32>
    %c0_16 = arith.constant 0 : index
    %c0_17 = arith.constant 0 : index
    %34 = vector.load %arg6[%c0_16, %c0_17] : memref<1x128xf32, #tpu.memory_space<vmem>>, vector<1x128xf32>
    %35 = vector.broadcast %34 : vector<1x128xf32> to vector<160x128xf32>
    %36 = arith.mulf %33, %35 : vector<160x128xf32>
    %c0_18 = arith.constant 0 : index
    %c0_19 = arith.constant 0 : index
    %37 = vector.load %arg7[%c0_18, %c0_19] : memref<1x128xf32, #tpu.memory_space<vmem>>, vector<1x128xf32>
    %38 = vector.broadcast %37 : vector<1x128xf32> to vector<160x128xf32>
    %39 = arith.addf %36, %38 : vector<160x128xf32>
    %c0_20 = arith.constant 0 : index
    %c0_21 = arith.constant 0 : index
    %40 = vector.load %arg8[%c0_20, %c0_21] : memref<160x128xf32, #tpu.memory_space<vmem>>, vector<160x128xf32>
    tpu.vector_store %arg8[%c0_20, %c0_21], %39 {strides = array<i32>} : memref<160x128xf32, #tpu.memory_space<vmem>>, vector<160x128xf32>,
    return
  }
  func.func @transform_0(%arg0: i32) -> (i32, i32) {
    %c0_i32 = arith.constant 0 : i32
    %c0_i32_0 = arith.constant 0 : i32
    return %arg0, %c0_i32 : i32, i32
  }
  func.func @transform_1(%arg0: i32) -> (i32, i32) {
    %c0_i32 = arith.constant 0 : i32
    %c0_i32_0 = arith.constant 0 : i32
    %c0_i32_1 = arith.constant 0 : i32
    return %c0_i32, %c0_i32_0 : i32, i32
  }
  func.func @transform_2(%arg0: i32) -> (i32, i32) {
    %c0_i32 = arith.constant 0 : i32
    %c0_i32_0 = arith.constant 0 : i32
    %c0_i32_1 = arith.constant 0 : i32
    return %c0_i32, %c0_i32_0 : i32, i32
  }
  func.func @transform_3(%arg0: i32) -> (i32, i32) {
    %c0_i32 = arith.constant 0 : i32
    %c0_i32_0 = arith.constant 0 : i32
    %c0_i32_1 = arith.constant 0 : i32
    return %c0_i32, %c0_i32_0 : i32, i32
  }
  func.func @transform_4(%arg0: i32) -> (i32, i32) {
    %c0_i32 = arith.constant 0 : i32
    %c0_i32_0 = arith.constant 0 : i32
    %c0_i32_1 = arith.constant 0 : i32
    return %c0_i32, %c0_i32_0 : i32, i32
  }
  func.func @transform_5(%arg0: i32) -> (i32, i32) {
    %c0_i32 = arith.constant 0 : i32
    %c0_i32_0 = arith.constant 0 : i32
    %c0_i32_1 = arith.constant 0 : i32
    return %c0_i32, %c0_i32_0 : i32, i32
  }
  func.func @transform_6(%arg0: i32) -> (i32, i32) {
    %c0_i32 = arith.constant 0 : i32
    %c0_i32_0 = arith.constant 0 : i32
    %c0_i32_1 = arith.constant 0 : i32
    return %c0_i32, %c0_i32_0 : i32, i32
  }
  func.func @transform_7(%arg0: i32) -> (i32, i32) {
    %c0_i32 = arith.constant 0 : i32
    %c0_i32_0 = arith.constant 0 : i32
    return %arg0, %c0_i32 : i32, i32
  }
}

</mosaic_0001>

<bundles_post_ra>
// kernel: encoder_layer_forward.3
= control target key start
LH: loop header
LB: loop body
LE: loop exit
PB: predicated region body
PF: predicated region fallthrough
CT: control target
= control target key end

     0   :  { %vm709_vm0 = vcmask 130048   ;;  %vm504_vm1 = vcmask 261120   ;;  %s2327_s2 = inlined_call_operand.vmem [shape: bf16[128,128], index: 2, kind: input, shape index: {}]   ;;  %s2328_s0 = inlined_call_operand.vmem [shape: f32[160,128], index: 0, kind: input, shape index: {}]   ;;  %s2329_s1 = inlined_call_operand.vmem [shape: f32[160,128], index: 1, kind: input, shape index: {}]   ;;  %s2330_s6 = inlined_call_operand.vmem [shape: bf16[128,16], index: 6, kind: input, shape index: {}]   ;;  %s2331_s4 = inlined_call_operand.vmem [shape: bf16[128,32], index: 4, kind: input, shape index: {}]   ;;  %s2332_s8 = inlined_call_operand.vmem [shape: f32[16,16], index: 8, kind: input, shape index: {}]   ;;  %s2333_s3 = inlined_call_operand.vmem [shape: f32[1,128], index: 3, kind: input, shape index: {}]   ;;  %s2334_s9 = inlined_call_operand.vmem [shape: f32[160,128], index: 9, kind: output, shape index: {0}]   ;;  %s2335_s7 = inlined_call_operand.vmem [shape: f32[1,16], index: 7, kind: input, shape index: {}]   ;;  %s2336_s5 = inlined_call_operand.vmem [shape: f32[1,32], index: 5, kind: input, shape index: {}]   ;;  %s2337_s10 = inlined_call_operand.vmem [shape: f32[160,32], index: 10, kind: output, shape index: {1}]   ;;  %s2338_s11 = inlined_call_operand.vmem [shape: f32[160,16], index: 11, kind: output, shape index: {2}]  }
   0x1   :  { %v1398_v0 = vld [vmem:[%s2327_s2] sm:$0xff]   ;;  %v1399_v1 = vld [vmem:[%s2327_s2 + $0x8] sm:$0xff]   ;;  %v1400_v2 = vld [vmem:[%s2327_s2 + $0x10] sm:$0xff]  }
   0x2   :  { %1252 = vmatprep.subr.bf16.mxu0 %v1398_v0  ;;  %v1401_v3 = vld [vmem:[%s2327_s2 + $0x18] sm:$0xff]   ;;  %v36_v4 = vld [vmem:[%s2328_s0] sm:$0xff]  ;;  %v37_v5 = vld [vmem:[%s2328_s0 + $0x8] sm:$0xff] }
   0x3   :  { %1253 = vmatpush3.bf16.msra.mxu0 %v1398_v0  ;;  %v270_v6 = vld [vmem:[%s2329_s1] sm:$0xff]  ;;  %v56_v7 = vpack.c.bf16 %v37_v5, %v36_v4  ;;  %v271_v8 = vld [vmem:[%s2329_s1 + $0x8] sm:$0xff]  ;;  %v1404_v14 = vld [vmem:[%s2327_s2 + $0x30] sm:$0xff]  }
   0x4   :  { %1254 = vmatprep.subr.bf16.mxu0 %v1399_v1  ;;  %v290_v9 = vadd.f32 %v270_v6, %v36_v4  ;;  %v291_v10 = vadd.f32 %v271_v8, %v37_v5  ;;  %v1402_v11 = vld [vmem:[%s2327_s2 + $0x20] sm:$0xff]   ;;  %v1403_v13 = vld [vmem:[%s2327_s2 + $0x28] sm:$0xff]   ;;  %v1405_v15 = vld [vmem:[%s2327_s2 + $0x38] sm:$0xff]  }
   0x5   :  { %1268 = vmatprep.mubr.bf16.mxu0 %v56_v7  ;;  %v1604_v16 = vld [vmem:[%s2328_s0 + $0x10] sm:$0xff]  ;;  %v1609_v17 = vld [vmem:[%s2328_s0 + $0x18] sm:$0xff]  ;;  %v1406_v18 = vld [vmem:[%s2330_s6] sm:$0xff]  }
   0x6   :  { %v1589_v12 = vpack.c.bf16 %v291_v10, %v290_v9  ;;  %v1617_v19 = vld [vmem:[%s2328_s0 + $0x20] sm:$0xff]  ;;  %v1622_v20 = vld [vmem:[%s2328_s0 + $0x28] sm:$0xff]  ;;  %v57_v21 = vpack.c.bf16 %v1609_v17, %v1604_v16  ;;  %v1634_v24 = vld [vmem:[%s2328_s0 + $0x30] sm:$0xff] }
   0x7   :  { %1255 = vmatpush3.bf16.msra.mxu0 %v1399_v1  ;;  %v58_v22 = vpack.c.bf16 %v1622_v20, %v1617_v19  ;;  %v1407_v23 = vld [vmem:[%s2330_s6 + $0x8] sm:$0xff]   ;;  %v1639_v25 = vld [vmem:[%s2328_s0 + $0x38] sm:$0xff]  ;;  %v1408_v26 = vld [vmem:[%s2330_s6 + $0x10] sm:$0xff]  }
   0x8   :  { %1256 = vmatprep.subr.bf16.mxu0 %v1400_v2  ;;  %1304 = vmatprep.mubr.bf16.mxu1 %v1589_v12  ;;  %v1647_v27 = vld [vmem:[%s2328_s0 + $0x40] sm:$0xff]  ;;  %v1652_v28 = vld [vmem:[%s2328_s0 + $0x48] sm:$0xff]  ;;  %v59_v29 = vpack.c.bf16 %v1639_v25, %v1634_v24  ;;  %v1409_v31 = vld [vmem:[%s2330_s6 + $0x18] sm:$0xff]  }
   0x9   :  { %v60_v30 = vpack.c.bf16 %v1652_v28, %v1647_v27  ;;  %v46_v32 = vld [vmem:[%s2328_s0 + $0x50] sm:$0xff]  ;;  %v47_v33 = vld [vmem:[%s2328_s0 + $0x58] sm:$0xff]  ;;  %v1410_v34 = vld [vmem:[%s2330_s6 + $0x20] sm:$0xff]  }
   0xa   :  { %v48_v35 = vld [vmem:[%s2328_s0 + $0x60] sm:$0xff]  ;;  %v49_v36 = vld [vmem:[%s2328_s0 + $0x68] sm:$0xff]  ;;  %v61_v37 = vpack.c.bf16 %v47_v33, %v46_v32  ;;  %v50_v40 = vld [vmem:[%s2328_s0 + $0x70] sm:$0xff] }
   0xb   :  { %1257 = vmatpush3.bf16.msra.mxu0 %v1400_v2  ;;  %v62_v38 = vpack.c.bf16 %v49_v36, %v48_v35  ;;  %v1411_v39 = vld [vmem:[%s2330_s6 + $0x28] sm:$0xff]   ;;  %v51_v41 = vld [vmem:[%s2328_s0 + $0x78] sm:$0xff]  ;;  %v1412_v42 = vld [vmem:[%s2330_s6 + $0x30] sm:$0xff]  }
   0xc   :  { %1258 = vmatprep.subr.bf16.mxu0 %v1401_v3  ;;  %v52_v43 = vld [vmem:[%s2328_s0 + $0x80] sm:$0xff]  ;;  %v53_v44 = vld [vmem:[%s2328_s0 + $0x88] sm:$0xff]  ;;  %v63_v45 = vpack.c.bf16 %v51_v41, %v50_v40  ;;  %v1413_v47 = vld [vmem:[%s2330_s6 + $0x38] sm:$0xff]  }
   0xd   :  { %v64_v46 = vpack.c.bf16 %v53_v44, %v52_v43  ;;  %v54_v48 = vld [vmem:[%s2328_s0 + $0x90] sm:$0xff]  ;;  %v55_v49 = vld [vmem:[%s2328_s0 + $0x98] sm:$0xff]  ;;  %v274_v53 = vld [vmem:[%s2329_s1 + $0x20] sm:$0xff] }
   0xe   :  { %v65_v50 = vpack.c.bf16 %v55_v49, %v54_v48  ;;  %v272_v51 = vld [vmem:[%s2329_s1 + $0x10] sm:$0xff]  ;;  %v273_v52 = vld [vmem:[%s2329_s1 + $0x18] sm:$0xff]  ;;  %v275_v54 = vld [vmem:[%s2329_s1 + $0x28] sm:$0xff]  ;;  %v294_v57 = vadd.f32 %v274_v53, %v1617_v19 }
   0xf   :  { %1259 = vmatpush3.bf16.msra.mxu0 %v1401_v3  ;;  %v292_v55 = vadd.f32 %v272_v51, %v1604_v16  ;;  %v293_v56 = vadd.f32 %v273_v52, %v1609_v17  ;;  %v295_v58 = vadd.f32 %v275_v54, %v1622_v20  ;;  %v276_v61 = vld [vmem:[%s2329_s1 + $0x30] sm:$0xff]  ;;  %v277_v62 = vld [vmem:[%s2329_s1 + $0x38] sm:$0xff]  ;;  %v278_v63 = vld [vmem:[%s2329_s1 + $0x40] sm:$0xff] }
  0x10   :  { %1260 = vmatprep.subr.bf16.mxu0 %v1402_v11  ;;  %v279_v0 = vld [vmem:[%s2329_s1 + $0x48] sm:$0xff]  ;;  %v296_v1 = vadd.f32 %v276_v61, %v1634_v24  ;;  %v297_v2 = vadd.f32 %v277_v62, %v1639_v25  ;;  %v298_v3 = vadd.f32 %v278_v63, %v1647_v27  ;;  %v280_v7 = vld [vmem:[%s2329_s1 + $0x50] sm:$0xff]  ;;  %v281_v8 = vld [vmem:[%s2329_s1 + $0x58] sm:$0xff] }
  0x11   :  { %v1720_v59 = vpack.c.bf16 %v293_v56, %v292_v55  ;;  %v1722_v60 = vpack.c.bf16 %v295_v58, %v294_v57  ;;  %v299_v4 = vadd.f32 %v279_v0, %v1652_v28  ;;  %v282_v9 = vld [vmem:[%s2329_s1 + $0x60] sm:$0xff]  ;;  %v283_v10 = vld [vmem:[%s2329_s1 + $0x68] sm:$0xff]  ;;  %v284_v17 = vld [vmem:[%s2329_s1 + $0x70] sm:$0xff] }
  0x12   :  { %v1742_v5 = vpack.c.bf16 %v297_v2, %v296_v1  ;;  %v286_v19 = vld [vmem:[%s2329_s1 + $0x80] sm:$0xff]  ;;  %v287_v20 = vld [vmem:[%s2329_s1 + $0x88] sm:$0xff]  ;;  %v288_v27 = vld [vmem:[%s2329_s1 + $0x90] sm:$0xff] }
  0x13   :  { %1261 = vmatpush3.bf16.msra.mxu0 %v1402_v11  ;;  %v1744_v6 = vpack.c.bf16 %v299_v4, %v298_v3  ;;  %v300_v11 = vadd.f32 %v280_v7, %v46_v32  ;;  %v307_v24 = vadd.f32 %v287_v20, %v53_v44  ;;  %v289_v28 = vld [vmem:[%s2329_s1 + $0x98] sm:$0xff]  ;;  %v1414_v32 = vld [vmem:[%s2331_s4] sm:$0xff]  }
  0x14   :  { %1262 = vmatprep.subr.bf16.mxu0 %v1403_v13  ;;  %1288 = vmatprep.subr.bf16.mxu1 %v1414_v32  ;;  %v1920_v20 = vld [vmem:[%s2335_s7] ss:$0 sm:$0xff] }
  0x15   :  { %1289 = vmatpush3.bf16.msra.mxu1 %v1414_v32 }
  0x17   :  { %1263 = vmatpush3.bf16.msra.mxu0 %v1403_v13  ;;  %v302_v13 = vadd.f32 %v282_v9, %v48_v35  ;;  %v1417_v35 = vld [vmem:[%s2331_s4 + $0x18] sm:$0xff]  }
  0x18   :  { %1264 = vmatprep.subr.bf16.mxu0 %v1404_v14 }
  0x1b   :  { %1265 = vmatpush3.bf16.msra.mxu0 %v1404_v14  ;;  %v303_v14 = vadd.f32 %v283_v10, %v49_v36  ;;  %v1418_v36 = vld [vmem:[%s2331_s4 + $0x20] sm:$0xff]  }
  0x1c   :  { %1266 = vmatprep.subr.bf16.mxu0 %v1405_v15 }
  0x1d   :  { %v1762_v16 = vpack.c.bf16 %v303_v14, %v302_v13 }
  0x1f   :  { %1267 = vmatpush3.bf16.msra.mxu0 %v1405_v15 }
  0x20   :  { %1324 = vmatprep.subr.bf16.mxu0 %v1406_v18 }
  0x22   :  { %1269 = vmatmul.mubr.bf16.vlgmr.msra.gmra.mrb[0].mxu0 %v57_v21  ;;  %v304_v21 = vadd.f32 %v284_v17, %v50_v40  ;;  %v830_v40 = vld [vmem:[%s2332_s8] sm:$0xff] }
  0x23   :  { %1325 = vmatpush3.bf16.msra.mxu0 %v1406_v18  ;;  %1272 = vmatprep.mubr.bf16.mxu0 %v58_v22  ;;  %v285_v18 = vld [vmem:[%s2329_s1 + $0x78] sm:$0xff] }
  0x24   :  { %1326 = vmatprep.subr.bf16.mxu0 %v1407_v23  ;;  %v305_v22 = vadd.f32 %v285_v18, %v51_v41  ;;  %v831_v41 = vld [vmem:[%s2332_s8 + $0x8] sm:$0xff] }
  0x26   :  { %v1778_v25 = vpack.c.bf16 %v305_v22, %v304_v21 }
  0x27   :  { %1327 = vmatpush3.bf16.msra.mxu0 %v1407_v23  ;;  %v306_v23 = vadd.f32 %v286_v19, %v52_v43  ;;  %v1828_v43 = vld [vmem:[%s2333_s3] ss:$0 sm:$0xff] }
  0x28   :  { %1328 = vmatprep.subr.bf16.mxu0 %v1408_v26 }
  0x2a   :  { %1273 = vmatmul.mubr.bf16.gmra.mrb[4].mxu0 %v59_v29  ;;  %v308_v29 = vadd.f32 %v288_v27, %v54_v48 }
  0x2b   :  { %1329 = vmatpush3.bf16.msra.mxu0 %v1408_v26  ;;  %1276 = vmatprep.mubr.bf16.mxu0 %v60_v30  ;;  %v1780_v26 = vpack.c.bf16 %v307_v24, %v306_v23  ;;  %v309_v30 = vadd.f32 %v289_v28, %v55_v49 }
  0x2c   :  { %1330 = vmatprep.subr.bf16.mxu0 %v1409_v31 }
  0x2f   :  { %1331 = vmatpush3.bf16.msra.mxu0 %v1409_v31  ;;  %v1790_v31 = vpack.c.bf16 %v309_v30, %v308_v29 }
  0x30   :  { %1332 = vmatprep.subr.bf16.mxu0 %v1410_v34 }
  0x32   :  { %1277 = vmatmul.mubr.bf16.gmra.mrb[8].mxu0 %v61_v37  ;;  %v1419_v37 = vld [vmem:[%s2331_s4 + $0x28] sm:$0xff]  }
  0x33   :  { %1333 = vmatpush3.bf16.msra.mxu0 %v1410_v34  ;;  %1280 = vmatprep.mubr.bf16.mxu0 %v62_v38  ;;  %v1416_v34 = vld [vmem:[%s2331_s4 + $0x10] sm:$0xff]  }
  0x34   :  { %1334 = vmatprep.subr.bf16.mxu0 %v1411_v39  ;;  %v1420_v38 = vld [vmem:[%s2331_s4 + $0x30] sm:$0xff]  }
  0x37   :  { %1335 = vmatpush3.bf16.msra.mxu0 %v1411_v39  ;;  %v1421_v39 = vld [vmem:[%s2331_s4 + $0x38] sm:$0xff]  }
  0x38   :  { %1336 = vmatprep.subr.bf16.mxu0 %v1412_v42 }
  0x3a   :  { %1281 = vmatmul.mubr.bf16.gmra.mrb[12].mxu0 %v63_v45 }
  0x3b   :  { %1284 = vmatprep.mubr.bf16.mxu0 %v64_v46  ;;  %1337 = vmatpush3.bf16.msra.mxu0 %v1412_v42  ;;  %v1394_v42 = vpack.c.bf16 %v831_v41, %v830_v40 }
  0x3c   :  { %1338 = vmatprep.subr.bf16.mxu0 %v1413_v47 }
  0x3f   :  { %1339 = vmatpush3.bf16.msra.mxu0 %v1413_v47 }
  0x42   :  { %1285 = vmatmul.mubr.bf16.gmra.mrb[16].mxu0 %v65_v50 }
  0x43   :  { %1340 = vmatprep.mubr.bf16.mxu0 %v1589_v12  ;;  %v301_v12 = vadd.f32 %v281_v8, %v47_v33  ;;  %v1415_v33 = vld [vmem:[%s2331_s4 + $0x8] sm:$0xff]  }
  0x44   :  { %1290 = vmatprep.subr.bf16.mxu1 %v1415_v33 }
  0x45   :  { %v1760_v15 = vpack.c.bf16 %v301_v12, %v300_v11  ;;  %1291 = vmatpush3.bf16.msra.mxu1 %v1415_v33 }
  0x46   :  { %1292 = vmatprep.subr.bf16.mxu1 %v1416_v34 }
  0x49   :  { %1293 = vmatpush3.bf16.msra.mxu1 %v1416_v34 }
  0x4a   :  { %1341 = vmatmul.mubr.bf16.vlgmr.msra.gmra.mrb[20].mxu0 %v1720_v59  ;;  %1294 = vmatprep.subr.bf16.mxu1 %v1417_v35 }
  0x4b   :  { %1344 = vmatprep.mubr.bf16.mxu0 %v1722_v60 }
  0x4d   :  { %1295 = vmatpush3.bf16.msra.mxu1 %v1417_v35 }
  0x4e   :  { %1296 = vmatprep.subr.bf16.mxu1 %v1418_v36 }
  0x51   :  { %1297 = vmatpush3.bf16.msra.mxu1 %v1418_v36 }
  0x52   :  { %1345 = vmatmul.mubr.bf16.gmra.mrb[24].mxu0 %v1742_v5  ;;  %1298 = vmatprep.subr.bf16.mxu1 %v1419_v37 }
  0x53   :  { %1348 = vmatprep.mubr.bf16.mxu0 %v1744_v6 }
  0x55   :  { %1299 = vmatpush3.bf16.msra.mxu1 %v1419_v37 }
  0x56   :  { %1300 = vmatprep.subr.bf16.mxu1 %v1420_v38 }
  0x59   :  { %1301 = vmatpush3.bf16.msra.mxu1 %v1420_v38 }
  0x5a   :  { %1349 = vmatmul.mubr.bf16.gmra.mrb[28].mxu0 %v1760_v15  ;;  %1302 = vmatprep.subr.bf16.mxu1 %v1421_v39 }
  0x5b   :  { %1352 = vmatprep.mubr.bf16.mxu0 %v1762_v16 }
  0x5d   :  { %1303 = vmatpush3.bf16.msra.mxu1 %v1421_v39 }
  0x5e   :  { %1395 = vmatprep.subr.bf16.mxu1 %v1394_v42 }
  0x60   :  { %1305 = vmatmul.mubr.bf16.vlgmr.msra.gmra.mrb[0].mxu1 %v1720_v59 }
  0x61   :  { %1397 = vmatpush3.bf16.msra.mxu1 %v1394_v42  ;;  %1308 = vmatprep.mubr.bf16.mxu1 %v1722_v60 }
  0x62   :  { %1353 = vmatmul.mubr.bf16.gmra.mrb[32].mxu0 %v1778_v25 }
  0x63   :  { %1356 = vmatprep.mubr.bf16.mxu0 %v1780_v26 }
  0x68   :  { %1309 = vmatmul.mubr.bf16.gmra.mrb[4].mxu1 %v1742_v5 }
  0x69   :  { %1312 = vmatprep.mubr.bf16.mxu1 %v1744_v6 }
  0x6a   :  { %1357 = vmatmul.mubr.bf16.gmra.mrb[36].mxu0 %v1790_v31 }
  0x70   :  { %1313 = vmatmul.mubr.bf16.gmra.mrb[8].mxu1 %v1760_v15 }
  0x71   :  { %1316 = vmatprep.mubr.bf16.mxu1 %v1762_v16 }
  0x78   :  { %1317 = vmatmul.mubr.bf16.gmra.mrb[12].mxu1 %v1778_v25 }
  0x79   :  { %1320 = vmatprep.mubr.bf16.mxu1 %v1780_v26 }
  0x80   :  { %1321 = vmatmul.mubr.bf16.gmra.mrb[16].mxu1 %v1790_v31 }
  0xf5   :  { %v1270_v44 = vpop.f32.mrb[0].mxu0 }
  0xf6   :  { %v180_v45 = vadd.f32 %v1270_v44, %v1828_v43  ;;  %v171_v46 = vpop.f32.mrb[1].mxu0 }
  0xf7   :  { %v172_v47 = vadd.f32 %v1828_v43, %v171_v46  ;;  %v1271_v48 = vpop.f32.mrb[2].mxu0 }
  0xf8   :  { %252 = vst [vmem:[%s2334_s9 + $0x10] sm:$0xff] %v180_v45  ;;  %v183_v49 = vadd.f32 %v1271_v48, %v1828_v43  ;;  %v174_v50 = vpop.f32.mrb[3].mxu0 }
  0xf9   :  { %250 = vst [vmem:[%s2334_s9] sm:$0xff] %v172_v47  ;;  %v175_v51 = vadd.f32 %v1828_v43, %v174_v50 }
  0xfa   :  { %253 = vst [vmem:[%s2334_s9 + $0x18] sm:$0xff] %v183_v49 }
  0xfb   :  { %251 = vst [vmem:[%s2334_s9 + $0x8] sm:$0xff] %v175_v51 }
  0xfd   :  { %v1274_v52 = vpop.f32.mrb[4].mxu0 }
  0xfe   :  { %v196_v53 = vadd.f32 %v1274_v52, %v1828_v43  ;;  %v187_v54 = vpop.f32.mrb[5].mxu0 }
  0xff   :  { %v188_v55 = vadd.f32 %v1828_v43, %v187_v54  ;;  %v1275_v56 = vpop.f32.mrb[6].mxu0 }
 0x100   :  { %256 = vst [vmem:[%s2334_s9 + $0x30] sm:$0xff] %v196_v53  ;;  %v199_v57 = vadd.f32 %v1275_v56, %v1828_v43  ;;  %v190_v58 = vpop.f32.mrb[7].mxu0 }
 0x101   :  { %254 = vst [vmem:[%s2334_s9 + $0x20] sm:$0xff] %v188_v55  ;;  %v191_v59 = vadd.f32 %v1828_v43, %v190_v58 }
 0x102   :  { %257 = vst [vmem:[%s2334_s9 + $0x38] sm:$0xff] %v199_v57 }
 0x103   :  { %255 = vst [vmem:[%s2334_s9 + $0x28] sm:$0xff] %v191_v59 }
 0x105   :  { %v1278_v60 = vpop.f32.mrb[8].mxu0 }
 0x106   :  { %v212_v61 = vadd.f32 %v1278_v60, %v1828_v43  ;;  %v203_v62 = vpop.f32.mrb[9].mxu0 }
 0x107   :  { %v204_v63 = vadd.f32 %v1828_v43, %v203_v62  ;;  %v1279_v0 = vpop.f32.mrb[10].mxu0 }
 0x108   :  { %260 = vst [vmem:[%s2334_s9 + $0x50] sm:$0xff] %v212_v61  ;;  %v215_v1 = vadd.f32 %v1279_v0, %v1828_v43  ;;  %v206_v2 = vpop.f32.mrb[11].mxu0 }
 0x109   :  { %258 = vst [vmem:[%s2334_s9 + $0x40] sm:$0xff] %v204_v63  ;;  %v207_v3 = vadd.f32 %v1828_v43, %v206_v2 }
 0x10a   :  { %261 = vst [vmem:[%s2334_s9 + $0x58] sm:$0xff] %v215_v1 }
 0x10b   :  { %259 = vst [vmem:[%s2334_s9 + $0x48] sm:$0xff] %v207_v3 }
 0x10d   :  { %v1282_v4 = vpop.f32.mrb[12].mxu0 }
 0x10e   :  { %v228_v5 = vadd.f32 %v1282_v4, %v1828_v43  ;;  %v219_v6 = vpop.f32.mrb[13].mxu0 }
 0x10f   :  { %v220_v7 = vadd.f32 %v1828_v43, %v219_v6  ;;  %v1283_v8 = vpop.f32.mrb[14].mxu0 }
 0x110   :  { %264 = vst [vmem:[%s2334_s9 + $0x70] sm:$0xff] %v228_v5  ;;  %v231_v9 = vadd.f32 %v1283_v8, %v1828_v43  ;;  %v222_v10 = vpop.f32.mrb[15].mxu0 }
 0x111   :  { %262 = vst [vmem:[%s2334_s9 + $0x60] sm:$0xff] %v220_v7  ;;  %v223_v11 = vadd.f32 %v1828_v43, %v222_v10 }
 0x112   :  { %265 = vst [vmem:[%s2334_s9 + $0x78] sm:$0xff] %v231_v9 }
 0x113   :  { %263 = vst [vmem:[%s2334_s9 + $0x68] sm:$0xff] %v223_v11 }
 0x115   :  { %v1286_v12 = vpop.f32.mrb[16].mxu0 }
 0x116   :  { %v244_v13 = vadd.f32 %v1286_v12, %v1828_v43  ;;  %v235_v14 = vpop.f32.mrb[17].mxu0 }
 0x117   :  { %v236_v15 = vadd.f32 %v1828_v43, %v235_v14  ;;  %v1287_v16 = vpop.f32.mrb[18].mxu0 }
 0x118   :  { %268 = vst [vmem:[%s2334_s9 + $0x90] sm:$0xff] %v244_v13  ;;  %v247_v17 = vadd.f32 %v1287_v16, %v1828_v43  ;;  %v238_v18 = vpop.f32.mrb[19].mxu0 }
 0x119   :  { %266 = vst [vmem:[%s2334_s9 + $0x80] sm:$0xff] %v236_v15  ;;  %v239_v19 = vadd.f32 %v1828_v43, %v238_v18 }
 0x11a   :  { %269 = vst [vmem:[%s2334_s9 + $0x98] sm:$0xff] %v247_v17 }
 0x11b   :  { %267 = vst [vmem:[%s2334_s9 + $0x88] sm:$0xff] %v239_v19 }
 0x11d   :  { %v1342_v21 = vpop.f32.mrb[20].mxu0 }
 0x11e   :  { %v1923_v22 = vadd.f32 %v1342_v21, %v1920_v20  ;;  %v630_v23 = vpop.f32.mrb[21].mxu0 }
 0x11f   :  { %v1926_v24 = vadd.f32 %v1920_v20, %v630_v23  ;;  %v1343_v25 = vpop.f32.mrb[22].mxu0 }
 0x120   :  { %v1929_v26 = vadd.f32 %v1343_v25, %v1920_v20  ;;  %v633_v27 = vpop.f32.mrb[23].mxu0  ;;  %v716_v28 = vsel %vm709_vm0, %v1923_v22, -inf }
 0x121   :  { %v1934_v29 = vadd.f32 %v1920_v20, %v633_v27  ;;  %717 = vmax.xlane.f32.xlu1 %v716_v28  ;;  %v710_v30 = vsel %vm709_vm0, %v1926_v24, -inf }
 0x122   :  { %711 = vmax.xlane.f32.xlu0 %v710_v30  ;;  %v719_v31 = vsel %vm709_vm0, %v1929_v26, -inf }
 0x123   :  { %v713_v33 = vsel %vm709_vm0, %v1934_v29, -inf }
 0x125   :  { %720 = vmax.xlane.f32.xlu1 %v719_v31  ;;  %v1346_v32 = vpop.f32.mrb[24].mxu0 }
 0x126   :  { %v646_v34 = vpop.f32.mrb[25].mxu0  ;;  %714 = vmax.xlane.f32.xlu0 %v713_v33  ;;  %v1946_v38 = vadd.f32 %v1346_v32, %v1920_v20 }
 0x127   :  { %v1943_v35 = vadd.f32 %v1920_v20, %v646_v34  ;;  %v1347_v36 = vpop.f32.mrb[26].mxu0 }
 0x128   :  { %v649_v37 = vpop.f32.mrb[27].mxu0  ;;  %v1954_v41 = vadd.f32 %v1347_v36, %v1920_v20  ;;  %v728_v44 = vsel %vm709_vm0, %v1946_v38, -inf }
 0x129   :  { %v1949_v39 = vadd.f32 %v1920_v20, %v649_v37  ;;  %v722_v40 = vsel %vm709_vm0, %v1943_v35, -inf }
 0x12a   :  { %723 = vmax.xlane.f32.xlu0 %v722_v40  ;;  %v731_v48 = vsel %vm709_vm0, %v1954_v41, -inf }
 0x12b   :  { %v725_v42 = vsel %vm709_vm0, %v1949_v39, -inf }
 0x12c   :  { %726 = vmax.xlane.f32.xlu1 %v725_v42 }
 0x12d   :  { %v1350_v43 = vpop.f32.mrb[28].mxu0 }
 0x12e   :  { %v662_v45 = vpop.f32.mrb[29].mxu0  ;;  %729 = vmax.xlane.f32.xlu0 %v728_v44  ;;  %v1966_v50 = vadd.f32 %v1350_v43, %v1920_v20 }
 0x12f   :  { %v1961_v46 = vadd.f32 %v1920_v20, %v662_v45  ;;  %v1351_v47 = vpop.f32.mrb[30].mxu0 }
 0x130   :  { %v665_v49 = vpop.f32.mrb[31].mxu0  ;;  %732 = vmax.xlane.f32.xlu1 %v731_v48  ;;  %v1974_v53 = vadd.f32 %v1351_v47, %v1920_v20  ;;  %v740_v56 = vsel %vm709_vm0, %v1966_v50, -inf }
 0x131   :  { %v1969_v51 = vadd.f32 %v1920_v20, %v665_v49  ;;  %v734_v52 = vsel %vm709_vm0, %v1961_v46, -inf }
 0x132   :  { %735 = vmax.xlane.f32.xlu0 %v734_v52  ;;  %v743_v60 = vsel %vm709_vm0, %v1974_v53, -inf }
 0x133   :  { %v737_v54 = vsel %vm709_vm0, %v1969_v51, -inf  ;;  %v1306_v45 = vpop.f32.mrb[0].mxu1 }
 0x134   :  { %738 = vmax.xlane.f32.xlu1 %v737_v54  ;;  %v425_v47 = vpop.f32.mrb[1].mxu1 }
 0x135   :  { %v1354_v55 = vpop.f32.mrb[32].mxu0  ;;  %v1307_v54 = vpop.f32.mrb[2].mxu1 }
 0x136   :  { %v678_v57 = vpop.f32.mrb[33].mxu0  ;;  %741 = vmax.xlane.f32.xlu0 %v740_v56  ;;  %v1986_v62 = vadd.f32 %v1354_v55, %v1920_v20  ;;  %v428_v56 = vpop.f32.mrb[3].mxu1 }
 0x137   :  { %v1981_v58 = vadd.f32 %v1920_v20, %v678_v57  ;;  %v1355_v59 = vpop.f32.mrb[34].mxu0 }
 0x138   :  { %v681_v61 = vpop.f32.mrb[35].mxu0  ;;  %744 = vmax.xlane.f32.xlu1 %v743_v60  ;;  %v1994_v1 = vadd.f32 %v1355_v59, %v1920_v20  ;;  %v752_v4 = vsel %vm709_vm0, %v1986_v62, -inf }
 0x139   :  { %v1989_v63 = vadd.f32 %v1920_v20, %v681_v61  ;;  %v746_v0 = vsel %vm709_vm0, %v1981_v58, -inf }
 0x13a   :  { %747 = vmax.xlane.f32.xlu0 %v746_v0  ;;  %v755_v8 = vsel %vm709_vm0, %v1994_v1, -inf }
 0x13b   :  { %v749_v2 = vsel %vm709_vm0, %v1989_v63, -inf }
 0x13c   :  { %750 = vmax.xlane.f32.xlu1 %v749_v2 }
 0x13d   :  { %v1358_v3 = vpop.f32.mrb[36].mxu0 }
 0x13e   :  { %v694_v5 = vpop.f32.mrb[37].mxu0  ;;  %753 = vmax.xlane.f32.xlu0 %v752_v4  ;;  %v2006_v10 = vadd.f32 %v1358_v3, %v1920_v20 }
 0x13f   :  { %v2001_v6 = vadd.f32 %v1920_v20, %v694_v5  ;;  %v1359_v7 = vpop.f32.mrb[38].mxu0 }
 0x140   :  { %v697_v9 = vpop.f32.mrb[39].mxu0  ;;  %756 = vmax.xlane.f32.xlu1 %v755_v8  ;;  %v2014_v13 = vadd.f32 %v1359_v7, %v1920_v20  ;;  %v764_v15 = vsel %vm709_vm0, %v2006_v10, -inf }
 0x141   :  { %v2009_v11 = vadd.f32 %v1920_v20, %v697_v9  ;;  %v758_v12 = vsel %vm709_vm0, %v2001_v6, -inf  ;;  %v1310_v9 = vpop.f32.mrb[4].mxu1 }
 0x142   :  { %759 = vmax.xlane.f32.xlu0 %v758_v12  ;;  %v767_v16 = vsel %vm709_vm0, %v2014_v13, -inf }
 0x143   :  { %v761_v14 = vsel %vm709_vm0, %v2009_v11, -inf }
 0x144   :  { %762 = vmax.xlane.f32.xlu1 %v761_v14  ;;  %v441_v14 = vpop.f32.mrb[5].mxu1 }
 0x146   :  { %765 = vmax.xlane.f32.xlu0 %v764_v15 }
 0x148   :  { %768 = vmax.xlane.f32.xlu1 %v767_v16 }
 0x1ae   :  { %v718_v17 = vpop.xlane.xlu1 %717 }
 0x1af   :  { %v712_v18 = vpop.xlane.xlu0 %711  ;;  %v772_v21 = vsub.f32 %v1923_v22, %v718_v17 }
 0x1b0   :  { %v770_v19 = vsub.f32 %v1926_v24, %v712_v18  ;;  %v1311_v18 = vpop.f32.mrb[6].mxu1 }
 0x1b1   :  { %v794_v30 = vmul.f32 1.442695, %v772_v21 }
 0x1b2   :  { %v790_v20 = vmul.f32 1.442695, %v770_v19  ;;  %v721_v23 = vpop.xlane.xlu1 %720 }
 0x1b3   :  { %v773_v25 = vsub.f32 %v1929_v26, %v721_v23  ;;  %v715_v27 = vpop.xlane.xlu0 %714 }
 0x1b4   :  { %1422 = vpow2.f32 %v790_v20  ;;  %v771_v28 = vsub.f32 %v1934_v29, %v715_v27  ;;  %v2032_v29 = vld [vmem:[%s2336_s5] ss:$0 sm:$0xff]  ;;  %v444_v20 = vpop.f32.mrb[7].mxu1 }
 0x1b5   :  { %v796_v32 = vmul.f32 1.442695, %v773_v25  ;;  %v426_v52 = vadd.f32 %v2032_v29, %v425_v47  ;;  %v450_v12 = vadd.f32 %v1310_v9, %v2032_v29  ;;  %v442_v17 = vadd.f32 %v2032_v29, %v441_v14 }
 0x1b6   :  { %v792_v31 = vmul.f32 1.442695, %v771_v28  ;;  %v453_v21 = vadd.f32 %v1311_v18, %v2032_v29  ;;  %v445_v27 = vadd.f32 %v2032_v29, %v444_v20 }
 0x1b7   :  { %v724_v33 = vpop.xlane.xlu0 %723  ;;  %505 = vst.msk [vmem:[%s2337_s10] sm:$0xff] %vm504_vm1, %v426_v52  ;;  %511 = vst.msk [vmem:[%s2337_s10 + $0x30] sm:$0xff] %vm504_vm1, %v450_v12 }
 0x1b8   :  { %1424 = vpow2.f32 %v792_v31  ;;  %v774_v34 = vsub.f32 %v1943_v35, %v724_v33  ;;  %509 = vst.msk [vmem:[%s2337_s10 + $0x20] sm:$0xff] %vm504_vm1, %v442_v17  ;;  %512 = vst.msk [vmem:[%s2337_s10 + $0x38] sm:$0xff] %vm504_vm1, %v453_v21 }
 0x1b9   :  { %1426 = vpow2.f32 %v794_v30  ;;  %v727_v36 = vpop.xlane.xlu1 %726  ;;  %510 = vst.msk [vmem:[%s2337_s10 + $0x28] sm:$0xff] %vm504_vm1, %v445_v27 }
 0x1ba   :  { %v798_v24 = vmul.f32 1.442695, %v774_v34  ;;  %v775_v22 = vsub.f32 %v1949_v39, %v727_v36  ;;  %1428 = vpow2.f32 %v796_v32 }
 0x1bb   :  { %v730_v37 = vpop.xlane.xlu0 %729 }
 0x1bc   :  { %1430 = vpow2.f32 %v798_v24  ;;  %v800_v26 = vmul.f32 1.442695, %v775_v22  ;;  %v776_v40 = vsub.f32 %v1946_v38, %v730_v37  ;;  %v434_v38 = vadd.f32 %v1306_v45, %v2032_v29  ;;  %v1314_v24 = vpop.f32.mrb[8].mxu1 }
 0x1bd   :  { %v733_v42 = vpop.xlane.xlu1 %732  ;;  %v466_v22 = vadd.f32 %v1314_v24, %v2032_v29  ;;  %v457_v37 = vpop.f32.mrb[9].mxu1 }
 0x1be   :  { %v2034_v43 = vpop.eup %1422  ;;  %v802_v35 = vmul.f32 1.442695, %v776_v40  ;;  %v777_v44 = vsub.f32 %v1954_v41, %v733_v42  ;;  %1432 = vpow2.f32 %v800_v26  ;;  %507 = vst.msk [vmem:[%s2337_s10 + $0x10] sm:$0xff] %vm504_vm1, %v434_v38  ;;  %v437_v41 = vadd.f32 %v1307_v54, %v2032_v29 }
 0x1bf   :  { %1364 = vmatprep.mubr.msk.f32.mxu1 %vm709_vm0, %v2034_v43  ;;  %v736_v39 = vpop.xlane.xlu0 %735  ;;  %v458_v42 = vadd.f32 %v2032_v29, %v457_v37  ;;  %515 = vst.msk [vmem:[%s2337_s10 + $0x50] sm:$0xff] %vm504_vm1, %v466_v22 }
 0x1c0   :  { %1434 = vpow2.f32 %v802_v35  ;;  %v804_v48 = vmul.f32 1.442695, %v777_v44  ;;  %v778_v49 = vsub.f32 %v1961_v46, %v736_v39  ;;  %v429_v46 = vadd.f32 %v2032_v29, %v428_v56  ;;  %508 = vst.msk [vmem:[%s2337_s10 + $0x18] sm:$0xff] %vm504_vm1, %v437_v41  ;;  %v1315_v35 = vpop.f32.mrb[10].mxu1 }
 0x1c1   :  { %v739_v55 = vpop.xlane.xlu1 %738  ;;  %v469_v45 = vadd.f32 %v1315_v35, %v2032_v29  ;;  %v460_v39 = vpop.f32.mrb[11].mxu1  ;;  %513 = vst.msk [vmem:[%s2337_s10 + $0x40] sm:$0xff] %vm504_vm1, %v458_v42 }
 0x1c2   :  { %v2047_v57 = vpop.eup %1424  ;;  %v806_v59 = vmul.f32 1.442695, %v778_v49  ;;  %v779_v60 = vsub.f32 %v1969_v51, %v739_v55  ;;  %1436 = vpow2.f32 %v804_v48  ;;  %506 = vst.msk [vmem:[%s2337_s10 + $0x8] sm:$0xff] %vm504_vm1, %v429_v46  ;;  %v461_v48 = vadd.f32 %v2032_v29, %v460_v39 }
 0x1c3   :  { %v2055_v61 = vpop.eup %1426  ;;  %1365 = vmatmul.mubr.msk.f32.vlgmr.msra.gmra.mrb[20].mxu1 %vm709_vm0, %v2047_v57  ;;  %v742_v0 = vpop.xlane.xlu0 %741  ;;  %516 = vst.msk [vmem:[%s2337_s10 + $0x58] sm:$0xff] %vm504_vm1, %v469_v45 }
 0x1c4   :  { %1438 = vpow2.f32 %v806_v59  ;;  %v808_v51 = vmul.f32 1.442695, %v779_v60  ;;  %v780_v2 = vsub.f32 %v1966_v50, %v742_v0  ;;  %1367 = vmatprep.mubr.msk.f32.mxu1 %vm709_vm0, %v2055_v61  ;;  %v2070_v3 = vpop.eup %1428  ;;  %514 = vst.msk [vmem:[%s2337_s10 + $0x48] sm:$0xff] %vm504_vm1, %v461_v48  ;;  %v1318_v60 = vpop.f32.mrb[12].mxu1 }
 0x1c5   :  { %v745_v4 = vpop.xlane.xlu1 %744  ;;  %v473_v46 = vpop.f32.mrb[13].mxu1 }
 0x1c6   :  { %v2072_v5 = vpop.eup %1430  ;;  %v810_v7 = vmul.f32 1.442695, %v780_v2  ;;  %v781_v8 = vsub.f32 %v1974_v53, %v745_v4  ;;  %1440 = vpow2.f32 %v808_v51  ;;  %v474_v51 = vadd.f32 %v2032_v29, %v473_v46  ;;  %v1319_v2 = vpop.f32.mrb[14].mxu1 }
 0x1c7   :  { %1368 = vmatmul.mubr.msk.f32.gmra.mrb[22].mxu1 %vm709_vm0, %v2070_v3  ;;  %v748_v50 = vpop.xlane.xlu0 %747 }
 0x1c8   :  { %1442 = vpow2.f32 %v810_v7  ;;  %v812_v15 = vmul.f32 1.442695, %v781_v8  ;;  %v782_v16 = vsub.f32 %v1981_v58, %v748_v50  ;;  %1370 = vmatprep.mubr.msk.f32.mxu1 %vm709_vm0, %v2072_v5  ;;  %v2082_v53 = vpop.eup %1432  ;;  %v476_v7 = vpop.f32.mrb[15].mxu1  ;;  %517 = vst.msk [vmem:[%s2337_s10 + $0x60] sm:$0xff] %vm504_vm1, %v474_v51 }
 0x1c9   :  { %v751_v19 = vpop.xlane.xlu1 %750  ;;  %v477_v9 = vadd.f32 %v2032_v29, %v476_v7  ;;  %v1322_v14 = vpop.f32.mrb[16].mxu1 }
 0x1ca   :  { %v2089_v23 = vpop.eup %1434  ;;  %v814_v58 = vmul.f32 1.442695, %v782_v16  ;;  %v783_v25 = vsub.f32 %v1989_v63, %v751_v19  ;;  %1444 = vpow2.f32 %v812_v15  ;;  %v498_v15 = vadd.f32 %v1322_v14, %v2032_v29  ;;  %v489_v16 = vpop.f32.mrb[17].mxu1 }
 0x1cb   :  { %1371 = vmatmul.mubr.msk.f32.gmra.mrb[24].mxu1 %vm709_vm0, %v2082_v53  ;;  %v754_v28 = vpop.xlane.xlu0 %753  ;;  %518 = vst.msk [vmem:[%s2337_s10 + $0x68] sm:$0xff] %vm504_vm1, %v477_v9  ;;  %v490_v17 = vadd.f32 %v2032_v29, %v489_v16  ;;  %v1323_v18 = vpop.f32.mrb[18].mxu1 }
 0x1cc   :  { %1446 = vpow2.f32 %v814_v58  ;;  %v816_v30 = vmul.f32 1.442695, %v783_v25  ;;  %v784_v63 = vsub.f32 %v1986_v62, %v754_v28  ;;  %1373 = vmatprep.mubr.msk.f32.mxu1 %vm709_vm0, %v2089_v23  ;;  %v2110_v31 = vpop.eup %1436  ;;  %523 = vst.msk [vmem:[%s2337_s10 + $0x90] sm:$0xff] %vm504_vm1, %v498_v15  ;;  %v501_v21 = vadd.f32 %v1323_v18, %v2032_v29  ;;  %v492_v20 = vpop.f32.mrb[19].mxu1 }
 0x1cd   :  { %v757_v32 = vpop.xlane.xlu1 %756  ;;  %521 = vst.msk [vmem:[%s2337_s10 + $0x80] sm:$0xff] %vm504_vm1, %v490_v17  ;;  %v493_v25 = vadd.f32 %v2032_v29, %v492_v20 }
 0x1ce   :  { %v2112_v33 = vpop.eup %1438  ;;  %v818_v34 = vmul.f32 1.442695, %v784_v63  ;;  %v785_v36 = vsub.f32 %v1994_v1, %v757_v32  ;;  %1448 = vpow2.f32 %v816_v30  ;;  %524 = vst.msk [vmem:[%s2337_s10 + $0x98] sm:$0xff] %vm504_vm1, %v501_v21 }
 0x1cf   :  { %1374 = vmatmul.mubr.msk.f32.gmra.mrb[26].mxu1 %vm709_vm0, %v2110_v31  ;;  %v760_v62 = vpop.xlane.xlu0 %759  ;;  %522 = vst.msk [vmem:[%s2337_s10 + $0x88] sm:$0xff] %vm504_vm1, %v493_v25 }
 0x1d0   :  { %1450 = vpow2.f32 %v818_v34  ;;  %v820_v26 = vmul.f32 1.442695, %v785_v36  ;;  %v786_v40 = vsub.f32 %v2001_v6, %v760_v62  ;;  %1376 = vmatprep.mubr.msk.f32.mxu1 %vm709_vm0, %v2112_v33  ;;  %v2122_v1 = vpop.eup %1440 }
 0x1d1   :  { %v763_v44 = vpop.xlane.xlu1 %762 }
 0x1d2   :  { %v2129_v38 = vpop.eup %1442  ;;  %v822_v6 = vmul.f32 1.442695, %v786_v40  ;;  %v787_v47 = vsub.f32 %v2009_v11, %v763_v44  ;;  %1452 = vpow2.f32 %v820_v26 }
 0x1d3   :  { %1377 = vmatmul.mubr.msk.f32.gmra.mrb[28].mxu1 %vm709_vm0, %v2122_v1  ;;  %v766_v49 = vpop.xlane.xlu0 %765 }
 0x1d4   :  { %1454 = vpow2.f32 %v822_v6  ;;  %v824_v52 = vmul.f32 1.442695, %v787_v47  ;;  %v788_v11 = vsub.f32 %v2006_v10, %v766_v49  ;;  %1379 = vmatprep.mubr.msk.f32.mxu1 %vm709_vm0, %v2129_v38  ;;  %v2150_v54 = vpop.eup %1444  ;;  %v482_v10 = vadd.f32 %v1318_v60, %v2032_v29 }
 0x1d5   :  { %v769_v55 = vpop.xlane.xlu1 %768 }
 0x1d6   :  { %v2152_v41 = vpop.eup %1446  ;;  %v826_v56 = vmul.f32 1.442695, %v788_v11  ;;  %v789_v59 = vsub.f32 %v2014_v13, %v769_v55  ;;  %1456 = vpow2.f32 %v824_v52  ;;  %519 = vst.msk [vmem:[%s2337_s10 + $0x70] sm:$0xff] %vm504_vm1, %v482_v10  ;;  %v485_v13 = vadd.f32 %v1319_v2, %v2032_v29 }
 0x1d7   :  { %1380 = vmatmul.mubr.msk.f32.gmra.mrb[30].mxu1 %vm709_vm0, %v2150_v54 }
 0x1d8   :  { %1458 = vpow2.f32 %v826_v56  ;;  %v828_v0 = vmul.f32 1.442695, %v789_v59  ;;  %1382 = vmatprep.mubr.msk.f32.mxu1 %vm709_vm0, %v2152_v41  ;;  %v2161_v4 = vpop.eup %1448  ;;  %520 = vst.msk [vmem:[%s2337_s10 + $0x78] sm:$0xff] %vm504_vm1, %v485_v13 }
 0x1da   :  { %v2168_v8 = vpop.eup %1450  ;;  %1460 = vpow2.f32 %v828_v0 }
 0x1db   :  { %1383 = vmatmul.mubr.msk.f32.gmra.mrb[32].mxu1 %vm709_vm0, %v2161_v4 }
 0x1dc   :  { %1385 = vmatprep.mubr.msk.f32.mxu1 %vm709_vm0, %v2168_v8  ;;  %v2187_v50 = vpop.eup %1452 }
 0x1de   :  { %v2189_v12 = vpop.eup %1454 }
 0x1df   :  { %1386 = vmatmul.mubr.msk.f32.gmra.mrb[34].mxu1 %vm709_vm0, %v2187_v50 }
 0x1e0   :  { %1388 = vmatprep.mubr.msk.f32.mxu1 %vm709_vm0, %v2189_v12  ;;  %v2197_v19 = vpop.eup %1456 }
 0x1e2   :  { %v2204_v58 = vpop.eup %1458 }
 0x1e3   :  { %1389 = vmatmul.mubr.msk.f32.gmra.mrb[36].mxu1 %vm709_vm0, %v2197_v19 }
 0x1e4   :  { %1391 = vmatprep.mubr.msk.f32.mxu1 %vm709_vm0, %v2204_v58  ;;  %v2223_v27 = vpop.eup %1460 }
 0x1e7   :  { %1392 = vmatmul.mubr.msk.f32.gmra.mrb[38].mxu1 %vm709_vm0, %v2223_v27 }
 0x296   :  { %v1366_v29 = vpop.f32.mrb[20].mxu1 }
 0x297   :  { %1462 = vrcp.f32 %v1366_v29  ;;  %v958_v28 = vpop.f32.mrb[21].mxu1 }
 0x298   :  { %1464 = vrcp.f32 %v958_v28 }
 0x29a   :  { %v1369_v30 = vpop.f32.mrb[22].mxu1 }
 0x29b   :  { %1466 = vrcp.f32 %v1369_v30  ;;  %v968_v63 = vpop.f32.mrb[23].mxu1 }
 0x29c   :  { %1468 = vrcp.f32 %v968_v63 }
 0x29e   :  { %v1372_v32 = vpop.f32.mrb[24].mxu1 }
 0x29f   :  { %1470 = vrcp.f32 %v1372_v32  ;;  %v978_v34 = vpop.f32.mrb[25].mxu1 }
 0x2a0   :  { %1472 = vrcp.f32 %v978_v34 }
 0x2a1   :  { %v1463_v36 = vpop.eup %1462 }
 0x2a2   :  { %v1465_v24 = vpop.eup %1464  ;;  %v1060_v62 = vmul.f32 %v1463_v36, %v2047_v57  ;;  %v1375_v22 = vpop.f32.mrb[26].mxu1 }
 0x2a3   :  { %v1058_v37 = vmul.f32 %v1465_v24, %v2034_v43  ;;  %1474 = vrcp.f32 %v1375_v22  ;;  %v988_v26 = vpop.f32.mrb[27].mxu1 }
 0x2a4   :  { %1098 = vst.msk [vmem:[%s2338_s11 + $0x8] sm:$0xff] %vm709_vm0, %v1060_v62  ;;  %1476 = vrcp.f32 %v988_v26 }
 0x2a5   :  { %v1467_v40 = vpop.eup %1466  ;;  %1097 = vst.msk [vmem:[%s2338_s11] sm:$0xff] %vm709_vm0, %v1058_v37 }
 0x2a6   :  { %v1469_v42 = vpop.eup %1468  ;;  %v1064_v57 = vmul.f32 %v1467_v40, %v2070_v3  ;;  %v1378_v35 = vpop.f32.mrb[28].mxu1 }
 0x2a7   :  { %v1062_v43 = vmul.f32 %v1469_v42, %v2055_v61  ;;  %1478 = vrcp.f32 %v1378_v35  ;;  %v998_v44 = vpop.f32.mrb[29].mxu1 }
 0x2a8   :  { %1100 = vst.msk [vmem:[%s2338_s11 + $0x18] sm:$0xff] %vm709_vm0, %v1064_v57  ;;  %1480 = vrcp.f32 %v998_v44 }
 0x2a9   :  { %v1471_v45 = vpop.eup %1470  ;;  %1099 = vst.msk [vmem:[%s2338_s11 + $0x10] sm:$0xff] %vm709_vm0, %v1062_v43 }
 0x2aa   :  { %v1473_v39 = vpop.eup %1472  ;;  %v1068_v3 = vmul.f32 %v1471_v45, %v2082_v53  ;;  %v1381_v6 = vpop.f32.mrb[30].mxu1 }
 0x2ab   :  { %v1066_v61 = vmul.f32 %v1473_v39, %v2072_v5  ;;  %1482 = vrcp.f32 %v1381_v6  ;;  %v1008_v47 = vpop.f32.mrb[31].mxu1 }
 0x2ac   :  { %1102 = vst.msk [vmem:[%s2338_s11 + $0x28] sm:$0xff] %vm709_vm0, %v1068_v3  ;;  %1484 = vrcp.f32 %v1008_v47 }
 0x2ad   :  { %v1475_v48 = vpop.eup %1474  ;;  %1101 = vst.msk [vmem:[%s2338_s11 + $0x20] sm:$0xff] %vm709_vm0, %v1066_v61 }
 0x2ae   :  { %v1477_v49 = vpop.eup %1476  ;;  %v1072_v53 = vmul.f32 %v1475_v48, %v2110_v31  ;;  %v1384_v52 = vpop.f32.mrb[32].mxu1 }
 0x2af   :  { %v1070_v5 = vmul.f32 %v1477_v49, %v2089_v23  ;;  %1486 = vrcp.f32 %v1384_v52  ;;  %v1018_v11 = vpop.f32.mrb[33].mxu1 }
 0x2b0   :  { %1104 = vst.msk [vmem:[%s2338_s11 + $0x38] sm:$0xff] %vm709_vm0, %v1072_v53  ;;  %1488 = vrcp.f32 %v1018_v11 }
 0x2b1   :  { %v1479_v55 = vpop.eup %1478  ;;  %1103 = vst.msk [vmem:[%s2338_s11 + $0x30] sm:$0xff] %vm709_vm0, %v1070_v5 }
 0x2b2   :  { %v1481_v56 = vpop.eup %1480  ;;  %v1076_v31 = vmul.f32 %v1479_v55, %v2122_v1  ;;  %v1387_v59 = vpop.f32.mrb[34].mxu1 }
 0x2b3   :  { %v1074_v23 = vmul.f32 %v1481_v56, %v2112_v33  ;;  %1490 = vrcp.f32 %v1387_v59  ;;  %v1028_v60 = vpop.f32.mrb[35].mxu1 }
 0x2b4   :  { %1106 = vst.msk [vmem:[%s2338_s11 + $0x48] sm:$0xff] %vm709_vm0, %v1076_v31  ;;  %1492 = vrcp.f32 %v1028_v60 }
 0x2b5   :  { %v1483_v10 = vpop.eup %1482  ;;  %1105 = vst.msk [vmem:[%s2338_s11 + $0x40] sm:$0xff] %vm709_vm0, %v1074_v23 }
 0x2b6   :  { %v1485_v46 = vpop.eup %1484  ;;  %v1080_v1 = vmul.f32 %v1483_v10, %v2150_v54  ;;  %v1390_v0 = vpop.f32.mrb[36].mxu1 }
 0x2b7   :  { %v1078_v33 = vmul.f32 %v1485_v46, %v2129_v38  ;;  %1494 = vrcp.f32 %v1390_v0  ;;  %v1038_v51 = vpop.f32.mrb[37].mxu1 }
 0x2b8   :  { %1108 = vst.msk [vmem:[%s2338_s11 + $0x58] sm:$0xff] %vm709_vm0, %v1080_v1  ;;  %1496 = vrcp.f32 %v1038_v51 }
 0x2b9   :  { %v1487_v2 = vpop.eup %1486  ;;  %1107 = vst.msk [vmem:[%s2338_s11 + $0x50] sm:$0xff] %vm709_vm0, %v1078_v33 }
 0x2ba   :  { %v1489_v13 = vpop.eup %1488  ;;  %v1084_v54 = vmul.f32 %v1487_v2, %v2161_v4  ;;  %v1393_v7 = vpop.f32.mrb[38].mxu1 }
 0x2bb   :  { %v1082_v38 = vmul.f32 %v1489_v13, %v2152_v41  ;;  %1498 = vrcp.f32 %v1393_v7  ;;  %v1048_v9 = vpop.f32.mrb[39].mxu1 }
 0x2bc   :  { %1110 = vst.msk [vmem:[%s2338_s11 + $0x68] sm:$0xff] %vm709_vm0, %v1084_v54  ;;  %1500 = vrcp.f32 %v1048_v9 }
 0x2bd   :  { %v1491_v14 = vpop.eup %1490  ;;  %1109 = vst.msk [vmem:[%s2338_s11 + $0x60] sm:$0xff] %vm709_vm0, %v1082_v38 }
 0x2be   :  { %v1493_v15 = vpop.eup %1492  ;;  %v1088_v4 = vmul.f32 %v1491_v14, %v2187_v50 }
 0x2bf   :  { %v1086_v16 = vmul.f32 %v1493_v15, %v2168_v8 }
 0x2c0   :  { %1112 = vst.msk [vmem:[%s2338_s11 + $0x78] sm:$0xff] %vm709_vm0, %v1088_v4 }
 0x2c1   :  { %v1495_v41 = vpop.eup %1494  ;;  %1111 = vst.msk [vmem:[%s2338_s11 + $0x70] sm:$0xff] %vm709_vm0, %v1086_v16 }
 0x2c2   :  { %v1497_v17 = vpop.eup %1496  ;;  %v1092_v18 = vmul.f32 %v1495_v41, %v2197_v19 }
 0x2c3   :  { %v1090_v21 = vmul.f32 %v1497_v17, %v2189_v12 }
 0x2c4   :  { %1114 = vst.msk [vmem:[%s2338_s11 + $0x88] sm:$0xff] %vm709_vm0, %v1092_v18 }
 0x2c5   :  { %v1499_v8 = vpop.eup %1498  ;;  %1113 = vst.msk [vmem:[%s2338_s11 + $0x80] sm:$0xff] %vm709_vm0, %v1090_v21 }
 0x2c6   :  { %v1501_v50 = vpop.eup %1500  ;;  %v1096_v20 = vmul.f32 %v1499_v8, %v2223_v27 }
 0x2c7   :  { %v1094_v25 = vmul.f32 %v1501_v50, %v2204_v58 }
 0x2c8   :  { %1116 = vst.msk [vmem:[%s2338_s11 + $0x98] sm:$0xff] %vm709_vm0, %v1096_v20 }
 0x2c9   :  { %1115 = vst.msk [vmem:[%s2338_s11 + $0x90] sm:$0xff] %vm709_vm0, %v1094_v25 }

// kernel: encoder_layer_forward.4
= control target key start
LH: loop header
LB: loop body
LE: loop exit
PB: predicated region body
PF: predicated region fallthrough
CT: control target
= control target key end

     0   :  { %s1200_s2 = inlined_call_operand.vmem [shape: bf16[128,128], index: 2, kind: input, shape index: {}]   ;;  %s1201_s0 = inlined_call_operand.vmem [shape: f32[160,128], index: 0, kind: input, shape index: {}]   ;;  %s1202_s3 = inlined_call_operand.vmem [shape: f32[1,128], index: 3, kind: input, shape index: {}]   ;;  %s1203_s1 = inlined_call_operand.vmem [shape: f32[160,128], index: 1, kind: input, shape index: {}]   ;;  %s1204_s4 = inlined_call_operand.vmem [shape: f32[1,128], index: 4, kind: input, shape index: {}]   ;;  %s1205_s5 = inlined_call_operand.vmem [shape: f32[1,128], index: 5, kind: input, shape index: {}]   ;;  %s1206_s6 = inlined_call_operand.vmem [shape: f32[160,128], index: 6, kind: output, shape index: {}]  }
   0x1   :  { %v658_v0 = vld [vmem:[%s1200_s2] sm:$0xff]   ;;  %v659_v1 = vld [vmem:[%s1200_s2 + $0x8] sm:$0xff]   ;;  %v660_v2 = vld [vmem:[%s1200_s2 + $0x10] sm:$0xff]  }
   0x2   :  { %606 = vmatprep.subr.bf16.mxu0 %v658_v0  ;;  %642 = vmatprep.subr.bf16.mxu1 %v658_v0  ;;  %v661_v3 = vld [vmem:[%s1200_s2 + $0x18] sm:$0xff]   ;;  %v24_v4 = vld [vmem:[%s1201_s0] sm:$0xff]  ;;  %v25_v5 = vld [vmem:[%s1201_s0 + $0x8] sm:$0xff] }
   0x3   :  { %607 = vmatpush3.bf16.msra.mxu0 %v658_v0  ;;  %650 = vmatpush3.bf16.msra.mxu1 %v658_v0  ;;  %v36_v6 = vld [vmem:[%s1201_s0 + $0x60] sm:$0xff]  ;;  %v44_v7 = vpack.c.bf16 %v25_v5, %v24_v4  ;;  %v37_v8 = vld [vmem:[%s1201_s0 + $0x68] sm:$0xff]  ;;  %v664_v12 = vld [vmem:[%s1200_s2 + $0x30] sm:$0xff]  }
   0x4   :  { %608 = vmatprep.subr.bf16.mxu0 %v659_v1  ;;  %643 = vmatprep.subr.bf16.mxu1 %v659_v1  ;;  %v50_v9 = vpack.c.bf16 %v37_v8, %v36_v6  ;;  %v662_v10 = vld [vmem:[%s1200_s2 + $0x20] sm:$0xff]   ;;  %v663_v11 = vld [vmem:[%s1200_s2 + $0x28] sm:$0xff]   ;;  %v665_v13 = vld [vmem:[%s1200_s2 + $0x38] sm:$0xff]  }
   0x5   :  { %622 = vmatprep.mubr.bf16.mxu0 %v44_v7  ;;  %v26_v14 = vld [vmem:[%s1201_s0 + $0x10] sm:$0xff]  ;;  %v27_v15 = vld [vmem:[%s1201_s0 + $0x18] sm:$0xff]  ;;  %v28_v18 = vld [vmem:[%s1201_s0 + $0x20] sm:$0xff] }
   0x6   :  { %634 = vmatprep.mubr.bf16.mxu1 %v50_v9  ;;  %v38_v16 = vld [vmem:[%s1201_s0 + $0x70] sm:$0xff]  ;;  %v39_v17 = vld [vmem:[%s1201_s0 + $0x78] sm:$0xff]  ;;  %v29_v19 = vld [vmem:[%s1201_s0 + $0x28] sm:$0xff]  ;;  %v45_v22 = vpack.c.bf16 %v27_v15, %v26_v14 }
   0x7   :  { %609 = vmatpush3.bf16.msra.mxu0 %v659_v1  ;;  %651 = vmatpush3.bf16.msra.mxu1 %v659_v1  ;;  %v40_v20 = vld [vmem:[%s1201_s0 + $0x80] sm:$0xff]  ;;  %v41_v21 = vld [vmem:[%s1201_s0 + $0x88] sm:$0xff]  ;;  %v51_v23 = vpack.c.bf16 %v39_v17, %v38_v16  ;;  %v46_v24 = vpack.c.bf16 %v29_v19, %v28_v18  ;;  %v30_v26 = vld [vmem:[%s1201_s0 + $0x30] sm:$0xff] }
   0x8   :  { %610 = vmatprep.subr.bf16.mxu0 %v660_v2  ;;  %644 = vmatprep.subr.bf16.mxu1 %v660_v2  ;;  %v52_v25 = vpack.c.bf16 %v41_v21, %v40_v20  ;;  %v31_v27 = vld [vmem:[%s1201_s0 + $0x38] sm:$0xff]  ;;  %v42_v28 = vld [vmem:[%s1201_s0 + $0x90] sm:$0xff]  ;;  %v32_v30 = vld [vmem:[%s1201_s0 + $0x40] sm:$0xff] }
   0x9   :  { %v43_v29 = vld [vmem:[%s1201_s0 + $0x98] sm:$0xff]  ;;  %v33_v31 = vld [vmem:[%s1201_s0 + $0x48] sm:$0xff]  ;;  %v47_v32 = vpack.c.bf16 %v31_v27, %v30_v26  ;;  %v34_v35 = vld [vmem:[%s1201_s0 + $0x50] sm:$0xff] }
   0xa   :  { %v53_v33 = vpack.c.bf16 %v43_v29, %v42_v28  ;;  %v48_v34 = vpack.c.bf16 %v33_v31, %v32_v30  ;;  %v35_v36 = vld [vmem:[%s1201_s0 + $0x58] sm:$0xff]  ;;  %v828_v38 = vld [vmem:[%s1202_s3] ss:$0 sm:$0xff]  ;;  %v252_v41 = vld [vmem:[%s1203_s1 + $0x70] sm:$0xff] }
   0xb   :  { %611 = vmatpush3.bf16.msra.mxu0 %v660_v2  ;;  %652 = vmatpush3.bf16.msra.mxu1 %v660_v2  ;;  %v49_v37 = vpack.c.bf16 %v35_v36, %v34_v35  ;;  %v240_v42 = vld [vmem:[%s1203_s1 + $0x10] sm:$0xff]  ;;  %v241_v55 = vld [vmem:[%s1203_s1 + $0x18] sm:$0xff]  ;;  %v238_v56 = vld [vmem:[%s1203_s1] sm:$0xff] }
   0xc   :  { %612 = vmatprep.subr.bf16.mxu0 %v661_v3  ;;  %645 = vmatprep.subr.bf16.mxu1 %v661_v3  ;;  %v253_v61 = vld [vmem:[%s1203_s1 + $0x78] sm:$0xff]  ;;  %v250_v62 = vld [vmem:[%s1203_s1 + $0x60] sm:$0xff]  ;;  %v244_v16 = vld [vmem:[%s1203_s1 + $0x30] sm:$0xff] }
   0xd   :  { %v245_v15 = vld [vmem:[%s1203_s1 + $0x38] sm:$0xff]  ;;  %v243_v28 = vld [vmem:[%s1203_s1 + $0x28] sm:$0xff]  ;;  %v242_v29 = vld [vmem:[%s1203_s1 + $0x20] sm:$0xff] }
   0xe   :  { %v254_v31 = vld [vmem:[%s1203_s1 + $0x80] sm:$0xff] }
   0xf   :  { %613 = vmatpush3.bf16.msra.mxu0 %v661_v3  ;;  %653 = vmatpush3.bf16.msra.mxu1 %v661_v3 }
  0x10   :  { %614 = vmatprep.subr.bf16.mxu0 %v662_v10  ;;  %646 = vmatprep.subr.bf16.mxu1 %v662_v10 }
  0x13   :  { %615 = vmatpush3.bf16.msra.mxu0 %v662_v10  ;;  %654 = vmatpush3.bf16.msra.mxu1 %v662_v10 }
  0x14   :  { %616 = vmatprep.subr.bf16.mxu0 %v663_v11  ;;  %647 = vmatprep.subr.bf16.mxu1 %v663_v11 }
  0x17   :  { %617 = vmatpush3.bf16.msra.mxu0 %v663_v11  ;;  %655 = vmatpush3.bf16.msra.mxu1 %v663_v11  ;;  %v251_v11 = vld [vmem:[%s1203_s1 + $0x68] sm:$0xff] }
  0x18   :  { %618 = vmatprep.subr.bf16.mxu0 %v664_v12  ;;  %648 = vmatprep.subr.bf16.mxu1 %v664_v12 }
  0x1b   :  { %619 = vmatpush3.bf16.msra.mxu0 %v664_v12  ;;  %656 = vmatpush3.bf16.msra.mxu1 %v664_v12  ;;  %v239_v12 = vld [vmem:[%s1203_s1 + $0x8] sm:$0xff] }
  0x1c   :  { %620 = vmatprep.subr.bf16.mxu0 %v665_v13  ;;  %649 = vmatprep.subr.bf16.mxu1 %v665_v13 }
  0x1f   :  { %621 = vmatpush3.bf16.msra.mxu0 %v665_v13  ;;  %657 = vmatpush3.bf16.msra.mxu1 %v665_v13 }
  0x22   :  { %623 = vmatmul.mubr.bf16.vlgmr.msra.gmra.mrb[0].mxu0 %v45_v22  ;;  %635 = vmatmul.mubr.bf16.vlgmr.msra.gmra.mrb[0].mxu1 %v51_v23 }
  0x23   :  { %626 = vmatprep.mubr.bf16.mxu0 %v46_v24  ;;  %638 = vmatprep.mubr.bf16.mxu1 %v52_v25 }
  0x2a   :  { %627 = vmatmul.mubr.bf16.gmra.mrb[4].mxu0 %v47_v32  ;;  %639 = vmatmul.mubr.bf16.gmra.mrb[4].mxu1 %v53_v33  ;;  %v255_v32 = vld [vmem:[%s1203_s1 + $0x88] sm:$0xff] }
  0x2b   :  { %630 = vmatprep.mubr.bf16.mxu0 %v48_v34 }
  0x32   :  { %631 = vmatmul.mubr.bf16.gmra.mrb[8].mxu0 %v49_v37 }
  0xf5   :  { %v624_v39 = vpop.f32.mrb[0].mxu0  ;;  %v636_v40 = vpop.f32.mrb[0].mxu1 }
  0xf6   :  { %v168_v43 = vadd.f32 %v624_v39, %v828_v38  ;;  %v216_v44 = vadd.f32 %v636_v40, %v828_v38  ;;  %v159_v45 = vpop.f32.mrb[1].mxu0  ;;  %v207_v46 = vpop.f32.mrb[1].mxu1  ;;  %v249_v40 = vld [vmem:[%s1203_s1 + $0x58] sm:$0xff] }
  0xf7   :  { %v625_v47 = vpop.f32.mrb[2].mxu0  ;;  %v637_v48 = vpop.f32.mrb[2].mxu1  ;;  %v160_v49 = vadd.f32 %v828_v38, %v159_v45  ;;  %v208_v57 = vadd.f32 %v828_v38, %v207_v46  ;;  %v247_v46 = vld [vmem:[%s1203_s1 + $0x48] sm:$0xff] }
  0xf8   :  { %v171_v50 = vadd.f32 %v625_v47, %v828_v38  ;;  %v162_v51 = vpop.f32.mrb[3].mxu0  ;;  %v210_v52 = vpop.f32.mrb[3].mxu1  ;;  %v840_v53 = vadd.f32 %v252_v41, %v216_v44  ;;  %v842_v54 = vadd.f32 %v240_v42, %v168_v43  ;;  %v219_v58 = vadd.f32 %v637_v48, %v828_v38  ;;  %v248_v41 = vld [vmem:[%s1203_s1 + $0x50] sm:$0xff]  ;;  %v246_v47 = vld [vmem:[%s1203_s1 + $0x40] sm:$0xff] }
  0xf9   :  { %v856_v60 = vadd.f32 %v238_v56, %v160_v49  ;;  %v163_v5 = vadd.f32 %v828_v38, %v162_v51  ;;  %v211_v6 = vadd.f32 %v828_v38, %v210_v52  ;;  %v870_v8 = vadd.f32 %v250_v62, %v208_v57  ;;  %v257_v52 = vld [vmem:[%s1203_s1 + $0x98] sm:$0xff] }
  0xfa   :  { %306 = vadd.xlane.f32.xlu0 %v840_v53  ;;  %282 = vadd.xlane.f32.xlu1 %v842_v54  ;;  %v854_v59 = vadd.f32 %v241_v55, %v171_v50  ;;  %v868_v7 = vadd.f32 %v253_v61, %v219_v58  ;;  %v256_v55 = vld [vmem:[%s1203_s1 + $0x90] sm:$0xff] }
  0xfb   :  { %v888_v17 = vadd.f32 %v251_v11, %v211_v6  ;;  %v890_v18 = vadd.f32 %v239_v12, %v163_v5 }
  0xfd   :  { %v628_v63 = vpop.f32.mrb[4].mxu0  ;;  %v640_v0 = vpop.f32.mrb[4].mxu1 }
  0xfe   :  { %284 = vadd.xlane.f32.xlu1 %v854_v59  ;;  %278 = vadd.xlane.f32.xlu0 %v856_v60  ;;  %v175_v1 = vpop.f32.mrb[5].mxu0  ;;  %v223_v2 = vpop.f32.mrb[5].mxu1  ;;  %v184_v13 = vadd.f32 %v628_v63, %v828_v38  ;;  %v232_v48 = vadd.f32 %v640_v0, %v828_v38 }
  0xff   :  { %v629_v3 = vpop.f32.mrb[6].mxu0  ;;  %v641_v4 = vpop.f32.mrb[6].mxu1  ;;  %v176_v24 = vadd.f32 %v828_v38, %v175_v1  ;;  %v224_v27 = vadd.f32 %v828_v38, %v223_v2 }
 0x100   :  { %v178_v9 = vpop.f32.mrb[7].mxu0  ;;  %v226_v10 = vpop.f32.mrb[7].mxu1  ;;  %v187_v14 = vadd.f32 %v629_v3, %v828_v38  ;;  %v896_v21 = vadd.f32 %v244_v16, %v184_v13  ;;  %v235_v49 = vadd.f32 %v641_v4, %v828_v38  ;;  %v966_v57 = vadd.f32 %v256_v55, %v232_v48 }
 0x101   :  { %v179_v25 = vadd.f32 %v828_v38, %v178_v9  ;;  %v227_v30 = vadd.f32 %v828_v38, %v226_v10  ;;  %v918_v34 = vadd.f32 %v242_v29, %v176_v24  ;;  %v920_v35 = vadd.f32 %v254_v31, %v224_v27 }
 0x102   :  { %308 = vadd.xlane.f32.xlu1 %v868_v7  ;;  %302 = vadd.xlane.f32.xlu0 %v870_v8  ;;  %v894_v20 = vadd.f32 %v245_v15, %v187_v14  ;;  %v964_v56 = vadd.f32 %v257_v52, %v235_v49 }
 0x103   :  { %v916_v33 = vadd.f32 %v243_v28, %v179_v25  ;;  %v926_v39 = vadd.f32 %v255_v32, %v227_v30 }
 0x105   :  { %v632_v19 = vpop.f32.mrb[8].mxu0 }
 0x106   :  { %304 = vadd.xlane.f32.xlu1 %v888_v17  ;;  %280 = vadd.xlane.f32.xlu0 %v890_v18  ;;  %v191_v22 = vpop.f32.mrb[9].mxu0  ;;  %v200_v36 = vadd.f32 %v632_v19, %v828_v38 }
 0x107   :  { %v633_v23 = vpop.f32.mrb[10].mxu0  ;;  %v192_v44 = vadd.f32 %v828_v38, %v191_v22 }
 0x108   :  { %v194_v26 = vpop.f32.mrb[11].mxu0  ;;  %v203_v37 = vadd.f32 %v633_v23, %v828_v38  ;;  %v938_v43 = vadd.f32 %v248_v41, %v200_v36 }
 0x109   :  { %v195_v45 = vadd.f32 %v828_v38, %v194_v26  ;;  %v954_v51 = vadd.f32 %v246_v47, %v192_v44 }
 0x10a   :  { %292 = vadd.xlane.f32.xlu1 %v894_v20  ;;  %290 = vadd.xlane.f32.xlu0 %v896_v21  ;;  %v936_v42 = vadd.f32 %v249_v40, %v203_v37 }
 0x10b   :  { %v952_v50 = vadd.f32 %v247_v46, %v195_v45 }
 0x10e   :  { %288 = vadd.xlane.f32.xlu1 %v916_v33  ;;  %286 = vadd.xlane.f32.xlu0 %v918_v34 }
 0x112   :  { %312 = vadd.xlane.f32.xlu1 %v926_v39  ;;  %310 = vadd.xlane.f32.xlu0 %v920_v35 }
 0x116   :  { %300 = vadd.xlane.f32.xlu1 %v936_v42  ;;  %298 = vadd.xlane.f32.xlu0 %v938_v43 }
 0x11a   :  { %296 = vadd.xlane.f32.xlu1 %v952_v50  ;;  %294 = vadd.xlane.f32.xlu0 %v954_v51 }
 0x11e   :  { %316 = vadd.xlane.f32.xlu1 %v964_v56  ;;  %314 = vadd.xlane.f32.xlu0 %v966_v57 }
 0x187   :  { %v307_v38 = vpop.xlane.xlu0 %306  ;;  %v283_v58 = vpop.xlane.xlu1 %282 }
 0x188   :  { %v333_v61 = vmul.f32 0.0078125, %v307_v38  ;;  %v321_v62 = vmul.f32 0.0078125, %v283_v58 }
 0x18a   :  { %v971_v63 = vsub.f32 %v842_v54, %v321_v62  ;;  %v974_v2 = vsub.f32 %v840_v53, %v333_v61 }
 0x18b   :  { %v285_v0 = vpop.xlane.xlu1 %284  ;;  %v279_v1 = vpop.xlane.xlu0 %278 }
 0x18c   :  { %v322_v3 = vmul.f32 0.0078125, %v285_v0  ;;  %v319_v4 = vmul.f32 0.0078125, %v279_v1  ;;  %v361_v5 = vmul.f32 %v971_v63, %v971_v63  ;;  %v373_v13 = vmul.f32 %v974_v2, %v974_v2 }
 0x18e   :  { %v979_v6 = vsub.f32 %v854_v59, %v322_v3  ;;  %383 = vadd.xlane.f32.xlu0 %v361_v5  ;;  %v982_v9 = vsub.f32 %v856_v60, %v319_v4 }
 0x18f   :  { %v309_v10 = vpop.xlane.xlu1 %308  ;;  %v303_v54 = vpop.xlane.xlu0 %302 }
 0x190   :  { %v334_v11 = vmul.f32 0.0078125, %v309_v10  ;;  %v331_v12 = vmul.f32 0.0078125, %v303_v54  ;;  %v362_v53 = vmul.f32 %v979_v6, %v979_v6  ;;  %v359_v60 = vmul.f32 %v982_v9, %v982_v9 }
 0x192   :  { %v989_v14 = vsub.f32 %v868_v7, %v334_v11  ;;  %385 = vadd.xlane.f32.xlu1 %v362_v53  ;;  %407 = vadd.xlane.f32.xlu0 %v373_v13  ;;  %v994_v16 = vsub.f32 %v870_v8, %v331_v12 }
 0x193   :  { %v305_v59 = vpop.xlane.xlu1 %304  ;;  %v281_v15 = vpop.xlane.xlu0 %280 }
 0x194   :  { %v332_v19 = vmul.f32 0.0078125, %v305_v59  ;;  %v320_v22 = vmul.f32 0.0078125, %v281_v15  ;;  %v374_v23 = vmul.f32 %v989_v14, %v989_v14  ;;  %v371_v8 = vmul.f32 %v994_v16, %v994_v16 }
 0x196   :  { %v999_v24 = vsub.f32 %v890_v18, %v320_v22  ;;  %409 = vadd.xlane.f32.xlu1 %v374_v23  ;;  %379 = vadd.xlane.f32.xlu0 %v359_v60  ;;  %v1002_v7 = vsub.f32 %v888_v17, %v332_v19 }
 0x197   :  { %v293_v25 = vpop.xlane.xlu1 %292  ;;  %v291_v26 = vpop.xlane.xlu0 %290 }
 0x198   :  { %v326_v27 = vmul.f32 0.0078125, %v293_v25  ;;  %v325_v28 = vmul.f32 0.0078125, %v291_v26  ;;  %v360_v29 = vmul.f32 %v999_v24, %v999_v24  ;;  %v372_v17 = vmul.f32 %v1002_v7, %v1002_v7 }
 0x19a   :  { %v1009_v30 = vsub.f32 %v896_v21, %v325_v28  ;;  %403 = vadd.xlane.f32.xlu0 %v371_v8  ;;  %381 = vadd.xlane.f32.xlu1 %v360_v29  ;;  %v1014_v32 = vsub.f32 %v894_v20, %v326_v27 }
 0x19b   :  { %v289_v18 = vpop.xlane.xlu1 %288  ;;  %v287_v31 = vpop.xlane.xlu0 %286 }
 0x19c   :  { %v324_v36 = vmul.f32 0.0078125, %v289_v18  ;;  %v323_v37 = vmul.f32 0.0078125, %v287_v31  ;;  %v365_v40 = vmul.f32 %v1009_v30, %v1009_v30  ;;  %v366_v20 = vmul.f32 %v1014_v32, %v1014_v32 }
 0x19e   :  { %v1019_v41 = vsub.f32 %v918_v34, %v323_v37  ;;  %405 = vadd.xlane.f32.xlu1 %v372_v17  ;;  %391 = vadd.xlane.f32.xlu0 %v365_v40  ;;  %v1022_v21 = vsub.f32 %v916_v33, %v324_v36 }
 0x19f   :  { %v313_v44 = vpop.xlane.xlu1 %312  ;;  %v311_v45 = vpop.xlane.xlu0 %310 }
 0x1a0   :  { %v336_v46 = vmul.f32 0.0078125, %v313_v44  ;;  %v335_v47 = vmul.f32 0.0078125, %v311_v45  ;;  %v363_v48 = vmul.f32 %v1019_v41, %v1019_v41  ;;  %v364_v33 = vmul.f32 %v1022_v21, %v1022_v21 }
 0x1a2   :  { %v1029_v49 = vsub.f32 %v920_v35, %v335_v47  ;;  %393 = vadd.xlane.f32.xlu1 %v366_v20  ;;  %387 = vadd.xlane.f32.xlu0 %v363_v48  ;;  %v1034_v55 = vsub.f32 %v926_v39, %v336_v46  ;;  %v1073_v47 = vld [vmem:[%s1204_s4] ss:$0 sm:$0xff] }
 0x1a3   :  { %v301_v34 = vpop.xlane.xlu1 %300  ;;  %v299_v52 = vpop.xlane.xlu0 %298 }
 0x1a4   :  { %v330_v38 = vmul.f32 0.0078125, %v301_v34  ;;  %v329_v58 = vmul.f32 0.0078125, %v299_v52  ;;  %v375_v61 = vmul.f32 %v1029_v49, %v1029_v49  ;;  %v376_v39 = vmul.f32 %v1034_v55, %v1034_v55 }
 0x1a6   :  { %v1039_v62 = vsub.f32 %v938_v43, %v329_v58  ;;  %389 = vadd.xlane.f32.xlu1 %v364_v33  ;;  %411 = vadd.xlane.f32.xlu0 %v375_v61  ;;  %v1042_v35 = vsub.f32 %v936_v42, %v330_v38  ;;  %v1079_v38 = vld [vmem:[%s1205_s5] ss:$0 sm:$0xff] }
 0x1a7   :  { %v297_v0 = vpop.xlane.xlu1 %296  ;;  %v295_v1 = vpop.xlane.xlu0 %294 }
 0x1a8   :  { %v328_v3 = vmul.f32 0.0078125, %v297_v0  ;;  %v327_v4 = vmul.f32 0.0078125, %v295_v1  ;;  %v369_v5 = vmul.f32 %v1039_v62, %v1039_v62  ;;  %v370_v42 = vmul.f32 %v1042_v35, %v1042_v35 }
 0x1aa   :  { %v1049_v10 = vsub.f32 %v954_v51, %v327_v4  ;;  %413 = vadd.xlane.f32.xlu1 %v376_v39  ;;  %399 = vadd.xlane.f32.xlu0 %v369_v5  ;;  %v1054_v11 = vsub.f32 %v952_v50, %v328_v3 }
 0x1ab   :  { %v317_v43 = vpop.xlane.xlu1 %316  ;;  %v315_v54 = vpop.xlane.xlu0 %314 }
 0x1ac   :  { %v338_v12 = vmul.f32 0.0078125, %v317_v43  ;;  %v337_v53 = vmul.f32 0.0078125, %v315_v54  ;;  %v367_v13 = vmul.f32 %v1049_v10, %v1049_v10  ;;  %v368_v15 = vmul.f32 %v1054_v11, %v1054_v11 }
 0x1ae   :  { %v1059_v59 = vsub.f32 %v966_v57, %v337_v53  ;;  %401 = vadd.xlane.f32.xlu1 %v370_v42  ;;  %395 = vadd.xlane.f32.xlu0 %v367_v13  ;;  %v1062_v51 = vsub.f32 %v964_v56, %v338_v12 }
 0x1b0   :  { %v377_v50 = vmul.f32 %v1059_v59, %v1059_v59  ;;  %v378_v60 = vmul.f32 %v1062_v51, %v1062_v51 }
 0x1b2   :  { %397 = vadd.xlane.f32.xlu1 %v368_v15  ;;  %415 = vadd.xlane.f32.xlu0 %v377_v50 }
 0x1b6   :  { %417 = vadd.xlane.f32.xlu1 %v378_v60 }
 0x21b   :  { %v384_v19 = vpop.xlane.xlu0 %383 }
 0x21c   :  { %v421_v57 = vmul.f32 0.0078125, %v384_v19 }
 0x21e   :  { %v441_v22 = vadd.f32 1e-05, %v421_v57 }
 0x21f   :  { %v386_v23 = vpop.xlane.xlu1 %385  ;;  %v408_v25 = vpop.xlane.xlu0 %407 }
 0x220   :  { %666 = vrsqrt.f32 %v441_v22  ;;  %v422_v56 = vmul.f32 0.0078125, %v386_v23  ;;  %v433_v26 = vmul.f32 0.0078125, %v408_v25 }
 0x222   :  { %v442_v27 = vadd.f32 1e-05, %v422_v56  ;;  %v453_v28 = vadd.f32 1e-05, %v433_v26 }
 0x223   :  { %v410_v8 = vpop.xlane.xlu1 %409  ;;  %v380_v29 = vpop.xlane.xlu0 %379 }
 0x224   :  { %668 = vrsqrt.f32 %v442_v27  ;;  %v434_v18 = vmul.f32 0.0078125, %v410_v8  ;;  %v419_v31 = vmul.f32 0.0078125, %v380_v29 }
 0x225   :  { %670 = vrsqrt.f32 %v453_v28 }
 0x226   :  { %v454_v17 = vadd.f32 1e-05, %v434_v18  ;;  %v439_v36 = vadd.f32 1e-05, %v419_v31 }
 0x227   :  { %v382_v37 = vpop.xlane.xlu1 %381  ;;  %v404_v40 = vpop.xlane.xlu0 %403 }
 0x228   :  { %672 = vrsqrt.f32 %v454_v17  ;;  %v420_v44 = vmul.f32 0.0078125, %v382_v37  ;;  %v431_v45 = vmul.f32 0.0078125, %v404_v40 }
 0x229   :  { %674 = vrsqrt.f32 %v439_v36 }
 0x22a   :  { %v667_v46 = vpop.eup %666  ;;  %v440_v20 = vadd.f32 1e-05, %v420_v44  ;;  %v451_v48 = vadd.f32 1e-05, %v431_v45 }
 0x22b   :  { %v481_v34 = vmul.f32 %v667_v46, %v971_v63  ;;  %v406_v52 = vpop.xlane.xlu1 %405  ;;  %v392_v33 = vpop.xlane.xlu0 %391 }
 0x22c   :  { %676 = vrsqrt.f32 %v440_v20  ;;  %v432_v58 = vmul.f32 0.0078125, %v406_v52  ;;  %v425_v61 = vmul.f32 0.0078125, %v392_v33 }
 0x22d   :  { %v508_v0 = vmul.f32 %v1073_v47, %v481_v34  ;;  %678 = vrsqrt.f32 %v451_v48 }
 0x22e   :  { %v669_v1 = vpop.eup %668  ;;  %v452_v3 = vadd.f32 1e-05, %v432_v58  ;;  %v445_v4 = vadd.f32 1e-05, %v425_v61 }
 0x22f   :  { %v671_v39 = vpop.eup %670  ;;  %v535_v5 = vadd.f32 %v1079_v38, %v508_v0  ;;  %v482_v63 = vmul.f32 %v669_v1, %v979_v6  ;;  %v394_v43 = vpop.xlane.xlu1 %393 }
 0x230   :  { %v388_v54 = vpop.xlane.xlu0 %387  ;;  %v493_v42 = vmul.f32 %v671_v39, %v974_v2  ;;  %680 = vrsqrt.f32 %v452_v3  ;;  %v426_v12 = vmul.f32 0.0078125, %v394_v43 }
 0x231   :  { %v423_v53 = vmul.f32 0.0078125, %v388_v54  ;;  %555 = vst [vmem:[%s1206_s6 + $0x10] sm:$0xff] %v535_v5  ;;  %v509_v13 = vmul.f32 %v1073_v47, %v482_v63  ;;  %682 = vrsqrt.f32 %v445_v4 }
 0x232   :  { %v673_v15 = vpop.eup %672  ;;  %v520_v50 = vmul.f32 %v1073_v47, %v493_v42  ;;  %v446_v60 = vadd.f32 1e-05, %v426_v12 }
 0x233   :  { %v443_v19 = vadd.f32 1e-05, %v423_v53  ;;  %v675_v6 = vpop.eup %674  ;;  %v536_v57 = vadd.f32 %v1079_v38, %v509_v13  ;;  %v494_v2 = vmul.f32 %v673_v15, %v989_v14  ;;  %v390_v22 = vpop.xlane.xlu1 %389 }
 0x234   :  { %v412_v23 = vpop.xlane.xlu0 %411  ;;  %v547_v25 = vadd.f32 %v1079_v38, %v520_v50  ;;  %v479_v56 = vmul.f32 %v675_v6, %v982_v9  ;;  %684 = vrsqrt.f32 %v446_v60  ;;  %v424_v26 = vmul.f32 0.0078125, %v390_v22 }
 0x235   :  { %556 = vst [vmem:[%s1206_s6 + $0x18] sm:$0xff] %v536_v57  ;;  %v521_v27 = vmul.f32 %v1073_v47, %v494_v2  ;;  %686 = vrsqrt.f32 %v443_v19  ;;  %v435_v28 = vmul.f32 0.0078125, %v412_v23 }
 0x236   :  { %v677_v8 = vpop.eup %676  ;;  %567 = vst [vmem:[%s1206_s6 + $0x70] sm:$0xff] %v547_v25  ;;  %v506_v14 = vmul.f32 %v1073_v47, %v479_v56  ;;  %v444_v29 = vadd.f32 1e-05, %v424_v26 }
 0x237   :  { %v679_v18 = vpop.eup %678  ;;  %v548_v9 = vadd.f32 %v1079_v38, %v521_v27  ;;  %v480_v31 = vmul.f32 %v677_v8, %v999_v24  ;;  %v455_v17 = vadd.f32 1e-05, %v435_v28  ;;  %v414_v36 = vpop.xlane.xlu1 %413 }
 0x238   :  { %v400_v37 = vpop.xlane.xlu0 %399  ;;  %v533_v40 = vadd.f32 %v1079_v38, %v506_v14  ;;  %v491_v44 = vmul.f32 %v679_v18, %v994_v16  ;;  %688 = vrsqrt.f32 %v444_v29  ;;  %v436_v45 = vmul.f32 0.0078125, %v414_v36 }
 0x239   :  { %568 = vst [vmem:[%s1206_s6 + $0x78] sm:$0xff] %v548_v9  ;;  %v507_v46 = vmul.f32 %v1073_v47, %v480_v31  ;;  %690 = vrsqrt.f32 %v455_v17  ;;  %v429_v20 = vmul.f32 0.0078125, %v400_v37 }
 0x23a   :  { %v681_v48 = vpop.eup %680  ;;  %553 = vst [vmem:[%s1206_s6] sm:$0xff] %v533_v40  ;;  %v518_v24 = vmul.f32 %v1073_v47, %v491_v44  ;;  %v456_v34 = vadd.f32 1e-05, %v436_v45 }
 0x23b   :  { %v683_v52 = vpop.eup %682  ;;  %v534_v16 = vadd.f32 %v1079_v38, %v507_v46  ;;  %v492_v33 = vmul.f32 %v681_v48, %v1002_v7  ;;  %v449_v58 = vadd.f32 1e-05, %v429_v20  ;;  %v402_v61 = vpop.xlane.xlu1 %401 }
 0x23c   :  { %v396_v0 = vpop.xlane.xlu0 %395  ;;  %v545_v1 = vadd.f32 %v1079_v38, %v518_v24  ;;  %v485_v3 = vmul.f32 %v683_v52, %v1009_v30  ;;  %692 = vrsqrt.f32 %v456_v34  ;;  %v430_v4 = vmul.f32 0.0078125, %v402_v61 }
 0x23d   :  { %554 = vst [vmem:[%s1206_s6 + $0x8] sm:$0xff] %v534_v16  ;;  %v519_v39 = vmul.f32 %v1073_v47, %v492_v33  ;;  %694 = vrsqrt.f32 %v449_v58  ;;  %v427_v5 = vmul.f32 0.0078125, %v396_v0 }
 0x23e   :  { %v685_v63 = vpop.eup %684  ;;  %565 = vst [vmem:[%s1206_s6 + $0x60] sm:$0xff] %v545_v1  ;;  %v512_v7 = vmul.f32 %v1073_v47, %v485_v3  ;;  %v450_v43 = vadd.f32 1e-05, %v430_v4 }
 0x23f   :  { %v687_v54 = vpop.eup %686  ;;  %v546_v30 = vadd.f32 %v1079_v38, %v519_v39  ;;  %v486_v42 = vmul.f32 %v685_v63, %v1014_v32  ;;  %v447_v12 = vadd.f32 1e-05, %v427_v5  ;;  %v398_v53 = vpop.xlane.xlu1 %397 }
 0x240   :  { %v416_v13 = vpop.xlane.xlu0 %415  ;;  %v539_v15 = vadd.f32 %v1079_v38, %v512_v7  ;;  %v483_v50 = vmul.f32 %v687_v54, %v1019_v41  ;;  %696 = vrsqrt.f32 %v450_v43  ;;  %v428_v60 = vmul.f32 0.0078125, %v398_v53 }
 0x241   :  { %566 = vst [vmem:[%s1206_s6 + $0x68] sm:$0xff] %v546_v30  ;;  %v513_v19 = vmul.f32 %v1073_v47, %v486_v42  ;;  %698 = vrsqrt.f32 %v447_v12  ;;  %v437_v6 = vmul.f32 0.0078125, %v416_v13 }
 0x242   :  { %v689_v57 = vpop.eup %688  ;;  %559 = vst [vmem:[%s1206_s6 + $0x30] sm:$0xff] %v539_v15  ;;  %v510_v32 = vmul.f32 %v1073_v47, %v483_v50  ;;  %v448_v2 = vadd.f32 1e-05, %v428_v60 }
 0x243   :  { %v691_v22 = vpop.eup %690  ;;  %v540_v41 = vadd.f32 %v1079_v38, %v513_v19  ;;  %v484_v23 = vmul.f32 %v689_v57, %v1022_v21  ;;  %v457_v25 = vadd.f32 1e-05, %v437_v6  ;;  %v418_v56 = vpop.xlane.xlu1 %417 }
 0x244   :  { %v537_v26 = vadd.f32 %v1079_v38, %v510_v32  ;;  %v495_v27 = vmul.f32 %v691_v22, %v1029_v49  ;;  %700 = vrsqrt.f32 %v448_v2  ;;  %v438_v28 = vmul.f32 0.0078125, %v418_v56 }
 0x245   :  { %560 = vst [vmem:[%s1206_s6 + $0x38] sm:$0xff] %v540_v41  ;;  %v511_v8 = vmul.f32 %v1073_v47, %v484_v23  ;;  %702 = vrsqrt.f32 %v457_v25 }
 0x246   :  { %v693_v14 = vpop.eup %692  ;;  %557 = vst [vmem:[%s1206_s6 + $0x20] sm:$0xff] %v537_v26  ;;  %v522_v21 = vmul.f32 %v1073_v47, %v495_v27  ;;  %v458_v29 = vadd.f32 1e-05, %v438_v28 }
 0x247   :  { %v695_v18 = vpop.eup %694  ;;  %v538_v49 = vadd.f32 %v1079_v38, %v511_v8  ;;  %v496_v9 = vmul.f32 %v693_v14, %v1034_v55 }
 0x248   :  { %v549_v31 = vadd.f32 %v1079_v38, %v522_v21  ;;  %v489_v17 = vmul.f32 %v695_v18, %v1039_v62  ;;  %704 = vrsqrt.f32 %v458_v29 }
 0x249   :  { %558 = vst [vmem:[%s1206_s6 + $0x28] sm:$0xff] %v538_v49  ;;  %v523_v36 = vmul.f32 %v1073_v47, %v496_v9 }
 0x24a   :  { %v697_v37 = vpop.eup %696  ;;  %569 = vst [vmem:[%s1206_s6 + $0x80] sm:$0xff] %v549_v31  ;;  %v516_v40 = vmul.f32 %v1073_v47, %v489_v17 }
 0x24b   :  { %v699_v44 = vpop.eup %698  ;;  %v550_v55 = vadd.f32 %v1079_v38, %v523_v36  ;;  %v490_v45 = vmul.f32 %v697_v37, %v1042_v35 }
 0x24c   :  { %v543_v62 = vadd.f32 %v1079_v38, %v516_v40  ;;  %v487_v46 = vmul.f32 %v699_v44, %v1049_v10 }
 0x24d   :  { %570 = vst [vmem:[%s1206_s6 + $0x88] sm:$0xff] %v550_v55  ;;  %v517_v20 = vmul.f32 %v1073_v47, %v490_v45 }
 0x24e   :  { %v701_v48 = vpop.eup %700  ;;  %563 = vst [vmem:[%s1206_s6 + $0x50] sm:$0xff] %v543_v62  ;;  %v514_v24 = vmul.f32 %v1073_v47, %v487_v46 }
 0x24f   :  { %v703_v34 = vpop.eup %702  ;;  %v544_v35 = vadd.f32 %v1079_v38, %v517_v20  ;;  %v488_v52 = vmul.f32 %v701_v48, %v1054_v11 }
 0x250   :  { %v541_v10 = vadd.f32 %v1079_v38, %v514_v24  ;;  %v497_v16 = vmul.f32 %v703_v34, %v1059_v59 }
 0x251   :  { %564 = vst [vmem:[%s1206_s6 + $0x58] sm:$0xff] %v544_v35  ;;  %v515_v33 = vmul.f32 %v1073_v47, %v488_v52 }
 0x252   :  { %v705_v58 = vpop.eup %704  ;;  %561 = vst [vmem:[%s1206_s6 + $0x40] sm:$0xff] %v541_v10  ;;  %v524_v61 = vmul.f32 %v1073_v47, %v497_v16 }
 0x253   :  { %v542_v0 = vadd.f32 %v1079_v38, %v515_v33  ;;  %v498_v11 = vmul.f32 %v705_v58, %v1062_v51 }
 0x254   :  { %v551_v1 = vadd.f32 %v1079_v38, %v524_v61 }
 0x255   :  { %562 = vst [vmem:[%s1206_s6 + $0x48] sm:$0xff] %v542_v0  ;;  %v525_v59 = vmul.f32 %v1073_v47, %v498_v11 }
 0x256   :  { %571 = vst [vmem:[%s1206_s6 + $0x90] sm:$0xff] %v551_v1 }
 0x257   :  { %v552_v3 = vadd.f32 %v1079_v38, %v525_v59 }
 0x259   :  { %572 = vst [vmem:[%s1206_s6 + $0x98] sm:$0xff] %v552_v3 }

// kernel: encoder_layer_forward.5
= control target key start
LH: loop header
LB: loop body
LE: loop exit
PB: predicated region body
PF: predicated region fallthrough
CT: control target
= control target key end

     0   :  { %v1157_v2 = vmov 0   ;;  %s1761_s0 = inlined_call_operand.vmem [shape: f32[160,128], index: 0, kind: input, shape index: {}]   ;;  %s1762_s1 = inlined_call_operand.vmem [shape: bf16[128,256], index: 1, kind: input, shape index: {}]   ;;  %s1763_s2 = inlined_call_operand.vmem [shape: f32[1,256], index: 2, kind: input, shape index: {}]   ;;  %s1764_s3 = inlined_call_operand.vmem [shape: bf16[256,128], index: 3, kind: input, shape index: {}]   ;;  %s1765_s4 = inlined_call_operand.vmem [shape: f32[1,128], index: 4, kind: input, shape index: {}]   ;;  %s1766_s5 = inlined_call_operand.vmem [shape: f32[1,128], index: 5, kind: input, shape index: {}]   ;;  %s1767_s6 = inlined_call_operand.vmem [shape: f32[1,128], index: 6, kind: input, shape index: {}]   ;;  %s1768_s7 = inlined_call_operand.hbm [shape: f32[160,128], index: 7, kind: output, shape index: {}]  }
   0x1   :  { %v1053_v0 = vld [vmem:[%s1762_s1 + $0x4] ss:$8 sps:$4 sm:$0xff]   ;;  %v1055_v1 = vld [vmem:[%s1762_s1] ss:$8 sps:$4 sm:$0xff]   ;;  %198 = vmatprep.mubr.bf16.mxu0 %v1157_v2  ;;  %v1056_v3 = vld [vmem:[%s1762_s1 + $0x14] ss:$8 sps:$4 sm:$0xff]  }
   0x2   :  { %166 = vmatprep.subr.bf16.mxu0 %v1053_v0  ;;  %v1058_v4 = vld [vmem:[%s1762_s1 + $0x10] ss:$8 sps:$4 sm:$0xff]   ;;  %v1059_v5 = vld [vmem:[%s1762_s1 + $0x24] ss:$8 sps:$4 sm:$0xff]   ;;  %v1061_v6 = vld [vmem:[%s1762_s1 + $0x20] ss:$8 sps:$4 sm:$0xff]  }
   0x3   :  { %167 = vmatpush1.bf16.msra.mxu0 %v1055_v1  ;;  %v1062_v7 = vld [vmem:[%s1762_s1 + $0x34] ss:$8 sps:$4 sm:$0xff]   ;;  %v1064_v8 = vld [vmem:[%s1762_s1 + $0x30] ss:$8 sps:$4 sm:$0xff]   ;;  %v1065_v9 = vld [vmem:[%s1762_s1 + $0x44] ss:$8 sps:$4 sm:$0xff]  }
   0x4   :  { %168 = vmatprep.subr.bf16.mxu0 %v1056_v3  ;;  %v1067_v10 = vld [vmem:[%s1762_s1 + $0x40] ss:$8 sps:$4 sm:$0xff]   ;;  %v1068_v11 = vld [vmem:[%s1762_s1 + $0x54] ss:$8 sps:$4 sm:$0xff]   ;;  %v1070_v12 = vld [vmem:[%s1762_s1 + $0x50] ss:$8 sps:$4 sm:$0xff]  }
   0x5   :  { %v1071_v13 = vld [vmem:[%s1762_s1 + $0x64] ss:$8 sps:$4 sm:$0xff]   ;;  %v1081_v18 = vld [vmem:[%s1764_s3 + $0x50] sm:$0xff]   ;;  %v1073_v19 = vld [vmem:[%s1762_s1 + $0x60] ss:$8 sps:$4 sm:$0xff]  }
   0x6   :  { %v1077_v14 = vld [vmem:[%s1764_s3 + $0x40] sm:$0xff]   ;;  %v1079_v16 = vld [vmem:[%s1764_s3 + $0x48] sm:$0xff]   ;;  %v1074_v20 = vld [vmem:[%s1762_s1 + $0x74] ss:$8 sps:$4 sm:$0xff]  }
   0x7   :  { %169 = vmatpush1.bf16.msra.mxu0 %v1058_v4  ;;  %v1078_v15 = vld [vmem:[%s1764_s3] sm:$0xff]   ;;  %973 = vmatprep.subr.bf16.mxu1 %v1077_v14  ;;  %v1080_v17 = vld [vmem:[%s1764_s3 + $0x8] sm:$0xff]   ;;  %v1076_v21 = vld [vmem:[%s1762_s1 + $0x70] ss:$8 sps:$4 sm:$0xff]  }
   0x8   :  { %170 = vmatprep.subr.bf16.mxu0 %v1059_v5  ;;  %974 = vmatpush3.bf16.msra.mxu1 %v1078_v15  ;;  %v1268_v22 = vld [vmem:[%s1761_s0] sm:$0xff]  ;;  %v1082_v23 = vld [vmem:[%s1764_s3 + $0x10] sm:$0xff]   ;;  %v1083_v24 = vld [vmem:[%s1764_s3 + $0x58] sm:$0xff]  }
   0x9   :  { %975 = vmatprep.subr.bf16.mxu1 %v1079_v16  ;;  %v1279_v25 = vld [vmem:[%s1761_s0 + $0x8] sm:$0xff]  ;;  %v1084_v26 = vld [vmem:[%s1764_s3 + $0x18] sm:$0xff]   ;;  %v1085_v27 = vld [vmem:[%s1764_s3 + $0x60] sm:$0xff]  }
   0xa   :  { %v48_v28 = vpack.c.bf16 %v1279_v25, %v1268_v22 }
   0xb   :  { %171 = vmatpush1.bf16.msra.mxu0 %v1061_v6 }
   0xc   :  { %172 = vmatprep.subr.bf16.mxu0 %v1062_v7  ;;  %976 = vmatpush3.bf16.msra.mxu1 %v1080_v17 }
   0xd   :  { %977 = vmatprep.subr.bf16.mxu1 %v1081_v18 }
   0xf   :  { %173 = vmatpush1.bf16.msra.mxu0 %v1064_v8 }
  0x10   :  { %174 = vmatprep.subr.bf16.mxu0 %v1065_v9  ;;  %978 = vmatpush3.bf16.msra.mxu1 %v1082_v23 }
  0x11   :  { %979 = vmatprep.subr.bf16.mxu1 %v1083_v24 }
  0x13   :  { %175 = vmatpush1.bf16.msra.mxu0 %v1067_v10 }
  0x14   :  { %176 = vmatprep.subr.bf16.mxu0 %v1068_v11 }
  0x17   :  { %177 = vmatpush1.bf16.msra.mxu0 %v1070_v12 }
  0x18   :  { %178 = vmatprep.subr.bf16.mxu0 %v1071_v13 }
  0x1b   :  { %179 = vmatpush1.bf16.msra.mxu0 %v1073_v19 }
  0x1c   :  { %180 = vmatprep.subr.bf16.mxu0 %v1074_v20 }
  0x1f   :  { %181 = vmatpush1.bf16.msra.mxu0 %v1076_v21 }
  0x20   :  { %12 = vsyncpa [#allocation3], 0  ;;  %980 = vmatpush3.bf16.msra.mxu1 %v1084_v26  ;;  %v1086_v29 = vld [vmem:[%s1764_s3 + $0x20] sm:$0xff]   ;;  %v1087_v30 = vld [vmem:[%s1764_s3 + $0x68] sm:$0xff]   ;;  %v76_v63 = vlaneseq }
  0x21   :  { %981 = vmatprep.subr.bf16.mxu1 %v1085_v27  ;;  %v1299_v31 = vld [vmem:[%s1761_s0 + $0x10] sm:$0xff]  ;;  %v1304_v32 = vld [vmem:[%s1761_s0 + $0x18] sm:$0xff]  ;;  %v1312_v34 = vld [vmem:[%s1761_s0 + $0x20] sm:$0xff] }
  0x22   :  { %199 = vmatmul.mubr.bf16.vlgmr.msra.gmra.mrb[0].mxu0 %v48_v28  ;;  %v49_v33 = vpack.c.bf16 %v1304_v32, %v1299_v31  ;;  %v1317_v35 = vld [vmem:[%s1761_s0 + $0x28] sm:$0xff]  ;;  %v1325_v37 = vld [vmem:[%s1761_s0 + $0x30] sm:$0xff]  ;;  %v1330_v38 = vld [vmem:[%s1761_s0 + $0x38] sm:$0xff]  ;;  %v77_v0 = vshrl.u32 %v76_v63, 7 }
  0x23   :  { %208 = vmatprep.mubr.bf16.mxu0 %v1157_v2  ;;  %v50_v36 = vpack.c.bf16 %v1317_v35, %v1312_v34  ;;  %v51_v39 = vpack.c.bf16 %v1330_v38, %v1325_v37  ;;  %v1338_v40 = vld [vmem:[%s1761_s0 + $0x40] sm:$0xff]  ;;  %v1343_v41 = vld [vmem:[%s1761_s0 + $0x48] sm:$0xff]  ;;  %v1351_v43 = vld [vmem:[%s1761_s0 + $0x50] sm:$0xff] }
  0x24   :  { %982 = vmatpush3.bf16.msra.mxu1 %v1086_v29  ;;  %v52_v42 = vpack.c.bf16 %v1343_v41, %v1338_v40  ;;  %v1356_v44 = vld [vmem:[%s1761_s0 + $0x58] sm:$0xff]  ;;  %v1364_v46 = vld [vmem:[%s1761_s0 + $0x60] sm:$0xff]  ;;  %v1369_v47 = vld [vmem:[%s1761_s0 + $0x68] sm:$0xff]  ;;  %v78_v1 = vsub.s32 0, %v77_v0  ;;  %v82_v3 = vsub.s32 1, %v77_v0 }
  0x25   :  { %983 = vmatprep.subr.bf16.mxu1 %v1087_v30  ;;  %v53_v45 = vpack.c.bf16 %v1356_v44, %v1351_v43  ;;  %v54_v48 = vpack.c.bf16 %v1369_v47, %v1364_v46  ;;  %v1377_v49 = vld [vmem:[%s1761_s0 + $0x70] sm:$0xff]  ;;  %v1382_v50 = vld [vmem:[%s1761_s0 + $0x78] sm:$0xff]  ;;  %v1390_v52 = vld [vmem:[%s1761_s0 + $0x80] sm:$0xff] }
  0x26   :  { %v55_v51 = vpack.c.bf16 %v1382_v50, %v1377_v49  ;;  %v1395_v53 = vld [vmem:[%s1761_s0 + $0x88] sm:$0xff]  ;;  %v1403_v55 = vld [vmem:[%s1761_s0 + $0x90] sm:$0xff]  ;;  %v1408_v56 = vld [vmem:[%s1761_s0 + $0x98] sm:$0xff] }
  0x27   :  { %v56_v54 = vpack.c.bf16 %v1395_v53, %v1390_v52  ;;  %v57_v57 = vpack.c.bf16 %v1408_v56, %v1403_v55  ;;  %v1088_v58 = vld [vmem:[%s1764_s3 + $0x28] sm:$0xff]   ;;  %v1089_v59 = vld [vmem:[%s1764_s3 + $0x70] sm:$0xff]   ;;  %v1091_v61 = vld [vmem:[%s1764_s3 + $0x78] sm:$0xff]  }
  0x28   :  { %984 = vmatpush3.bf16.msra.mxu1 %v1088_v58  ;;  %v1090_v60 = vld [vmem:[%s1764_s3 + $0x30] sm:$0xff]   ;;  %v1092_v62 = vld [vmem:[%s1764_s3 + $0x38] sm:$0xff]  }
  0x29   :  { %985 = vmatprep.subr.bf16.mxu1 %v1089_v59 }
  0x2a   :  { %209 = vmatmul.mubr.bf16.gmra.mrb[4].mxu0 %v49_v33 }
  0x2b   :  { %218 = vmatprep.mubr.bf16.mxu0 %v1157_v2 }
  0x2c   :  { %986 = vmatpush3.bf16.msra.mxu1 %v1090_v60 }
  0x2d   :  { %987 = vmatprep.subr.bf16.mxu1 %v1091_v61 }
  0x30   :  { %988 = vmatpush3.bf16.msra.mxu1 %v1092_v62 }
  0x32   :  { %219 = vmatmul.mubr.bf16.gmra.mrb[8].mxu0 %v50_v36 }
  0x33   :  { %228 = vmatprep.mubr.bf16.mxu0 %v1157_v2 }
  0x3a   :  { %229 = vmatmul.mubr.bf16.gmra.mrb[12].mxu0 %v51_v39 }
  0x3b   :  { %238 = vmatprep.mubr.bf16.mxu0 %v1157_v2 }
  0x42   :  { %239 = vmatmul.mubr.bf16.gmra.mrb[16].mxu0 %v52_v42 }
  0x43   :  { %248 = vmatprep.mubr.bf16.mxu0 %v1157_v2 }
  0x4a   :  { %249 = vmatmul.mubr.bf16.gmra.mrb[20].mxu0 %v53_v45 }
  0x4b   :  { %258 = vmatprep.mubr.bf16.mxu0 %v1157_v2 }
  0x52   :  { %259 = vmatmul.mubr.bf16.gmra.mrb[24].mxu0 %v54_v48 }
  0x53   :  { %268 = vmatprep.mubr.bf16.mxu0 %v1157_v2 }
  0x5a   :  { %269 = vmatmul.mubr.bf16.gmra.mrb[28].mxu0 %v55_v51 }
  0x5b   :  { %278 = vmatprep.mubr.bf16.mxu0 %v1157_v2 }
  0x62   :  { %279 = vmatmul.mubr.bf16.gmra.mrb[32].mxu0 %v56_v54 }
  0x63   :  { %288 = vmatprep.mubr.bf16.mxu0 %v1157_v2  ;;  %v74_v2 = vld [vmem:[%s1763_s2] sm:$0x3] }
  0x64   :  { %v1430_v4 = vrot.slane %v74_v2, %v78_v1  ;;  %v1432_v5 = vrot.slane %v74_v2, %v82_v3 }
  0x6a   :  { %289 = vmatmul.mubr.bf16.gmra.mrb[36].mxu0 %v57_v57 }
  0xf5   :  { %v200_v6 = vpop.f32.mrb[0].mxu0 }
  0xf6   :  { %v201_v7 = vadd.f32 %v200_v6, %v1430_v4  ;;  %v202_v8 = vpop.f32.mrb[1].mxu0 }
  0xf7   :  { %v203_v9 = vadd.f32 %v202_v8, %v1432_v5  ;;  %v204_v10 = vpop.f32.mrb[2].mxu0 }
  0xf8   :  { %v205_v11 = vadd.f32 %v204_v10, %v1430_v4  ;;  %v206_v12 = vpop.f32.mrb[3].mxu0  ;;  %v299_v14 = vmax.f32 %v201_v7, 0.0 }
  0xf9   :  { %v207_v13 = vadd.f32 %v206_v12, %v1432_v5  ;;  %v300_v16 = vmax.f32 %v203_v9, 0.0 }
  0xfa   :  { %v301_v15 = vmax.f32 %v205_v11, 0.0 }
  0xfb   :  { %v302_v17 = vmax.f32 %v207_v13, 0.0 }
  0xfc   :  { %v339_v18 = vpack.c.bf16 %v301_v15, %v299_v14 }
  0xfd   :  { %v210_v19 = vpop.f32.mrb[4].mxu0  ;;  %v340_v20 = vpack.c.bf16 %v302_v17, %v300_v16 }
  0xfe   :  { %v211_v21 = vadd.f32 %v210_v19, %v1430_v4  ;;  %v212_v23 = vpop.f32.mrb[5].mxu0 }
  0xff   :  { %v213_v24 = vadd.f32 %v212_v23, %v1432_v5  ;;  %v214_v26 = vpop.f32.mrb[6].mxu0  ;;  %526 = vmatprep.mubr.bf16.mxu1 %v340_v20 }
 0x100   :  { %v215_v27 = vadd.f32 %v214_v26, %v1430_v4  ;;  %v216_v28 = vpop.f32.mrb[7].mxu0  ;;  %527 = vmatmul.mubr.bf16.vlgmr.msra.gmra.mrb[0].mxu1 %v339_v18  ;;  %v303_v30 = vmax.f32 %v211_v21, 0.0 }
 0x101   :  { %v217_v29 = vadd.f32 %v216_v28, %v1432_v5  ;;  %v304_v36 = vmax.f32 %v213_v24, 0.0 }
 0x102   :  { %v305_v33 = vmax.f32 %v215_v27, 0.0 }
 0x103   :  { %v306_v39 = vmax.f32 %v217_v29, 0.0 }
 0x104   :  { %v341_v42 = vpack.c.bf16 %v305_v33, %v303_v30 }
 0x105   :  { %v342_v45 = vpack.c.bf16 %v306_v39, %v304_v36  ;;  %v220_v48 = vpop.f32.mrb[8].mxu0 }
 0x106   :  { %v221_v51 = vadd.f32 %v220_v48, %v1430_v4  ;;  %v222_v54 = vpop.f32.mrb[9].mxu0 }
 0x107   :  { %v223_v57 = vadd.f32 %v222_v54, %v1432_v5  ;;  %v224_v58 = vpop.f32.mrb[10].mxu0  ;;  %534 = vmatprep.mubr.bf16.mxu1 %v342_v45 }
 0x108   :  { %v225_v59 = vadd.f32 %v224_v58, %v1430_v4  ;;  %v226_v60 = vpop.f32.mrb[11].mxu0  ;;  %535 = vmatmul.mubr.bf16.gmra.mrb[4].mxu1 %v341_v42  ;;  %v307_v62 = vmax.f32 %v221_v51, 0.0 }
 0x109   :  { %v227_v61 = vadd.f32 %v226_v60, %v1432_v5  ;;  %v308_v0 = vmax.f32 %v223_v57, 0.0 }
 0x10a   :  { %v309_v63 = vmax.f32 %v225_v59, 0.0 }
 0x10b   :  { %v310_v1 = vmax.f32 %v227_v61, 0.0 }
 0x10c   :  { %v343_v2 = vpack.c.bf16 %v309_v63, %v307_v62 }
 0x10d   :  { %v344_v3 = vpack.c.bf16 %v310_v1, %v308_v0  ;;  %v230_v6 = vpop.f32.mrb[12].mxu0 }
 0x10e   :  { %v231_v7 = vadd.f32 %v230_v6, %v1430_v4  ;;  %v232_v8 = vpop.f32.mrb[13].mxu0 }
 0x10f   :  { %v233_v9 = vadd.f32 %v232_v8, %v1432_v5  ;;  %v234_v10 = vpop.f32.mrb[14].mxu0  ;;  %542 = vmatprep.mubr.bf16.mxu1 %v344_v3 }
 0x110   :  { %v235_v11 = vadd.f32 %v234_v10, %v1430_v4  ;;  %v236_v12 = vpop.f32.mrb[15].mxu0  ;;  %543 = vmatmul.mubr.bf16.gmra.mrb[8].mxu1 %v343_v2  ;;  %v311_v14 = vmax.f32 %v231_v7, 0.0 }
 0x111   :  { %v237_v13 = vadd.f32 %v236_v12, %v1432_v5  ;;  %v312_v16 = vmax.f32 %v233_v9, 0.0 }
 0x112   :  { %v313_v15 = vmax.f32 %v235_v11, 0.0 }
 0x113   :  { %v314_v17 = vmax.f32 %v237_v13, 0.0 }
 0x114   :  { %v345_v18 = vpack.c.bf16 %v313_v15, %v311_v14 }
 0x115   :  { %v346_v19 = vpack.c.bf16 %v314_v17, %v312_v16  ;;  %v240_v20 = vpop.f32.mrb[16].mxu0 }
 0x116   :  { %v241_v21 = vadd.f32 %v240_v20, %v1430_v4  ;;  %v242_v23 = vpop.f32.mrb[17].mxu0 }
 0x117   :  { %v243_v24 = vadd.f32 %v242_v23, %v1432_v5  ;;  %v244_v26 = vpop.f32.mrb[18].mxu0  ;;  %550 = vmatprep.mubr.bf16.mxu1 %v346_v19 }
 0x118   :  { %v245_v27 = vadd.f32 %v244_v26, %v1430_v4  ;;  %v246_v28 = vpop.f32.mrb[19].mxu0  ;;  %551 = vmatmul.mubr.bf16.gmra.mrb[12].mxu1 %v345_v18  ;;  %v315_v30 = vmax.f32 %v241_v21, 0.0 }
 0x119   :  { %v247_v29 = vadd.f32 %v246_v28, %v1432_v5  ;;  %v316_v36 = vmax.f32 %v243_v24, 0.0 }
 0x11a   :  { %v317_v33 = vmax.f32 %v245_v27, 0.0 }
 0x11b   :  { %v318_v39 = vmax.f32 %v247_v29, 0.0 }
 0x11c   :  { %v347_v42 = vpack.c.bf16 %v317_v33, %v315_v30 }
 0x11d   :  { %v348_v45 = vpack.c.bf16 %v318_v39, %v316_v36  ;;  %v250_v48 = vpop.f32.mrb[20].mxu0 }
 0x11e   :  { %v251_v51 = vadd.f32 %v250_v48, %v1430_v4  ;;  %v252_v54 = vpop.f32.mrb[21].mxu0 }
 0x11f   :  { %v253_v57 = vadd.f32 %v252_v54, %v1432_v5  ;;  %v254_v58 = vpop.f32.mrb[22].mxu0  ;;  %558 = vmatprep.mubr.bf16.mxu1 %v348_v45 }
 0x120   :  { %v255_v59 = vadd.f32 %v254_v58, %v1430_v4  ;;  %v256_v60 = vpop.f32.mrb[23].mxu0  ;;  %559 = vmatmul.mubr.bf16.gmra.mrb[16].mxu1 %v347_v42  ;;  %v319_v62 = vmax.f32 %v251_v51, 0.0 }
 0x121   :  { %v257_v61 = vadd.f32 %v256_v60, %v1432_v5  ;;  %v320_v0 = vmax.f32 %v253_v57, 0.0 }
 0x122   :  { %v321_v63 = vmax.f32 %v255_v59, 0.0 }
 0x123   :  { %v322_v1 = vmax.f32 %v257_v61, 0.0 }
 0x124   :  { %v349_v2 = vpack.c.bf16 %v321_v63, %v319_v62 }
 0x125   :  { %v350_v3 = vpack.c.bf16 %v322_v1, %v320_v0  ;;  %v260_v6 = vpop.f32.mrb[24].mxu0 }
 0x126   :  { %v261_v7 = vadd.f32 %v260_v6, %v1430_v4  ;;  %v262_v8 = vpop.f32.mrb[25].mxu0 }
 0x127   :  { %v263_v9 = vadd.f32 %v262_v8, %v1432_v5  ;;  %v264_v10 = vpop.f32.mrb[26].mxu0  ;;  %566 = vmatprep.mubr.bf16.mxu1 %v350_v3 }
 0x128   :  { %v265_v11 = vadd.f32 %v264_v10, %v1430_v4  ;;  %v266_v12 = vpop.f32.mrb[27].mxu0  ;;  %567 = vmatmul.mubr.bf16.gmra.mrb[20].mxu1 %v349_v2  ;;  %v323_v14 = vmax.f32 %v261_v7, 0.0 }
 0x129   :  { %v267_v13 = vadd.f32 %v266_v12, %v1432_v5  ;;  %v324_v16 = vmax.f32 %v263_v9, 0.0 }
 0x12a   :  { %v325_v15 = vmax.f32 %v265_v11, 0.0 }
 0x12b   :  { %v326_v17 = vmax.f32 %v267_v13, 0.0 }
 0x12c   :  { %v351_v18 = vpack.c.bf16 %v325_v15, %v323_v14 }
 0x12d   :  { %v352_v19 = vpack.c.bf16 %v326_v17, %v324_v16  ;;  %v270_v20 = vpop.f32.mrb[28].mxu0 }
 0x12e   :  { %v271_v21 = vadd.f32 %v270_v20, %v1430_v4  ;;  %v272_v23 = vpop.f32.mrb[29].mxu0 }
 0x12f   :  { %v273_v24 = vadd.f32 %v272_v23, %v1432_v5  ;;  %v274_v26 = vpop.f32.mrb[30].mxu0  ;;  %574 = vmatprep.mubr.bf16.mxu1 %v352_v19 }
 0x130   :  { %v275_v27 = vadd.f32 %v274_v26, %v1430_v4  ;;  %v276_v28 = vpop.f32.mrb[31].mxu0  ;;  %575 = vmatmul.mubr.bf16.gmra.mrb[24].mxu1 %v351_v18  ;;  %v327_v30 = vmax.f32 %v271_v21, 0.0  ;;  %v1477_v21 = vld [vmem:[%s1765_s4] ss:$0 sm:$0xff] }
 0x131   :  { %v277_v29 = vadd.f32 %v276_v28, %v1432_v5  ;;  %v328_v36 = vmax.f32 %v273_v24, 0.0 }
 0x132   :  { %v329_v33 = vmax.f32 %v275_v27, 0.0 }
 0x133   :  { %v330_v39 = vmax.f32 %v277_v29, 0.0 }
 0x134   :  { %v353_v42 = vpack.c.bf16 %v329_v33, %v327_v30 }
 0x135   :  { %v354_v45 = vpack.c.bf16 %v330_v39, %v328_v36  ;;  %v280_v48 = vpop.f32.mrb[32].mxu0 }
 0x136   :  { %v281_v51 = vadd.f32 %v280_v48, %v1430_v4  ;;  %v282_v54 = vpop.f32.mrb[33].mxu0 }
 0x137   :  { %v283_v57 = vadd.f32 %v282_v54, %v1432_v5  ;;  %v284_v58 = vpop.f32.mrb[34].mxu0  ;;  %582 = vmatprep.mubr.bf16.mxu1 %v354_v45 }
 0x138   :  { %v285_v59 = vadd.f32 %v284_v58, %v1430_v4  ;;  %v286_v60 = vpop.f32.mrb[35].mxu0  ;;  %583 = vmatmul.mubr.bf16.gmra.mrb[28].mxu1 %v353_v42  ;;  %v331_v62 = vmax.f32 %v281_v51, 0.0 }
 0x139   :  { %v287_v61 = vadd.f32 %v286_v60, %v1432_v5  ;;  %v332_v0 = vmax.f32 %v283_v57, 0.0 }
 0x13a   :  { %v333_v63 = vmax.f32 %v285_v59, 0.0 }
 0x13b   :  { %v334_v1 = vmax.f32 %v287_v61, 0.0 }
 0x13c   :  { %v355_v2 = vpack.c.bf16 %v333_v63, %v331_v62 }
 0x13d   :  { %v356_v3 = vpack.c.bf16 %v334_v1, %v332_v0  ;;  %v290_v6 = vpop.f32.mrb[36].mxu0 }
 0x13e   :  { %v291_v7 = vadd.f32 %v290_v6, %v1430_v4  ;;  %v292_v8 = vpop.f32.mrb[37].mxu0 }
 0x13f   :  { %v293_v9 = vadd.f32 %v292_v8, %v1432_v5  ;;  %v294_v10 = vpop.f32.mrb[38].mxu0  ;;  %590 = vmatprep.mubr.bf16.mxu1 %v356_v3 }
 0x140   :  { %v295_v11 = vadd.f32 %v294_v10, %v1430_v4  ;;  %v296_v12 = vpop.f32.mrb[39].mxu0  ;;  %591 = vmatmul.mubr.bf16.gmra.mrb[32].mxu1 %v355_v2  ;;  %v335_v14 = vmax.f32 %v291_v7, 0.0 }
 0x141   :  { %v297_v13 = vadd.f32 %v296_v12, %v1432_v5  ;;  %v336_v16 = vmax.f32 %v293_v9, 0.0 }
 0x142   :  { %v337_v15 = vmax.f32 %v295_v11, 0.0 }
 0x143   :  { %v338_v17 = vmax.f32 %v297_v13, 0.0 }
 0x144   :  { %v357_v18 = vpack.c.bf16 %v337_v15, %v335_v14 }
 0x145   :  { %v358_v19 = vpack.c.bf16 %v338_v17, %v336_v16 }
 0x147   :  { %598 = vmatprep.mubr.bf16.mxu1 %v358_v19 }
 0x148   :  { %599 = vmatmul.mubr.bf16.gmra.mrb[36].mxu1 %v357_v18 }
 0x1d3   :  { %v989_v20 = vpop.f32.mrb[0].mxu1 }
 0x1d4   :  { %v990_v23 = vpop.f32.mrb[1].mxu1 }
 0x1d5   :  { %v991_v4 = vadd.f32 %v990_v23, %v989_v20  ;;  %v992_v24 = vpop.f32.mrb[2].mxu1 }
 0x1d6   :  { %v993_v26 = vpop.f32.mrb[3].mxu1 }
 0x1d7   :  { %v529_v5 = vadd.f32 %v991_v4, %v1477_v21  ;;  %v994_v27 = vadd.f32 %v993_v26, %v992_v24 }
 0x1d9   :  { %v532_v28 = vadd.f32 %v994_v27, %v1477_v21  ;;  %v1482_v29 = vadd.f32 %v529_v5, %v1268_v22 }
 0x1db   :  { %v995_v30 = vpop.f32.mrb[4].mxu1  ;;  %627 = vadd.xlane.f32.xlu0 %v1482_v29  ;;  %v1486_v42 = vadd.f32 %v532_v28, %v1279_v25 }
 0x1dc   :  { %v996_v33 = vpop.f32.mrb[5].mxu1 }
 0x1dd   :  { %v997_v36 = vadd.f32 %v996_v33, %v995_v30  ;;  %v998_v39 = vpop.f32.mrb[6].mxu1 }
 0x1de   :  { %v999_v45 = vpop.f32.mrb[7].mxu1 }
 0x1df   :  { %v537_v48 = vadd.f32 %v997_v36, %v1477_v21  ;;  %v1000_v51 = vadd.f32 %v999_v45, %v998_v39  ;;  %629 = vadd.xlane.f32.xlu0 %v1486_v42 }
 0x1e1   :  { %v540_v54 = vadd.f32 %v1000_v51, %v1477_v21  ;;  %v1492_v22 = vadd.f32 %v537_v48, %v1299_v31 }
 0x1e3   :  { %v1001_v57 = vpop.f32.mrb[8].mxu1  ;;  %631 = vadd.xlane.f32.xlu1 %v1492_v22  ;;  %v1496_v25 = vadd.f32 %v540_v54, %v1304_v32 }
 0x1e4   :  { %v1002_v58 = vpop.f32.mrb[9].mxu1 }
 0x1e5   :  { %v1003_v59 = vadd.f32 %v1002_v58, %v1001_v57  ;;  %v1004_v60 = vpop.f32.mrb[10].mxu1 }
 0x1e6   :  { %v1005_v61 = vpop.f32.mrb[11].mxu1 }
 0x1e7   :  { %v545_v62 = vadd.f32 %v1003_v59, %v1477_v21  ;;  %v1006_v63 = vadd.f32 %v1005_v61, %v1004_v60  ;;  %633 = vadd.xlane.f32.xlu1 %v1496_v25 }
 0x1e9   :  { %v548_v0 = vadd.f32 %v1006_v63, %v1477_v21  ;;  %v1502_v31 = vadd.f32 %v545_v62, %v1312_v34 }
 0x1eb   :  { %v1007_v1 = vpop.f32.mrb[12].mxu1  ;;  %635 = vadd.xlane.f32.xlu0 %v1502_v31  ;;  %v1506_v2 = vadd.f32 %v548_v0, %v1317_v35 }
 0x1ec   :  { %v1008_v3 = vpop.f32.mrb[13].mxu1 }
 0x1ed   :  { %v1009_v32 = vadd.f32 %v1008_v3, %v1007_v1  ;;  %v1010_v6 = vpop.f32.mrb[14].mxu1  ;;  %637 = vadd.xlane.f32.xlu1 %v1506_v2 }
 0x1ee   :  { %v1011_v7 = vpop.f32.mrb[15].mxu1 }
 0x1ef   :  { %v553_v8 = vadd.f32 %v1009_v32, %v1477_v21  ;;  %v1012_v9 = vadd.f32 %v1011_v7, %v1010_v6 }
 0x1f1   :  { %v556_v10 = vadd.f32 %v1012_v9, %v1477_v21  ;;  %v1512_v34 = vadd.f32 %v553_v8, %v1325_v37 }
 0x1f3   :  { %v1013_v11 = vpop.f32.mrb[16].mxu1  ;;  %639 = vadd.xlane.f32.xlu0 %v1512_v34  ;;  %v1516_v35 = vadd.f32 %v556_v10, %v1330_v38 }
 0x1f4   :  { %v1014_v12 = vpop.f32.mrb[17].mxu1 }
 0x1f5   :  { %v1015_v13 = vadd.f32 %v1014_v12, %v1013_v11  ;;  %v1016_v14 = vpop.f32.mrb[18].mxu1  ;;  %641 = vadd.xlane.f32.xlu1 %v1516_v35 }
 0x1f6   :  { %v1017_v15 = vpop.f32.mrb[19].mxu1 }
 0x1f7   :  { %v561_v16 = vadd.f32 %v1015_v13, %v1477_v21  ;;  %v1018_v17 = vadd.f32 %v1017_v15, %v1016_v14 }
 0x1f9   :  { %v564_v18 = vadd.f32 %v1018_v17, %v1477_v21  ;;  %v1522_v37 = vadd.f32 %v561_v16, %v1338_v40 }
 0x1fb   :  { %v1019_v19 = vpop.f32.mrb[20].mxu1  ;;  %643 = vadd.xlane.f32.xlu0 %v1522_v37  ;;  %v1526_v38 = vadd.f32 %v564_v18, %v1343_v41 }
 0x1fc   :  { %v1020_v20 = vpop.f32.mrb[21].mxu1 }
 0x1fd   :  { %v1021_v23 = vadd.f32 %v1020_v20, %v1019_v19  ;;  %v1022_v4 = vpop.f32.mrb[22].mxu1  ;;  %645 = vadd.xlane.f32.xlu1 %v1526_v38 }
 0x1fe   :  { %v1023_v24 = vpop.f32.mrb[23].mxu1 }
 0x1ff   :  { %v569_v26 = vadd.f32 %v1021_v23, %v1477_v21  ;;  %v1024_v5 = vadd.f32 %v1023_v24, %v1022_v4 }
 0x201   :  { %v572_v27 = vadd.f32 %v1024_v5, %v1477_v21  ;;  %v1532_v40 = vadd.f32 %v569_v26, %v1351_v43 }
 0x203   :  { %v1025_v28 = vpop.f32.mrb[24].mxu1  ;;  %647 = vadd.xlane.f32.xlu0 %v1532_v40  ;;  %v1536_v41 = vadd.f32 %v572_v27, %v1356_v44 }
 0x204   :  { %v1026_v30 = vpop.f32.mrb[25].mxu1 }
 0x205   :  { %v1027_v33 = vadd.f32 %v1026_v30, %v1025_v28  ;;  %v1028_v36 = vpop.f32.mrb[26].mxu1  ;;  %649 = vadd.xlane.f32.xlu1 %v1536_v41 }
 0x206   :  { %v1029_v39 = vpop.f32.mrb[27].mxu1 }
 0x207   :  { %v577_v45 = vadd.f32 %v1027_v33, %v1477_v21  ;;  %v1030_v48 = vadd.f32 %v1029_v39, %v1028_v36 }
 0x209   :  { %v580_v51 = vadd.f32 %v1030_v48, %v1477_v21  ;;  %v1542_v43 = vadd.f32 %v577_v45, %v1364_v46 }
 0x20b   :  { %v1031_v54 = vpop.f32.mrb[28].mxu1  ;;  %651 = vadd.xlane.f32.xlu0 %v1542_v43  ;;  %v1546_v44 = vadd.f32 %v580_v51, %v1369_v47 }
 0x20c   :  { %v1032_v57 = vpop.f32.mrb[29].mxu1 }
 0x20d   :  { %v1033_v58 = vadd.f32 %v1032_v57, %v1031_v54  ;;  %v1034_v59 = vpop.f32.mrb[30].mxu1  ;;  %653 = vadd.xlane.f32.xlu1 %v1546_v44 }
 0x20e   :  { %v1035_v60 = vpop.f32.mrb[31].mxu1 }
 0x20f   :  { %v585_v61 = vadd.f32 %v1033_v58, %v1477_v21  ;;  %v1036_v62 = vadd.f32 %v1035_v60, %v1034_v59 }
 0x211   :  { %v588_v63 = vadd.f32 %v1036_v62, %v1477_v21  ;;  %v1552_v46 = vadd.f32 %v585_v61, %v1377_v49 }
 0x213   :  { %v1037_v0 = vpop.f32.mrb[32].mxu1  ;;  %655 = vadd.xlane.f32.xlu0 %v1552_v46  ;;  %v1556_v47 = vadd.f32 %v588_v63, %v1382_v50 }
 0x214   :  { %v1038_v1 = vpop.f32.mrb[33].mxu1 }
 0x215   :  { %v1039_v3 = vadd.f32 %v1038_v1, %v1037_v0  ;;  %v1040_v32 = vpop.f32.mrb[34].mxu1  ;;  %657 = vadd.xlane.f32.xlu1 %v1556_v47 }
 0x216   :  { %v1041_v6 = vpop.f32.mrb[35].mxu1 }
 0x217   :  { %v593_v7 = vadd.f32 %v1039_v3, %v1477_v21  ;;  %v1042_v8 = vadd.f32 %v1041_v6, %v1040_v32 }
 0x219   :  { %v596_v9 = vadd.f32 %v1042_v8, %v1477_v21  ;;  %v1562_v49 = vadd.f32 %v593_v7, %v1390_v52 }
 0x21b   :  { %v1043_v10 = vpop.f32.mrb[36].mxu1  ;;  %659 = vadd.xlane.f32.xlu0 %v1562_v49  ;;  %v1566_v50 = vadd.f32 %v596_v9, %v1395_v53 }
 0x21c   :  { %v1044_v11 = vpop.f32.mrb[37].mxu1 }
 0x21d   :  { %v1045_v12 = vadd.f32 %v1044_v11, %v1043_v10  ;;  %v1046_v13 = vpop.f32.mrb[38].mxu1  ;;  %661 = vadd.xlane.f32.xlu1 %v1566_v50 }
 0x21e   :  { %v1047_v14 = vpop.f32.mrb[39].mxu1 }
 0x21f   :  { %v601_v15 = vadd.f32 %v1045_v12, %v1477_v21  ;;  %v1048_v16 = vadd.f32 %v1047_v14, %v1046_v13 }
 0x221   :  { %v604_v17 = vadd.f32 %v1048_v16, %v1477_v21  ;;  %v1572_v52 = vadd.f32 %v601_v15, %v1403_v55 }
 0x223   :  { %663 = vadd.xlane.f32.xlu0 %v1572_v52  ;;  %v1576_v18 = vadd.f32 %v604_v17, %v1408_v56 }
 0x225   :  { %665 = vadd.xlane.f32.xlu1 %v1576_v18 }
 0x268   :  { %v628_v53 = vpop.xlane.xlu0 %627 }
 0x269   :  { %v668_v19 = vmul.f32 0.0078125, %v628_v53 }
 0x26b   :  { %v1580_v20 = vsub.f32 %v1482_v29, %v668_v19 }
 0x26c   :  { %v630_v23 = vpop.xlane.xlu0 %629 }
 0x26d   :  { %v669_v4 = vmul.f32 0.0078125, %v630_v23  ;;  %v708_v21 = vmul.f32 %v1580_v20, %v1580_v20 }
 0x26f   :  { %v1585_v55 = vsub.f32 %v1486_v42, %v669_v4  ;;  %728 = vadd.xlane.f32.xlu0 %v708_v21 }
 0x270   :  { %v632_v24 = vpop.xlane.xlu1 %631 }
 0x271   :  { %v670_v26 = vmul.f32 0.0078125, %v632_v24  ;;  %v709_v56 = vmul.f32 %v1585_v55, %v1585_v55 }
 0x273   :  { %v1590_v5 = vsub.f32 %v1492_v22, %v670_v26  ;;  %730 = vadd.xlane.f32.xlu1 %v709_v56 }
 0x274   :  { %v634_v29 = vpop.xlane.xlu1 %633 }
 0x275   :  { %v671_v27 = vmul.f32 0.0078125, %v634_v29  ;;  %v710_v28 = vmul.f32 %v1590_v5, %v1590_v5 }
 0x277   :  { %v1595_v30 = vsub.f32 %v1496_v25, %v671_v27  ;;  %732 = vadd.xlane.f32.xlu0 %v710_v28 }
 0x278   :  { %v636_v42 = vpop.xlane.xlu0 %635 }
 0x279   :  { %v672_v33 = vmul.f32 0.0078125, %v636_v42  ;;  %v711_v36 = vmul.f32 %v1595_v30, %v1595_v30 }
 0x27a   :  { %v638_v39 = vpop.xlane.xlu1 %637 }
 0x27b   :  { %v1600_v45 = vsub.f32 %v1502_v31, %v672_v33  ;;  %v673_v22 = vmul.f32 0.0078125, %v638_v39  ;;  %734 = vadd.xlane.f32.xlu1 %v711_v36 }
 0x27d   :  { %v1603_v48 = vsub.f32 %v1506_v2, %v673_v22  ;;  %v712_v51 = vmul.f32 %v1600_v45, %v1600_v45 }
 0x27f   :  { %736 = vadd.xlane.f32.xlu0 %v712_v51  ;;  %v713_v25 = vmul.f32 %v1603_v48, %v1603_v48 }
 0x280   :  { %v640_v54 = vpop.xlane.xlu0 %639 }
 0x281   :  { %v674_v57 = vmul.f32 0.0078125, %v640_v54  ;;  %738 = vadd.xlane.f32.xlu1 %v713_v25 }
 0x282   :  { %v642_v58 = vpop.xlane.xlu1 %641 }
 0x283   :  { %v1610_v59 = vsub.f32 %v1512_v34, %v674_v57  ;;  %v675_v31 = vmul.f32 0.0078125, %v642_v58 }
 0x285   :  { %v1613_v60 = vsub.f32 %v1516_v35, %v675_v31  ;;  %v714_v2 = vmul.f32 %v1610_v59, %v1610_v59 }
 0x287   :  { %740 = vadd.xlane.f32.xlu0 %v714_v2  ;;  %v715_v61 = vmul.f32 %v1613_v60, %v1613_v60 }
 0x288   :  { %v644_v62 = vpop.xlane.xlu0 %643 }
 0x289   :  { %v676_v63 = vmul.f32 0.0078125, %v644_v62  ;;  %742 = vadd.xlane.f32.xlu1 %v715_v61 }
 0x28a   :  { %v646_v0 = vpop.xlane.xlu1 %645 }
 0x28b   :  { %v1620_v1 = vsub.f32 %v1522_v37, %v676_v63  ;;  %v677_v34 = vmul.f32 0.0078125, %v646_v0 }
 0x28d   :  { %v1623_v3 = vsub.f32 %v1526_v38, %v677_v34  ;;  %v716_v35 = vmul.f32 %v1620_v1, %v1620_v1 }
 0x28f   :  { %744 = vadd.xlane.f32.xlu0 %v716_v35  ;;  %v717_v32 = vmul.f32 %v1623_v3, %v1623_v3  ;;  %v1682_v35 = vld [vmem:[%s1766_s5] ss:$0 sm:$0xff]  ;;  %s1158_s5 = smov [#allocation2]  }
 0x290   :  { %v648_v6 = vpop.xlane.xlu0 %647 }
 0x291   :  { %v678_v7 = vmul.f32 0.0078125, %v648_v6  ;;  %746 = vadd.xlane.f32.xlu1 %v717_v32 }
 0x292   :  { %v650_v8 = vpop.xlane.xlu1 %649 }
 0x293   :  { %v1630_v9 = vsub.f32 %v1532_v40, %v678_v7  ;;  %v679_v37 = vmul.f32 0.0078125, %v650_v8  ;;  %v1688_v8 = vld [vmem:[%s1767_s6] ss:$0 sm:$0xff]  ;;  %s927_s6 = sshll.u32 %s1158_s5, 4  ;;  %s928_s6 = int_to_ptr.vmem [resolvable:$true] %s927_s6 }
 0x294   :  { %s1133_s14 = scalar_lea.vmem %s928_s6, 2560  ;;  %p1138_p1 = scmp.lt.s32.totalorder %s928_s6, %s928_s6 }
 0x295   :  { %v1633_v10 = vsub.f32 %v1536_v41, %v679_v37  ;;  %v718_v38 = vmul.f32 %v1630_v9, %v1630_v9  ;;  %p1134_p0 = scmp.ne.s32.totalorder %s928_s6, %s1133_s14  ;;  %p1139_p2 = scmp.lt.s32.totalorder %s1133_s14, %s1133_s14 }
 0x297   :  { %748 = vadd.xlane.f32.xlu0 %v718_v38  ;;  %v719_v11 = vmul.f32 %v1633_v10, %v1633_v10  ;;  %p1140_p3 = por %p1139_p2, %p1138_p1 }
 0x298   :  { %v652_v12 = vpop.xlane.xlu0 %651 }
 0x299   :  { %v680_v13 = vmul.f32 0.0078125, %v652_v12  ;;  %750 = vadd.xlane.f32.xlu1 %v719_v11  ;;  %p1141_p4 = pnand %p1140_p3, %p1134_p0 }
 0x29a   :  { %v654_v14 = vpop.xlane.xlu1 %653 }
 0x29b   :  { %v1640_v15 = vsub.f32 %v1542_v43, %v680_v13  ;;  %v681_v40 = vmul.f32 0.0078125, %v654_v14 }
 0x29d   :  { %v1643_v16 = vsub.f32 %v1546_v44, %v681_v40  ;;  %v720_v41 = vmul.f32 %v1640_v15, %v1640_v15 }
 0x29f   :  { %752 = vadd.xlane.f32.xlu0 %v720_v41  ;;  %v721_v17 = vmul.f32 %v1643_v16, %v1643_v16 }
 0x2a0   :  { %v656_v53 = vpop.xlane.xlu0 %655 }
 0x2a1   :  { %v682_v19 = vmul.f32 0.0078125, %v656_v53  ;;  %754 = vadd.xlane.f32.xlu1 %v721_v17 }
 0x2a2   :  { %v658_v23 = vpop.xlane.xlu1 %657 }
 0x2a3   :  { %v1650_v4 = vsub.f32 %v1552_v46, %v682_v19  ;;  %v683_v43 = vmul.f32 0.0078125, %v658_v23 }
 0x2a5   :  { %v1653_v21 = vsub.f32 %v1556_v47, %v683_v43  ;;  %v722_v44 = vmul.f32 %v1650_v4, %v1650_v4 }
 0x2a7   :  { %756 = vadd.xlane.f32.xlu0 %v722_v44  ;;  %v723_v24 = vmul.f32 %v1653_v21, %v1653_v21 }
 0x2a8   :  { %v660_v26 = vpop.xlane.xlu0 %659 }
 0x2a9   :  { %v684_v56 = vmul.f32 0.0078125, %v660_v26  ;;  %758 = vadd.xlane.f32.xlu1 %v723_v24 }
 0x2aa   :  { %v662_v29 = vpop.xlane.xlu1 %661 }
 0x2ab   :  { %v1660_v27 = vsub.f32 %v1562_v49, %v684_v56  ;;  %v685_v46 = vmul.f32 0.0078125, %v662_v29 }
 0x2ad   :  { %v1663_v28 = vsub.f32 %v1566_v50, %v685_v46  ;;  %v724_v47 = vmul.f32 %v1660_v27, %v1660_v27 }
 0x2af   :  { %760 = vadd.xlane.f32.xlu0 %v724_v47  ;;  %v725_v42 = vmul.f32 %v1663_v28, %v1663_v28 }
 0x2b0   :  { %v664_v33 = vpop.xlane.xlu0 %663 }
 0x2b1   :  { %v686_v36 = vmul.f32 0.0078125, %v664_v33  ;;  %762 = vadd.xlane.f32.xlu1 %v725_v42 }
 0x2b2   :  { %v666_v39 = vpop.xlane.xlu1 %665 }
 0x2b3   :  { %v1670_v22 = vsub.f32 %v1572_v52, %v686_v36  ;;  %v687_v49 = vmul.f32 0.0078125, %v666_v39 }
 0x2b5   :  { %v1673_v51 = vsub.f32 %v1576_v18, %v687_v49  ;;  %v726_v50 = vmul.f32 %v1670_v22, %v1670_v22 }
 0x2b7   :  { %764 = vadd.xlane.f32.xlu0 %v726_v50  ;;  %v727_v25 = vmul.f32 %v1673_v51, %v1673_v51 }
 0x2b9   :  { %766 = vadd.xlane.f32.xlu1 %v727_v25 }
 0x2fc   :  { %v729_v54 = vpop.xlane.xlu0 %728 }
 0x2fd   :  { %v768_v57 = vmul.f32 0.0078125, %v729_v54 }
 0x2ff   :  { %v788_v58 = vadd.f32 1e-05, %v768_v57 }
 0x300   :  { %v731_v31 = vpop.xlane.xlu1 %730 }
 0x301   :  { %1093 = vrsqrt.f32 %v788_v58  ;;  %v769_v2 = vmul.f32 0.0078125, %v731_v31 }
 0x303   :  { %v789_v52 = vadd.f32 1e-05, %v769_v2 }
 0x304   :  { %v733_v61 = vpop.xlane.xlu0 %732 }
 0x305   :  { %1095 = vrsqrt.f32 %v789_v52  ;;  %v770_v62 = vmul.f32 0.0078125, %v733_v61 }
 0x307   :  { %v790_v18 = vadd.f32 1e-05, %v770_v62 }
 0x308   :  { %v735_v63 = vpop.xlane.xlu1 %734 }
 0x309   :  { %1097 = vrsqrt.f32 %v790_v18  ;;  %v771_v0 = vmul.f32 0.0078125, %v735_v63 }
 0x30b   :  { %v1094_v34 = vpop.eup %1093  ;;  %v791_v32 = vadd.f32 1e-05, %v771_v0 }
 0x30c   :  { %v828_v6 = vmul.f32 %v1094_v34, %v1580_v20  ;;  %v737_v7 = vpop.xlane.xlu0 %736 }
 0x30d   :  { %1099 = vrsqrt.f32 %v791_v32  ;;  %v772_v37 = vmul.f32 0.0078125, %v737_v7 }
 0x30e   :  { %v855_v38 = vmul.f32 %v1682_v35, %v828_v6  ;;  %v739_v11 = vpop.xlane.xlu1 %738 }
 0x30f   :  { %v1096_v12 = vpop.eup %1095  ;;  %v792_v13 = vadd.f32 1e-05, %v772_v37  ;;  %v773_v14 = vmul.f32 0.0078125, %v739_v11 }
 0x310   :  { %v882_v40 = vadd.f32 %v1688_v8, %v855_v38  ;;  %v829_v41 = vmul.f32 %v1096_v12, %v1585_v55 }
 0x311   :  { %1101 = vrsqrt.f32 %v792_v13  ;;  %v793_v20 = vadd.f32 1e-05, %v773_v14 }
 0x312   :  { %902 = vst [vmem:[#allocation2] sm:$0xff] %v882_v40  ;;  %v856_v17 = vmul.f32 %v1682_v35, %v829_v41 }
 0x313   :  { %v1098_v53 = vpop.eup %1097  ;;  %1103 = vrsqrt.f32 %v793_v20 }
 0x314   :  { %v883_v19 = vadd.f32 %v1688_v8, %v856_v17  ;;  %v830_v23 = vmul.f32 %v1098_v53, %v1590_v5  ;;  %v741_v43 = vpop.xlane.xlu0 %740 }
 0x315   :  { %v774_v44 = vmul.f32 0.0078125, %v741_v43 }
 0x316   :  { %903 = vst [vmem:[#allocation2 + $0x8] sm:$0xff] %v883_v19  ;;  %v857_v24 = vmul.f32 %v1682_v35, %v830_v23  ;;  %v743_v26 = vpop.xlane.xlu1 %742 }
 0x317   :  { %v1100_v56 = vpop.eup %1099  ;;  %v794_v29 = vadd.f32 1e-05, %v774_v44  ;;  %v775_v55 = vmul.f32 0.0078125, %v743_v26 }
 0x318   :  { %v884_v46 = vadd.f32 %v1688_v8, %v857_v24  ;;  %v831_v47 = vmul.f32 %v1100_v56, %v1595_v30 }
 0x319   :  { %1105 = vrsqrt.f32 %v794_v29  ;;  %v795_v42 = vadd.f32 1e-05, %v775_v55 }
 0x31a   :  { %904 = vst [vmem:[#allocation2 + $0x10] sm:$0xff] %v884_v46  ;;  %v858_v33 = vmul.f32 %v1682_v35, %v831_v47 }
 0x31b   :  { %v1102_v36 = vpop.eup %1101  ;;  %1107 = vrsqrt.f32 %v795_v42 }
 0x31c   :  { %v885_v5 = vadd.f32 %v1688_v8, %v858_v33  ;;  %v832_v39 = vmul.f32 %v1102_v36, %v1600_v45  ;;  %v745_v49 = vpop.xlane.xlu0 %744 }
 0x31d   :  { %v1104_v50 = vpop.eup %1103  ;;  %v776_v25 = vmul.f32 0.0078125, %v745_v49 }
 0x31e   :  { %905 = vst [vmem:[#allocation2 + $0x18] sm:$0xff] %v885_v5  ;;  %v859_v54 = vmul.f32 %v1682_v35, %v832_v39  ;;  %v833_v57 = vmul.f32 %v1104_v50, %v1603_v48  ;;  %v747_v30 = vpop.xlane.xlu1 %746 }
 0x31f   :  { %v796_v58 = vadd.f32 1e-05, %v776_v25  ;;  %v777_v31 = vmul.f32 0.0078125, %v747_v30 }
 0x320   :  { %v886_v2 = vadd.f32 %v1688_v8, %v859_v54  ;;  %v860_v52 = vmul.f32 %v1682_v35, %v833_v57 }
 0x321   :  { %1109 = vrsqrt.f32 %v796_v58  ;;  %v797_v61 = vadd.f32 1e-05, %v777_v31 }
 0x322   :  { %906 = vst [vmem:[#allocation2 + $0x20] sm:$0xff] %v886_v2  ;;  %v887_v45 = vadd.f32 %v1688_v8, %v860_v52 }
 0x323   :  { %v1106_v62 = vpop.eup %1105  ;;  %1111 = vrsqrt.f32 %v797_v61 }
 0x324   :  { %907 = vst [vmem:[#allocation2 + $0x28] sm:$0xff] %v887_v45  ;;  %v834_v18 = vmul.f32 %v1106_v62, %v1610_v59  ;;  %v749_v63 = vpop.xlane.xlu0 %748 }
 0x325   :  { %v1108_v0 = vpop.eup %1107  ;;  %v778_v48 = vmul.f32 0.0078125, %v749_v63 }
 0x326   :  { %v861_v34 = vmul.f32 %v1682_v35, %v834_v18  ;;  %v835_v32 = vmul.f32 %v1108_v0, %v1613_v60  ;;  %v751_v6 = vpop.xlane.xlu1 %750 }
 0x327   :  { %v798_v7 = vadd.f32 1e-05, %v778_v48  ;;  %v779_v37 = vmul.f32 0.0078125, %v751_v6 }
 0x328   :  { %v888_v38 = vadd.f32 %v1688_v8, %v861_v34  ;;  %v862_v11 = vmul.f32 %v1682_v35, %v835_v32 }
 0x329   :  { %1113 = vrsqrt.f32 %v798_v7  ;;  %v799_v12 = vadd.f32 1e-05, %v779_v37 }
 0x32a   :  { %908 = vst [vmem:[#allocation2 + $0x30] sm:$0xff] %v888_v38  ;;  %v889_v13 = vadd.f32 %v1688_v8, %v862_v11 }
 0x32b   :  { %v1110_v59 = vpop.eup %1109  ;;  %1115 = vrsqrt.f32 %v799_v12 }
 0x32c   :  { %909 = vst [vmem:[#allocation2 + $0x38] sm:$0xff] %v889_v13  ;;  %v836_v14 = vmul.f32 %v1110_v59, %v1620_v1  ;;  %v753_v40 = vpop.xlane.xlu0 %752 }
 0x32d   :  { %v1112_v41 = vpop.eup %1111  ;;  %v780_v60 = vmul.f32 0.0078125, %v753_v40 }
 0x32e   :  { %v863_v20 = vmul.f32 %v1682_v35, %v836_v14  ;;  %v837_v17 = vmul.f32 %v1112_v41, %v1623_v3  ;;  %v755_v53 = vpop.xlane.xlu1 %754 }
 0x32f   :  { %v800_v19 = vadd.f32 1e-05, %v780_v60  ;;  %v781_v23 = vmul.f32 0.0078125, %v755_v53 }
 0x330   :  { %v890_v43 = vadd.f32 %v1688_v8, %v863_v20  ;;  %v864_v44 = vmul.f32 %v1682_v35, %v837_v17 }
 0x331   :  { %1117 = vrsqrt.f32 %v800_v19  ;;  %v801_v24 = vadd.f32 1e-05, %v781_v23 }
 0x332   :  { %910 = vst [vmem:[#allocation2 + $0x40] sm:$0xff] %v890_v43  ;;  %v891_v26 = vadd.f32 %v1688_v8, %v864_v44 }
 0x333   :  { %v1114_v1 = vpop.eup %1113  ;;  %1119 = vrsqrt.f32 %v801_v24 }
 0x334   :  { %911 = vst [vmem:[#allocation2 + $0x48] sm:$0xff] %v891_v26  ;;  %v838_v56 = vmul.f32 %v1114_v1, %v1630_v9  ;;  %v757_v29 = vpop.xlane.xlu0 %756 }
 0x335   :  { %v1116_v55 = vpop.eup %1115  ;;  %v782_v3 = vmul.f32 0.0078125, %v757_v29 }
 0x336   :  { %v865_v46 = vmul.f32 %v1682_v35, %v838_v56  ;;  %v839_v47 = vmul.f32 %v1116_v55, %v1633_v10  ;;  %v759_v42 = vpop.xlane.xlu1 %758 }
 0x337   :  { %v802_v33 = vadd.f32 1e-05, %v782_v3  ;;  %v783_v36 = vmul.f32 0.0078125, %v759_v42 }
 0x338   :  { %v892_v5 = vadd.f32 %v1688_v8, %v865_v46  ;;  %v866_v39 = vmul.f32 %v1682_v35, %v839_v47 }
 0x339   :  { %1121 = vrsqrt.f32 %v802_v33  ;;  %v803_v49 = vadd.f32 1e-05, %v783_v36 }
 0x33a   :  { %912 = vst [vmem:[#allocation2 + $0x50] sm:$0xff] %v892_v5  ;;  %v893_v50 = vadd.f32 %v1688_v8, %v866_v39 }
 0x33b   :  { %v1118_v9 = vpop.eup %1117  ;;  %1123 = vrsqrt.f32 %v803_v49 }
 0x33c   :  { %913 = vst [vmem:[#allocation2 + $0x58] sm:$0xff] %v893_v50  ;;  %v840_v25 = vmul.f32 %v1118_v9, %v1640_v15  ;;  %v761_v54 = vpop.xlane.xlu0 %760 }
 0x33d   :  { %v1120_v57 = vpop.eup %1119  ;;  %v784_v10 = vmul.f32 0.0078125, %v761_v54 }
 0x33e   :  { %v867_v30 = vmul.f32 %v1682_v35, %v840_v25  ;;  %v841_v58 = vmul.f32 %v1120_v57, %v1643_v16  ;;  %v763_v31 = vpop.xlane.xlu1 %762 }
 0x33f   :  { %v804_v2 = vadd.f32 1e-05, %v784_v10  ;;  %v785_v52 = vmul.f32 0.0078125, %v763_v31 }
 0x340   :  { %v894_v61 = vadd.f32 %v1688_v8, %v867_v30  ;;  %v868_v45 = vmul.f32 %v1682_v35, %v841_v58 }
 0x341   :  { %1125 = vrsqrt.f32 %v804_v2  ;;  %v805_v62 = vadd.f32 1e-05, %v785_v52 }
 0x342   :  { %914 = vst [vmem:[#allocation2 + $0x60] sm:$0xff] %v894_v61  ;;  %v895_v18 = vadd.f32 %v1688_v8, %v868_v45 }
 0x343   :  { %v1122_v15 = vpop.eup %1121  ;;  %1127 = vrsqrt.f32 %v805_v62 }
 0x344   :  { %915 = vst [vmem:[#allocation2 + $0x68] sm:$0xff] %v895_v18  ;;  %v842_v63 = vmul.f32 %v1122_v15, %v1650_v4  ;;  %v765_v0 = vpop.xlane.xlu0 %764 }
 0x345   :  { %v1124_v48 = vpop.eup %1123  ;;  %v786_v16 = vmul.f32 0.0078125, %v765_v0 }
 0x346   :  { %v869_v34 = vmul.f32 %v1682_v35, %v842_v63  ;;  %v843_v32 = vmul.f32 %v1124_v48, %v1653_v21  ;;  %v767_v6 = vpop.xlane.xlu1 %766 }
 0x347   :  { %v806_v7 = vadd.f32 1e-05, %v786_v16  ;;  %v787_v37 = vmul.f32 0.0078125, %v767_v6 }
 0x348   :  { %v896_v38 = vadd.f32 %v1688_v8, %v869_v34  ;;  %v870_v11 = vmul.f32 %v1682_v35, %v843_v32 }
 0x349   :  { %1129 = vrsqrt.f32 %v806_v7  ;;  %v807_v12 = vadd.f32 1e-05, %v787_v37 }
 0x34a   :  { %916 = vst [vmem:[#allocation2 + $0x70] sm:$0xff] %v896_v38  ;;  %v897_v13 = vadd.f32 %v1688_v8, %v870_v11 }
 0x34b   :  { %v1126_v4 = vpop.eup %1125  ;;  %1131 = vrsqrt.f32 %v807_v12 }
 0x34c   :  { %917 = vst [vmem:[#allocation2 + $0x78] sm:$0xff] %v897_v13  ;;  %v844_v59 = vmul.f32 %v1126_v4, %v1660_v27 }
 0x34d   :  { %v1128_v14 = vpop.eup %1127 }
 0x34e   :  { %v871_v21 = vmul.f32 %v1682_v35, %v844_v59  ;;  %v845_v40 = vmul.f32 %v1128_v14, %v1663_v28 }
 0x350   :  { %v898_v41 = vadd.f32 %v1688_v8, %v871_v21  ;;  %v872_v60 = vmul.f32 %v1682_v35, %v845_v40 }
 0x352   :  { %918 = vst [vmem:[#allocation2 + $0x80] sm:$0xff] %v898_v41  ;;  %v899_v20 = vadd.f32 %v1688_v8, %v872_v60 }
 0x353   :  { %v1130_v17 = vpop.eup %1129 }
 0x354   :  { %919 = vst [vmem:[#allocation2 + $0x88] sm:$0xff] %v899_v20  ;;  %v846_v53 = vmul.f32 %v1130_v17, %v1670_v22 }
 0x355   :  { %v1132_v19 = vpop.eup %1131 }
 0x356   :  { %v873_v23 = vmul.f32 %v1682_v35, %v846_v53  ;;  %v847_v27 = vmul.f32 %v1132_v19, %v1673_v51 }
 0x358   :  { %v900_v28 = vadd.f32 %v1688_v8, %v873_v23  ;;  %v874_v43 = vmul.f32 %v1682_v35, %v847_v27 }
 0x35a   :  { %920 = vst [vmem:[#allocation2 + $0x90] sm:$0xff] %v900_v28  ;;  %v901_v44 = vadd.f32 %v1688_v8, %v874_v43 }
 0x35c   :  { %921 = vst [vmem:[#allocation2 + $0x98] sm:$0xff] %v901_v44 }
 0x35d   :  { %1144 = shalt.err (!%p1141_p4)
}
 0x35e   :  { %s1145_s17 = scalar_lea.hbm %s1768_s7, 2560 }
 0x35f   :  { %p1146_p5 = scmp.ne.s32.totalorder %s1768_s7, %s1145_s17  ;;  %p1149_p6 = scmp.lt.u32.totalorder %s1145_s17, %s1768_s7 }
 0x361   :  { %p1151_p7 = pnand %p1149_p6, %p1146_p5 }
 0x363   :  { %1154 = shalt.err (!%p1151_p7)
}
 0x364   :  { %s1159_s22 = smov 128   ;;  %s1160_s23 = smov 8  }
 0x365   :  { %933 = dma.vmem_to_hbm [thread:$0]  %s928_s6, 2560, %s1768_s7, [#allocation3], %s1159_s22, %s1159_s22, %s1160_s23  }
 0x366   :  { %1155 = dma.done.wait [#allocation3], 2560  }
 0x367   :  { %1156 = vsyncadd [#allocation3], 4294964736 }
 0x368   :  { %937 = vsyncpa [#allocation3], 1 }

</bundles_post_ra>
